<compile_context>
chip_gen: v6e
topology: v6e:2x2x1
jax: 0.10.0
libtpu: 0.0.40
codegen_flags: <defaults>
</compile_context>

<pallas_src>
import functools

import jax
import jax.numpy as jnp
from jax.experimental import pallas as pl
from jax.experimental.pallas import tpu as pltpu


# -------------------------- generation-aware budget / tile preferences --------------------------

def _select_budget():
    cap = None
    try:
        cap = pltpu.get_tpu_info().vmem_capacity_bytes
    except Exception:
        cap = None
    if cap is not None and cap >= 100 * (1 << 20):       # v5e / v6e: 128 MiB VMEM per core
        return 96 * (1 << 20), 512, 1024, 1024
    # v7x (64 MiB per TensorCore) or unknown: leave headroom for the compiler
    return 48 * (1 << 20), 256, 512, 512


VMEM_LIMIT, TM_PREF, TN_PREF, TK_PREF = _select_budget()


# -------------------------- helpers --------------------------

def _gelu_tanh(y):
    # gelu_pytorch_tanh: 0.5*x*(1+tanh(sqrt(2/pi)*(x+0.044715*x^3)))
    c = 0.7978845608028654
    return 0.5 * y * (1.0 + jnp.tanh(c * (y + 0.044715 * (y * y * y))))


def _round_up(x, m):
    return ((x + m - 1) // m) * m


def _tile_and_pad(dim, pref, mult):
    """Pick a tile <= pref (multiple of `mult`) and the (possibly padded) dim it tiles.

    Prefers an exact divisor near pref; otherwise pads the dim up to a multiple of the
    preferred tile (cdiv-style grid, padded rows/cols are sliced off by the caller)."""
    if dim <= pref:
        return dim, dim                       # full-dim block (always legal)
    t = (pref // mult) * mult
    while t >= mult:
        if dim % t == 0 and t * 8 >= pref:    # accept divisors within 8x of the preference
            return t, dim
        t -= mult
    t = (pref // mult) * mult
    return t, _round_up(dim, t)


def _pad_axis(x, axis, target):
    if x.shape[axis] == target:
        return x
    pads = [(0, 0)] * x.ndim
    pads[axis] = (0, target - x.shape[axis])
    return jnp.pad(x, pads)


def _pad1d(x, n):
    return _pad_axis(x, 0, n)


def _pad2d(x, m, n):
    return _pad_axis(_pad_axis(x, 0, m), 1, n)


def _pad3d_sk(x, s, k):
    return _pad_axis(_pad_axis(x, 1, s), 2, k)


# -------------------------- patch embedding: unfold-matmul + bias + position embedding --------------------------

def _patch_embed_kernel(x_ref, w_ref, b_ref, pos_ref, o_ref, acc_ref):
    k = pl.program_id(3)

    @pl.when(k == 0)
    def _():
        acc_ref[...] = jnp.zeros_like(acc_ref)

    acc_ref[...] += jnp.dot(x_ref[0], w_ref[...], preferred_element_type=jnp.float32)

    @pl.when(k == pl.num_programs(3) - 1)
    def _():
        y = acc_ref[...] + b_ref[...].astype(jnp.float32) + pos_ref[...].astype(jnp.float32)
        o_ref[0] = y.astype(o_ref.dtype)


def patch_embed(patches, w, b, pos):
    """patches:[B,S,K] bf16, w:[K,E] bf16, b:[E] f32, pos:[S,E] bf16 -> [B,S,E] bf16."""
    B, S, K = patches.shape
    E = w.shape[1]
    ts, Sp = _tile_and_pad(S, TM_PREF, 16)
    tn, Ep = _tile_and_pad(E, TN_PREF, 128)
    tk, Kp = _tile_and_pad(K, TK_PREF, 128)

    patches_p = _pad3d_sk(patches, Sp, Kp)
    wp = _pad2d(w, Kp, Ep)
    bp = _pad1d(b, Ep).reshape(1, Ep)
    posp = _pad2d(pos, Sp, Ep)

    out = pl.pallas_call(
        _patch_embed_kernel,
        out_shape=jax.ShapeDtypeStruct((B, Sp, Ep), patches.dtype),
        grid=(B, Sp // ts, Ep // tn, Kp // tk),
        in_specs=[
            pl.BlockSpec((1, ts, tk), lambda b_, i, j, k: (b_, i, k)),
            pl.BlockSpec((tk, tn), lambda b_, i, j, k: (k, j)),
            pl.BlockSpec((1, tn), lambda b_, i, j, k: (0, j)),
            pl.BlockSpec((ts, tn), lambda b_, i, j, k: (i, j)),   # pos: indexed by S-tile, not broadcast
        ],
        out_specs=pl.BlockSpec((1, ts, tn), lambda b_, i, j, k: (b_, i, j)),
        scratch_shapes=[pltpu.VMEM((ts, tn), jnp.float32)],
        compiler_params=pltpu.CompilerParams(
            dimension_semantics=("parallel", "parallel", "parallel", "arbitrary"),
            vmem_limit_bytes=VMEM_LIMIT),
    )(patches_p, wp, bp, posp)
    if (Sp, Ep) != (S, E):
        out = out[:, :S, :E]
    return out


# -------------------------- tiled matmul (+bias, +activation, +residual) --------------------------

def _matmul_kernel(*refs, activation, has_residual):
    if has_residual:
        x_ref, w_ref, b_ref, r_ref, o_ref, acc_ref = refs
    else:
        x_ref, w_ref, b_ref, o_ref, acc_ref = refs
        r_ref = None
    k = pl.program_id(2)

    @pl.when(k == 0)
    def _():
        acc_ref[...] = jnp.zeros_like(acc_ref)

    # bf16 MXU inputs straight from HBM-stored bf16; f32 accumulation
    acc_ref[...] += jnp.dot(x_ref[...], w_ref[...], preferred_element_type=jnp.float32)

    @pl.when(k == pl.num_programs(2) - 1)
    def _():
        y = acc_ref[...] + b_ref[...].astype(jnp.float32)
        if activation == "gelu_tanh":
            y = _gelu_tanh(y)
        if has_residual:
            y = y + r_ref[...].astype(jnp.float32)
        o_ref[...] = y.astype(o_ref.dtype)


def matmul_bias(x, w, b, residual=None, activation=None):
    """y = x @ w + b [+ gelu] [+ residual].  x:[M,K] bf16, w:[K,N] bf16, b:[N] f32."""
    M, K = x.shape
    N = w.shape[1]
    tm, Mp = _tile_and_pad(M, TM_PREF, 16)
    tn, Np = _tile_and_pad(N, TN_PREF, 128)
    tk, Kp = _tile_and_pad(K, TK_PREF, 128)

    xp = _pad2d(x, Mp, Kp)
    wp = _pad2d(w, Kp, Np)
    bp = _pad1d(b, Np).reshape(1, Np)

    has_res = residual is not None
    in_specs = [
        pl.BlockSpec((tm, tk), lambda i, j, k: (i, k)),
        pl.BlockSpec((tk, tn), lambda i, j, k: (k, j)),
        pl.BlockSpec((1, tn), lambda i, j, k: (0, j)),
    ]
    args = [xp, wp, bp]
    if has_res:
        in_specs.append(pl.BlockSpec((tm, tn), lambda i, j, k: (i, j)))
        args.append(_pad2d(residual, Mp, Np))

    out = pl.pallas_call(
        functools.partial(_matmul_kernel, activation=activation, has_residual=has_res),
        out_shape=jax.ShapeDtypeStruct((Mp, Np), x.dtype),
        grid=(Mp // tm, Np // tn, Kp // tk),
        in_specs=in_specs,
        out_specs=pl.BlockSpec((tm, tn), lambda i, j, k: (i, j)),
        scratch_shapes=[pltpu.VMEM((tm, tn), jnp.float32)],
        compiler_params=pltpu.CompilerParams(
            dimension_semantics=("parallel", "parallel", "arbitrary"),
            vmem_limit_bytes=VMEM_LIMIT),
    )(*args)
    if (Mp, Np) != (M, N):
        out = out[:M, :N]
    return out


# -------------------------- fused LayerNorm + linear (+activation), LN hoisted across N-tiles ------------------

def _ln_linear_kernel(x_ref, g_ref, bl_ref, w_ref, b_ref, o_ref, xn_ref, *, eps, activation):
    # Compute the LayerNorm once per row-tile (j == 0) into a bf16 VMEM scratch,
    # then reuse it for every output column tile j.
    @pl.when(pl.program_id(1) == 0)
    def _():
        x = x_ref[...].astype(jnp.float32)
        mean = jnp.mean(x, axis=-1, keepdims=True)
        xc = x - mean
        var = jnp.mean(xc * xc, axis=-1, keepdims=True)
        xn = xc * jax.lax.rsqrt(var + eps)
        xn = xn * g_ref[...].astype(jnp.float32) + bl_ref[...].astype(jnp.float32)
        xn_ref[...] = xn.astype(xn_ref.dtype)

    y = jnp.dot(xn_ref[...], w_ref[...], preferred_element_type=jnp.float32)
    y = y + b_ref[...].astype(jnp.float32)
    if activation == "gelu_tanh":
        y = _gelu_tanh(y)
    o_ref[...] = y.astype(o_ref.dtype)


def ln_linear(x, gamma, beta, w, b, eps, activation=None):
    """y = LayerNorm(x) @ w + b [+ gelu].  x:[M,K] bf16 (full K kept per tile for the LN)."""
    M, K = x.shape
    N = w.shape[1]
    tm, Mp = _tile_and_pad(M, TM_PREF, 16)
    tn, Np = _tile_and_pad(N, TN_PREF, 128)

    xp = _pad2d(x, Mp, K)
    wp = _pad2d(w, K, Np)
    bp = _pad1d(b, Np).reshape(1, Np)

    out = pl.pallas_call(
        functools.partial(_ln_linear_kernel, eps=eps, activation=activation),
        out_shape=jax.ShapeDtypeStruct((Mp, Np), x.dtype),
        grid=(Mp // tm, Np // tn),
        in_specs=[
            pl.BlockSpec((tm, K), lambda i, j: (i, 0)),
            pl.BlockSpec((1, K), lambda i, j: (0, 0)),
            pl.BlockSpec((1, K), lambda i, j: (0, 0)),
            pl.BlockSpec((K, tn), lambda i, j: (0, j)),
            pl.BlockSpec((1, tn), lambda i, j: (0, j)),
        ],
        out_specs=pl.BlockSpec((tm, tn), lambda i, j: (i, j)),
        scratch_shapes=[pltpu.VMEM((tm, K), jnp.bfloat16)],
        compiler_params=pltpu.CompilerParams(
            dimension_semantics=("parallel", "arbitrary"),   # j must iterate in order (scratch reuse)
            vmem_limit_bytes=VMEM_LIMIT),
    )(xp, gamma.reshape(1, K), beta.reshape(1, K), wp, bp)
    if (Mp, Np) != (M, N):
        out = out[:M, :N]
    return out


# -------------------------- plain LayerNorm (post_layernorm) --------------------------

def _layernorm_kernel(x_ref, g_ref, b_ref, o_ref, *, eps):
    x = x_ref[...].astype(jnp.float32)
    mean = jnp.mean(x, axis=-1, keepdims=True)
    xc = x - mean
    var = jnp.mean(xc * xc, axis=-1, keepdims=True)
    y = xc * jax.lax.rsqrt(var + eps)
    y = y * g_ref[...].astype(jnp.float32) + b_ref[...].astype(jnp.float32)
    o_ref[...] = y.astype(o_ref.dtype)


def layernorm(x, gamma, beta, eps, out_dtype=None):
    M, N = x.shape
    out_dtype = out_dtype or x.dtype
    tm, Mp = _tile_and_pad(M, TM_PREF, 16)
    xp = _pad_axis(x, 0, Mp)
    out = pl.pallas_call(
        functools.partial(_layernorm_kernel, eps=eps),
        out_shape=jax.ShapeDtypeStruct((Mp, N), out_dtype),
        grid=(Mp // tm,),
        in_specs=[
            pl.BlockSpec((tm, N), lambda i: (i, 0)),
            pl.BlockSpec((1, N), lambda i: (0, 0)),
            pl.BlockSpec((1, N), lambda i: (0, 0)),
        ],
        out_specs=pl.BlockSpec((tm, N), lambda i: (i, 0)),
        compiler_params=pltpu.CompilerParams(
            dimension_semantics=("parallel",),
            vmem_limit_bytes=VMEM_LIMIT),
    )(xp, gamma.reshape(1, N), beta.reshape(1, N))
    if Mp != M:
        out = out[:M]
    return out


# -------------------------- fused MHA + out_proj + bias + residual --------------------------

def _attn_outproj_kernel(qkv_ref, wo_ref, bo_ref, res_ref, o_ref, *,
                         num_heads, head_dim, scale):
    E = num_heads * head_dim
    qkv = qkv_ref[0]                         # [S, 3E] bf16, q|k|v packed along lanes
    wo = wo_ref[...]                         # [E, E] bf16, grid-resident
    S = qkv.shape[0]

    acc = jnp.zeros((S, E), jnp.float32)
    for h in range(num_heads):               # static loop; slices stay in VMEM
        qh = qkv[:, h * head_dim:(h + 1) * head_dim]
        kh = qkv[:, E + h * head_dim:E + (h + 1) * head_dim]
        vh = qkv[:, 2 * E + h * head_dim:2 * E + (h + 1) * head_dim]

        # scores = q @ k^T * scale  (contraction on head_dim; f32 accumulation)
        s = jax.lax.dot_general(qh, kh, (((1,), (1,)), ((), ())),
                                preferred_element_type=jnp.float32) * scale
        m = jnp.max(s, axis=-1, keepdims=True)
        p = jnp.exp(s - m)
        l = jnp.sum(p, axis=-1, keepdims=True)
        oh = jnp.dot(p.astype(jnp.bfloat16), vh, preferred_element_type=jnp.float32)
        oh = oh * pl.reciprocal(l, approx=True)          # EUP reciprocal (free slot)

        # fused out_proj: accumulate this head's contribution lane-densely into [S, E]
        acc = acc + jnp.dot(oh.astype(jnp.bfloat16),
                            wo[h * head_dim:(h + 1) * head_dim, :],
                            preferred_element_type=jnp.float32)

    y = acc + bo_ref[...].astype(jnp.float32) + res_ref[0].astype(jnp.float32)
    o_ref[0] = y.astype(o_ref.dtype)
    # TODO(synk): for real SigLIP (head_dim=72, S=729) pad head_dim to 128 in the qkv/out_proj
    # weights (or pack 2 heads per MXU pass) and add a query-tile / head grid axis so v7x's
    # second TensorCore gets work when B is small.


def attention_outproj(qkv, out_w, out_b, residual, num_heads, scale):
    """qkv:[B,S,3E] bf16 -> softmax(QK^T*scale)V @ W_o + b_o + residual : [B,S,E] bf16."""
    B, S, E3 = qkv.shape
    E = E3 // 3
    head_dim = E // num_heads
    return pl.pallas_call(
        functools.partial(_attn_outproj_kernel, num_heads=num_heads,
                          head_dim=head_dim, scale=scale),
        out_shape=jax.ShapeDtypeStruct((B, S, E), qkv.dtype),
        grid=(B,),
        in_specs=[
            pl.BlockSpec((1, S, E3), lambda b: (b, 0, 0)),
            pl.BlockSpec((E, E), lambda b: (0, 0)),      # constant block index -> stays resident
            pl.BlockSpec((1, E), lambda b: (0, 0)),
            pl.BlockSpec((1, S, E), lambda b: (b, 0, 0)),
        ],
        out_specs=pl.BlockSpec((1, S, E), lambda b: (b, 0, 0)),
        compiler_params=pltpu.CompilerParams(
            dimension_semantics=("parallel",),
            vmem_limit_bytes=VMEM_LIMIT),
    )(qkv, out_w, out_b.reshape(1, E), residual)


# -------------------------- model config / params --------------------------

class Config:
    hidden_size = 128
    num_attention_heads = 4
    intermediate_size = 256
    num_hidden_layers = 2
    num_channels = 3
    image_size = 32
    patch_size = 4
    layer_norm_eps = 1e-6
    hidden_act = "gelu_pytorch_tanh"


def init_params(key, cfg):
    E = cfg.hidden_size
    I = cfg.intermediate_size
    C = cfg.num_channels
    P = cfg.patch_size
    S = (cfg.image_size // cfg.patch_size) ** 2

    def nrm_bf16(k, shape, scale=0.02):
        return (jax.random.normal(k, shape, jnp.float32) * scale).astype(jnp.bfloat16)

    def nrm_f32(k, shape, scale=0.02):
        return jax.random.normal(k, shape, jnp.float32) * scale

    k_pw, k_pb, k_pos = jax.random.split(key, 3)
    params = {
        # conv weight: torch [E,C,P,P].reshape(E, C*P*P).T  (patch flatten order (c, ph, pw))
        "patch_w": nrm_bf16(k_pw, (C * P * P, E)),
        "patch_b": nrm_f32(k_pb, (E,)),
        "pos_emb": nrm_bf16(k_pos, (S, E)),
        "post_ln_g": jnp.ones((E,), jnp.float32),
        "post_ln_b": jnp.zeros((E,), jnp.float32),
    }
    layers = []
    for li in range(cfg.num_hidden_layers):
        lk = jax.random.split(jax.random.fold_in(key, 100 + li), 8)
        layers.append(dict(
            ln1_g=jnp.ones((E,), jnp.float32), ln1_b=jnp.zeros((E,), jnp.float32),
            qkv_w=nrm_bf16(lk[0], (E, 3 * E)), qkv_b=nrm_f32(lk[1], (3 * E,)),
            out_w=nrm_bf16(lk[2], (E, E)), out_b=nrm_f32(lk[3], (E,)),
            ln2_g=jnp.ones((E,), jnp.float32), ln2_b=jnp.zeros((E,), jnp.float32),
            fc1_w=nrm_bf16(lk[4], (E, I)), fc1_b=nrm_f32(lk[5], (I,)),
            fc2_w=nrm_bf16(lk[6], (I, E)), fc2_b=nrm_f32(lk[7], (E,)),
        ))
    params["layers"] = layers
    return params


# -------------------------- forward pass --------------------------

def siglip_vision_forward(pixel_values, params, cfg):
    B, C, H, W = pixel_values.shape
    P = cfg.patch_size
    E = cfg.hidden_size
    Hp, Wp = H // P, W // P
    S = Hp * Wp
    eps = cfg.layer_norm_eps

    # --- SiglipVisionEmbeddings: Conv2d(k=s=P,'valid') as patch-unfold + matmul; bias and
    #     position embedding fused (pos passed as [S,E], never broadcast to [B*S,E] in HBM) ---
    # TODO(synk): the 6-D unfold transpose below is one small XLA HBM pass; it could be folded
    # into the patch-embed kernel's index_map for 'valid' stride-P patches.
    patches = pixel_values.reshape(B, C, Hp, P, Wp, P)
    patches = patches.transpose(0, 2, 4, 1, 3, 5).reshape(B, S, C * P * P)
    patches = patches.astype(jnp.bfloat16)   # matches torch's pixel_values.to(weight dtype)

    x = patch_embed(patches, params["patch_w"], params["patch_b"], params["pos_emb"])
    x = x.reshape(B * S, E)                  # bf16 activations throughout the encoder

    num_heads = cfg.num_attention_heads
    head_dim = E // num_heads
    scale = head_dim ** (-0.5)

    # --- SiglipEncoder ---
    for lp in params["layers"]:
        # attention block: [LN1 + qkv_proj] | [MHA + out_proj + bias + residual]
        qkv = ln_linear(x, lp["ln1_g"], lp["ln1_b"], lp["qkv_w"], lp["qkv_b"], eps)
        x = attention_outproj(qkv.reshape(B, S, 3 * E), lp["out_w"], lp["out_b"],
                              x.reshape(B, S, E), num_heads, scale).reshape(B * S, E)

        # MLP block: [LN2 + fc1 + gelu] | [fc2 + residual]
        h = ln_linear(x, lp["ln2_g"], lp["ln2_b"], lp["fc1_w"], lp["fc1_b"], eps,
                      activation="gelu_tanh")
        x = matmul_bias(h, lp["fc2_w"], lp["fc2_b"], residual=x)

    # --- post_layernorm (feature_sample_layers=None path) ---
    x = layernorm(x, params["post_ln_g"], params["post_ln_b"], eps, out_dtype=jnp.float32)
    return x.reshape(B, S, E)


# -------------------------- main --------------------------

if __name__ == "__main__":
    cfg = Config()
    key = jax.random.PRNGKey(0)
    pkey, xkey = jax.random.split(key)
    params = init_params(pkey, cfg)

    pixel_values = jax.random.normal(
        xkey, (2, cfg.num_channels, cfg.image_size, cfg.image_size), jnp.float32)

    fwd = jax.jit(lambda pv: siglip_vision_forward(pv, params, cfg))
    out = fwd(pixel_values)
    jax.block_until_ready(out)

    S = (cfg.image_size // cfg.patch_size) ** 2
    assert out.shape == (2, S, cfg.hidden_size), out.shape
    assert bool(jnp.all(jnp.isfinite(out)))
    print("KERNEL_OK")
</pallas_src>

<mosaic_0001>
module attributes {stable_mosaic.version = 11 : i64} {
  func.func @_patch_embed_kernel(%arg0: i32, %arg1: i32, %arg2: i32, %arg3: i32, %arg4: memref<1x64x48xbf16, #tpu.memory_space<vmem>>, %arg5: memref<48x128xbf16, #tpu.memory_space<vmem>>, %arg6: memref<1x128xf32, #tpu.memory_space<vmem>>, %arg7: memref<64x128xbf16, #tpu.memory_space<vmem>>, %arg8: memref<1x64x128xbf16, #tpu.memory_space<vmem>>, %arg9: memref<64x128xf32, #tpu.memory_space<vmem>>) attributes {dimension_semantics = [#tpu.dimension_semantics<parallel>, #tpu.dimension_semantics<parallel>, #tpu.dimension_semantics<parallel>, #tpu.dimension_semantics<arbitrary>], iteration_bounds = array<i64: 2, 1, 1, 1>, scalar_prefetch = 0 : i64, scratch_operands = 1 : i64, tpu.core_type = #tpu.core_type<tc>, window_params = [{transform_indices = @transform_0, window_bounds = array<i64: 1, 64, 48>}, {transform_indices = @transform_1, window_bounds = array<i64: 48, 128>}, {transform_indices = @transform_2, window_bounds = array<i64: 1, 128>}, {transform_indices = @transform_3, window_bounds = array<i64: 64, 128>}, {transform_indices = @transform_4, window_bounds = array<i64: 1, 64, 128>}]} {
    %c0_i32 = arith.constant 0 : i32
    %0 = arith.cmpi eq, %arg3, %c0_i32 : i32
    %1 = arith.extui %0 : i1 to i32
    %c0_i32_0 = arith.constant 0 : i32
    %2 = arith.cmpi ne, %1, %c0_i32_0 : i32
    scf.if %2 {
      %cst_11 = arith.constant 0.000000e+00 : f32
      %13 = vector.broadcast %cst_11 : f32 to vector<64x128xf32>
      %c0_12 = arith.constant 0 : index
      %c0_13 = arith.constant 0 : index
      %14 = vector.load %arg9[%c0_12, %c0_13] : memref<64x128xf32, #tpu.memory_space<vmem>>, vector<64x128xf32>
      tpu.vector_store %arg9[%c0_12, %c0_13], %13 {strides = array<i32>} : memref<64x128xf32, #tpu.memory_space<vmem>>, vector<64x128xf32>,
    } else {
    }
    %c0 = arith.constant 0 : index
    %c0_1 = arith.constant 0 : index
    %3 = vector.load %arg9[%c0, %c0_1] : memref<64x128xf32, #tpu.memory_space<vmem>>, vector<64x128xf32>
    %c0_2 = arith.constant 0 : index
    %c0_3 = arith.constant 0 : index
    %c0_4 = arith.constant 0 : index
    %4 = vector.load %arg4[%c0_2, %c0_3, %c0_4] : memref<1x64x48xbf16, #tpu.memory_space<vmem>>, vector<1x64x48xbf16>
    %5 = vector.shape_cast %4 : vector<1x64x48xbf16> to vector<64x48xbf16>
    %c0_5 = arith.constant 0 : index
    %c0_6 = arith.constant 0 : index
    %6 = vector.load %arg5[%c0_5, %c0_6] : memref<48x128xbf16, #tpu.memory_space<vmem>>, vector<48x128xbf16>
    %cst = arith.constant dense<0.000000e+00> : vector<64x128xf32>
    %7 = tpu.matmul %5, %6, %cst {dimension_numbers = #tpu.dot_dimension_numbers<[1], [0], [0], [1], [0, 0, 1, 1], [], []>} : vector<64x48xbf16>, vector<48x128xbf16>, vector<64x128xf32> -> vector<64x128xf32>
    %8 = arith.addf %3, %7 : vector<64x128xf32>
    %c0_7 = arith.constant 0 : index
    %c0_8 = arith.constant 0 : index
    %9 = vector.load %arg9[%c0_7, %c0_8] : memref<64x128xf32, #tpu.memory_space<vmem>>, vector<64x128xf32>
    tpu.vector_store %arg9[%c0_7, %c0_8], %8 {strides = array<i32>} : memref<64x128xf32, #tpu.memory_space<vmem>>, vector<64x128xf32>,
    %c0_i32_9 = arith.constant 0 : i32
    %10 = arith.cmpi eq, %arg3, %c0_i32_9 : i32
    %11 = arith.extui %10 : i1 to i32
    %c0_i32_10 = arith.constant 0 : i32
    %12 = arith.cmpi ne, %11, %c0_i32_10 : i32
    scf.if %12 {
      %c0_11 = arith.constant 0 : index
      %c0_12 = arith.constant 0 : index
      %13 = vector.load %arg9[%c0_11, %c0_12] : memref<64x128xf32, #tpu.memory_space<vmem>>, vector<64x128xf32>
      %c0_13 = arith.constant 0 : index
      %c0_14 = arith.constant 0 : index
      %14 = vector.load %arg6[%c0_13, %c0_14] : memref<1x128xf32, #tpu.memory_space<vmem>>, vector<1x128xf32>
      %15 = vector.broadcast %14 : vector<1x128xf32> to vector<64x128xf32>
      %16 = arith.addf %13, %15 : vector<64x128xf32>
      %c0_15 = arith.constant 0 : index
      %c0_16 = arith.constant 0 : index
      %17 = vector.load %arg7[%c0_15, %c0_16] : memref<64x128xbf16, #tpu.memory_space<vmem>>, vector<64x128xbf16>
      %18 = arith.extf %17 : vector<64x128xbf16> to vector<64x128xf32>
      %19 = arith.addf %16, %18 : vector<64x128xf32>
      %20 = arith.truncf %19 : vector<64x128xf32> to vector<64x128xbf16>
      %c0_17 = arith.constant 0 : index
      %c0_18 = arith.constant 0 : index
      %c0_19 = arith.constant 0 : index
      %21 = vector.load %arg8[%c0_17, %c0_18, %c0_19] : memref<1x64x128xbf16, #tpu.memory_space<vmem>>, vector<1x64x128xbf16>
      %22 = vector.shape_cast %21 : vector<1x64x128xbf16> to vector<64x128xbf16>
      %23 = vector.shape_cast %20 : vector<64x128xbf16> to vector<1x64x128xbf16>
      tpu.vector_store %arg8[%c0_17, %c0_18, %c0_19], %23 {strides = array<i32>} : memref<1x64x128xbf16, #tpu.memory_space<vmem>>, vector<1x64x128xbf16>,
    } else {
    }
    return
  }
  func.func @transform_0(%arg0: i32, %arg1: i32, %arg2: i32, %arg3: i32) -> (i32, i32, i32) {
    %c0_i32 = arith.constant 0 : i32
    return %arg0, %arg1, %arg3 : i32, i32, i32
  }
  func.func @transform_1(%arg0: i32, %arg1: i32, %arg2: i32, %arg3: i32) -> (i32, i32) {
    %c0_i32 = arith.constant 0 : i32
    return %arg3, %arg2 : i32, i32
  }
  func.func @transform_2(%arg0: i32, %arg1: i32, %arg2: i32, %arg3: i32) -> (i32, i32) {
    %c0_i32 = arith.constant 0 : i32
    %c0_i32_0 = arith.constant 0 : i32
    return %c0_i32, %arg2 : i32, i32
  }
  func.func @transform_3(%arg0: i32, %arg1: i32, %arg2: i32, %arg3: i32) -> (i32, i32) {
    %c0_i32 = arith.constant 0 : i32
    return %arg1, %arg2 : i32, i32
  }
  func.func @transform_4(%arg0: i32, %arg1: i32, %arg2: i32, %arg3: i32) -> (i32, i32, i32) {
    %c0_i32 = arith.constant 0 : i32
    return %arg0, %arg1, %arg2 : i32, i32, i32
  }
}

module attributes {stable_mosaic.version = 11 : i64} {
  func.func @_ln_linear_kernel(%arg0: i32, %arg1: i32, %arg2: memref<128x128xbf16, #tpu.memory_space<vmem>>, %arg3: memref<1x128xf32, #tpu.memory_space<vmem>>, %arg4: memref<1x128xf32, #tpu.memory_space<vmem>>, %arg5: memref<128x384xbf16, #tpu.memory_space<vmem>>, %arg6: memref<1x384xf32, #tpu.memory_space<vmem>>, %arg7: memref<128x384xbf16, #tpu.memory_space<vmem>>, %arg8: memref<128x128xbf16, #tpu.memory_space<vmem>>) attributes {dimension_semantics = [#tpu.dimension_semantics<parallel>, #tpu.dimension_semantics<arbitrary>], iteration_bounds = array<i64: 1, 1>, scalar_prefetch = 0 : i64, scratch_operands = 1 : i64, tpu.core_type = #tpu.core_type<tc>, window_params = [{transform_indices = @transform_0, window_bounds = array<i64: 128, 128>}, {pipeline_mode = #tpu.pipeline_mode<synchronous>, transform_indices = @transform_1, window_bounds = array<i64: 1, 128>}, {pipeline_mode = #tpu.pipeline_mode<synchronous>, transform_indices = @transform_2, window_bounds = array<i64: 1, 128>}, {transform_indices = @transform_3, window_bounds = array<i64: 128, 384>}, {transform_indices = @transform_4, window_bounds = array<i64: 1, 384>}, {transform_indices = @transform_5, window_bounds = array<i64: 128, 384>}]} {
    %c0_i32 = arith.constant 0 : i32
    %0 = arith.cmpi eq, %arg1, %c0_i32 : i32
    %1 = arith.extui %0 : i1 to i32
    %c0_i32_0 = arith.constant 0 : i32
    %2 = arith.cmpi ne, %1, %c0_i32_0 : i32
    scf.if %2 {
      %c0_8 = arith.constant 0 : index
      %c0_9 = arith.constant 0 : index
      %11 = vector.load %arg2[%c0_8, %c0_9] : memref<128x128xbf16, #tpu.memory_space<vmem>>, vector<128x128xbf16>
      %12 = arith.extf %11 : vector<128x128xbf16> to vector<128x128xf32>
      %cst_10 = arith.constant dense<0.000000e+00> : vector<128xf32>
      %13 = vector.multi_reduction <add>, %12, %cst_10 [1] : vector<128x128xf32> to vector<128xf32>
      %14 = vector.shape_cast %13 : vector<128xf32> to vector<128x1xf32>
      %cst_11 = arith.constant 1.280000e+02 : f32
      %15 = vector.broadcast %cst_11 : f32 to vector<128x1xf32>
      %16 = arith.divf %14, %15 : vector<128x1xf32>
      %17 = vector.broadcast %16 : vector<128x1xf32> to vector<128x128xf32>
      %18 = arith.subf %12, %17 : vector<128x128xf32>
      %19 = arith.mulf %18, %18 : vector<128x128xf32>
      %cst_12 = arith.constant dense<0.000000e+00> : vector<128xf32>
      %20 = vector.multi_reduction <add>, %19, %cst_12 [1] : vector<128x128xf32> to vector<128xf32>
      %21 = vector.shape_cast %20 : vector<128xf32> to vector<128x1xf32>
      %cst_13 = arith.constant 1.280000e+02 : f32
      %22 = vector.broadcast %cst_13 : f32 to vector<128x1xf32>
      %23 = arith.divf %21, %22 : vector<128x1xf32>
      %cst_14 = arith.constant 9.99999997E-7 : f32
      %24 = vector.broadcast %cst_14 : f32 to vector<128x1xf32>
      %25 = arith.addf %23, %24 : vector<128x1xf32>
      %26 = math.rsqrt %25 : vector<128x1xf32>
      %27 = vector.broadcast %26 : vector<128x1xf32> to vector<128x128xf32>
      %28 = arith.mulf %18, %27 : vector<128x128xf32>
      %c0_15 = arith.constant 0 : index
      %c0_16 = arith.constant 0 : index
      %29 = vector.load %arg3[%c0_15, %c0_16] : memref<1x128xf32, #tpu.memory_space<vmem>>, vector<1x128xf32>
      %30 = vector.broadcast %29 : vector<1x128xf32> to vector<128x128xf32>
      %31 = arith.mulf %28, %30 : vector<128x128xf32>
      %c0_17 = arith.constant 0 : index
      %c0_18 = arith.constant 0 : index
      %32 = vector.load %arg4[%c0_17, %c0_18] : memref<1x128xf32, #tpu.memory_space<vmem>>, vector<1x128xf32>
      %33 = vector.broadcast %32 : vector<1x128xf32> to vector<128x128xf32>
      %34 = arith.addf %31, %33 : vector<128x128xf32>
      %35 = arith.truncf %34 : vector<128x128xf32> to vector<128x128xbf16>
      %c0_19 = arith.constant 0 : index
      %c0_20 = arith.constant 0 : index
      %36 = vector.load %arg8[%c0_19, %c0_20] : memref<128x128xbf16, #tpu.memory_space<vmem>>, vector<128x128xbf16>
      tpu.vector_store %arg8[%c0_19, %c0_20], %35 {strides = array<i32>} : memref<128x128xbf16, #tpu.memory_space<vmem>>, vector<128x128xbf16>,
    } else {
    }
    %c0 = arith.constant 0 : index
    %c0_1 = arith.constant 0 : index
    %3 = vector.load %arg8[%c0, %c0_1] : memref<128x128xbf16, #tpu.memory_space<vmem>>, vector<128x128xbf16>
    %c0_2 = arith.constant 0 : index
    %c0_3 = arith.constant 0 : index
    %4 = vector.load %arg5[%c0_2, %c0_3] : memref<128x384xbf16, #tpu.memory_space<vmem>>, vector<128x384xbf16>
    %cst = arith.constant dense<0.000000e+00> : vector<128x384xf32>
    %5 = tpu.matmul %3, %4, %cst {dimension_numbers = #tpu.dot_dimension_numbers<[1], [0], [0], [1], [0, 0, 1, 1], [], []>} : vector<128x128xbf16>, vector<128x384xbf16>, vector<128x384xf32> -> vector<128x384xf32>
    %c0_4 = arith.constant 0 : index
    %c0_5 = arith.constant 0 : index
    %6 = vector.load %arg6[%c0_4, %c0_5] : memref<1x384xf32, #tpu.memory_space<vmem>>, vector<1x384xf32>
    %7 = vector.broadcast %6 : vector<1x384xf32> to vector<128x384xf32>
    %8 = arith.addf %5, %7 : vector<128x384xf32>
    %9 = arith.truncf %8 : vector<128x384xf32> to vector<128x384xbf16>
    %c0_6 = arith.constant 0 : index
    %c0_7 = arith.constant 0 : index
    %10 = vector.load %arg7[%c0_6, %c0_7] : memref<128x384xbf16, #tpu.memory_space<vmem>>, vector<128x384xbf16>
    tpu.vector_store %arg7[%c0_6, %c0_7], %9 {strides = array<i32>} : memref<128x384xbf16, #tpu.memory_space<vmem>>, vector<128x384xbf16>,
    return
  }
  func.func @transform_0(%arg0: i32, %arg1: i32) -> (i32, i32) {
    %c0_i32 = arith.constant 0 : i32
    %c0_i32_0 = arith.constant 0 : i32
    return %arg0, %c0_i32 : i32, i32
  }
  func.func @transform_1(%arg0: i32, %arg1: i32) -> (i32, i32) {
    %c0_i32 = arith.constant 0 : i32
    %c0_i32_0 = arith.constant 0 : i32
    %c0_i32_1 = arith.constant 0 : i32
    return %c0_i32, %c0_i32_0 : i32, i32
  }
  func.func @transform_2(%arg0: i32, %arg1: i32) -> (i32, i32) {
    %c0_i32 = arith.constant 0 : i32
    %c0_i32_0 = arith.constant 0 : i32
    %c0_i32_1 = arith.constant 0 : i32
    return %c0_i32, %c0_i32_0 : i32, i32
  }
  func.func @transform_3(%arg0: i32, %arg1: i32) -> (i32, i32) {
    %c0_i32 = arith.constant 0 : i32
    %c0_i32_0 = arith.constant 0 : i32
    return %c0_i32, %arg1 : i32, i32
  }
  func.func @transform_4(%arg0: i32, %arg1: i32) -> (i32, i32) {
    %c0_i32 = arith.constant 0 : i32
    %c0_i32_0 = arith.constant 0 : i32
    return %c0_i32, %arg1 : i32, i32
  }
  func.func @transform_5(%arg0: i32, %arg1: i32) -> (i32, i32) {
    %c0_i32 = arith.constant 0 : i32
    return %arg0, %arg1 : i32, i32
  }
}

module attributes {stable_mosaic.version = 11 : i64} {
  func.func @_attn_outproj_kernel(%arg0: i32, %arg1: memref<1x64x384xbf16, #tpu.memory_space<vmem>>, %arg2: memref<128x128xbf16, #tpu.memory_space<vmem>>, %arg3: memref<1x128xf32, #tpu.memory_space<vmem>>, %arg4: memref<1x64x128xbf16, #tpu.memory_space<vmem>>, %arg5: memref<1x64x128xbf16, #tpu.memory_space<vmem>>) attributes {dimension_semantics = [#tpu.dimension_semantics<parallel>], iteration_bounds = array<i64: 2>, scalar_prefetch = 0 : i64, scratch_operands = 0 : i64, tpu.core_type = #tpu.core_type<tc>, window_params = [{transform_indices = @transform_0, window_bounds = array<i64: 1, 64, 384>}, {pipeline_mode = #tpu.pipeline_mode<synchronous>, transform_indices = @transform_1, window_bounds = array<i64: 128, 128>}, {pipeline_mode = #tpu.pipeline_mode<synchronous>, transform_indices = @transform_2, window_bounds = array<i64: 1, 128>}, {transform_indices = @transform_3, window_bounds = array<i64: 1, 64, 128>}, {transform_indices = @transform_4, window_bounds = array<i64: 1, 64, 128>}]} {
    %c0 = arith.constant 0 : index
    %c0_0 = arith.constant 0 : index
    %c0_1 = arith.constant 0 : index
    %0 = vector.load %arg1[%c0, %c0_0, %c0_1] : memref<1x64x384xbf16, #tpu.memory_space<vmem>>, vector<1x64x384xbf16>
    %1 = vector.shape_cast %0 : vector<1x64x384xbf16> to vector<64x384xbf16>
    %c0_2 = arith.constant 0 : index
    %c0_3 = arith.constant 0 : index
    %2 = vector.load %arg2[%c0_2, %c0_3] : memref<128x128xbf16, #tpu.memory_space<vmem>>, vector<128x128xbf16>
    %cst = arith.constant 0.000000e+00 : f32
    %3 = vector.broadcast %cst : f32 to vector<64x128xf32>
    %4 = vector.extract_strided_slice %1 {offsets = [0, 0], sizes = [64, 32], strides = [1, 1]} : vector<64x384xbf16> to vector<64x32xbf16>
    %5 = vector.extract_strided_slice %1 {offsets = [0, 128], sizes = [64, 32], strides = [1, 1]} : vector<64x384xbf16> to vector<64x32xbf16>
    %6 = vector.extract_strided_slice %1 {offsets = [0, 256], sizes = [64, 32], strides = [1, 1]} : vector<64x384xbf16> to vector<64x32xbf16>
    %cst_4 = arith.constant dense<0.000000e+00> : vector<64x64xf32>
    %7 = tpu.matmul %4, %5, %cst_4 {dimension_numbers = #tpu.dot_dimension_numbers<[1], [1], [0], [0], [0, 0, 1, 0], [], []>} : vector<64x32xbf16>, vector<64x32xbf16>, vector<64x64xf32> -> vector<64x64xf32>
    %cst_5 = arith.constant 0.176776692 : f32
    %8 = vector.broadcast %cst_5 : f32 to vector<64x64xf32>
    %9 = arith.mulf %7, %8 : vector<64x64xf32>
    %cst_6 = arith.constant dense<0xFF800000> : vector<64xf32>
    %10 = vector.multi_reduction <maximumf>, %9, %cst_6 [1] : vector<64x64xf32> to vector<64xf32>
    %11 = vector.shape_cast %10 : vector<64xf32> to vector<64x1xf32>
    %12 = vector.broadcast %11 : vector<64x1xf32> to vector<64x64xf32>
    %13 = arith.subf %9, %12 : vector<64x64xf32>
    %14 = math.exp %13 : vector<64x64xf32>
    %cst_7 = arith.constant dense<0.000000e+00> : vector<64xf32>
    %15 = vector.multi_reduction <add>, %14, %cst_7 [1] : vector<64x64xf32> to vector<64xf32>
    %16 = vector.shape_cast %15 : vector<64xf32> to vector<64x1xf32>
    %17 = arith.truncf %14 : vector<64x64xf32> to vector<64x64xbf16>
    %cst_8 = arith.constant dense<0.000000e+00> : vector<64x32xf32>
    %18 = tpu.matmul %17, %6, %cst_8 {dimension_numbers = #tpu.dot_dimension_numbers<[1], [0], [0], [1], [0, 0, 1, 1], [], []>} : vector<64x64xbf16>, vector<64x32xbf16>, vector<64x32xf32> -> vector<64x32xf32>
    %19 = tpu.reciprocal %16 {approx = true} : vector<64x1xf32> -> vector<64x1xf32>
    %20 = vector.broadcast %19 : vector<64x1xf32> to vector<64x32xf32>
    %21 = arith.mulf %18, %20 : vector<64x32xf32>
    %22 = arith.truncf %21 : vector<64x32xf32> to vector<64x32xbf16>
    %23 = vector.extract_strided_slice %2 {offsets = [0, 0], sizes = [32, 128], strides = [1, 1]} : vector<128x128xbf16> to vector<32x128xbf16>
    %cst_9 = arith.constant dense<0.000000e+00> : vector<64x128xf32>
    %24 = tpu.matmul %22, %23, %cst_9 {dimension_numbers = #tpu.dot_dimension_numbers<[1], [0], [0], [1], [0, 0, 1, 1], [], []>} : vector<64x32xbf16>, vector<32x128xbf16>, vector<64x128xf32> -> vector<64x128xf32>
    %25 = arith.addf %3, %24 : vector<64x128xf32>
    %26 = vector.extract_strided_slice %1 {offsets = [0, 32], sizes = [64, 32], strides = [1, 1]} : vector<64x384xbf16> to vector<64x32xbf16>
    %27 = vector.extract_strided_slice %1 {offsets = [0, 160], sizes = [64, 32], strides = [1, 1]} : vector<64x384xbf16> to vector<64x32xbf16>
    %28 = vector.extract_strided_slice %1 {offsets = [0, 288], sizes = [64, 32], strides = [1, 1]} : vector<64x384xbf16> to vector<64x32xbf16>
    %cst_10 = arith.constant dense<0.000000e+00> : vector<64x64xf32>
    %29 = tpu.matmul %26, %27, %cst_10 {dimension_numbers = #tpu.dot_dimension_numbers<[1], [1], [0], [0], [0, 0, 1, 0], [], []>} : vector<64x32xbf16>, vector<64x32xbf16>, vector<64x64xf32> -> vector<64x64xf32>
    %cst_11 = arith.constant 0.176776692 : f32
    %30 = vector.broadcast %cst_11 : f32 to vector<64x64xf32>
    %31 = arith.mulf %29, %30 : vector<64x64xf32>
    %cst_12 = arith.constant dense<0xFF800000> : vector<64xf32>
    %32 = vector.multi_reduction <maximumf>, %31, %cst_12 [1] : vector<64x64xf32> to vector<64xf32>
    %33 = vector.shape_cast %32 : vector<64xf32> to vector<64x1xf32>
    %34 = vector.broadcast %33 : vector<64x1xf32> to vector<64x64xf32>
    %35 = arith.subf %31, %34 : vector<64x64xf32>
    %36 = math.exp %35 : vector<64x64xf32>
    %cst_13 = arith.constant dense<0.000000e+00> : vector<64xf32>
    %37 = vector.multi_reduction <add>, %36, %cst_13 [1] : vector<64x64xf32> to vector<64xf32>
    %38 = vector.shape_cast %37 : vector<64xf32> to vector<64x1xf32>
    %39 = arith.truncf %36 : vector<64x64xf32> to vector<64x64xbf16>
    %cst_14 = arith.constant dense<0.000000e+00> : vector<64x32xf32>
    %40 = tpu.matmul %39, %28, %cst_14 {dimension_numbers = #tpu.dot_dimension_numbers<[1], [0], [0], [1], [0, 0, 1, 1], [], []>} : vector<64x64xbf16>, vector<64x32xbf16>, vector<64x32xf32> -> vector<64x32xf32>
    %41 = tpu.reciprocal %38 {approx = true} : vector<64x1xf32> -> vector<64x1xf32>
    %42 = vector.broadcast %41 : vector<64x1xf32> to vector<64x32xf32>
    %43 = arith.mulf %40, %42 : vector<64x32xf32>
    %44 = arith.truncf %43 : vector<64x32xf32> to vector<64x32xbf16>
    %45 = vector.extract_strided_slice %2 {offsets = [32, 0], sizes = [32, 128], strides = [1, 1]} : vector<128x128xbf16> to vector<32x128xbf16>
    %cst_15 = arith.constant dense<0.000000e+00> : vector<64x128xf32>
    %46 = tpu.matmul %44, %45, %cst_15 {dimension_numbers = #tpu.dot_dimension_numbers<[1], [0], [0], [1], [0, 0, 1, 1], [], []>} : vector<64x32xbf16>, vector<32x128xbf16>, vector<64x128xf32> -> vector<64x128xf32>
    %47 = arith.addf %25, %46 : vector<64x128xf32>
    %48 = vector.extract_strided_slice %1 {offsets = [0, 64], sizes = [64, 32], strides = [1, 1]} : vector<64x384xbf16> to vector<64x32xbf16>
    %49 = vector.extract_strided_slice %1 {offsets = [0, 192], sizes = [64, 32], strides = [1, 1]} : vector<64x384xbf16> to vector<64x32xbf16>
    %50 = vector.extract_strided_slice %1 {offsets = [0, 320], sizes = [64, 32], strides = [1, 1]} : vector<64x384xbf16> to vector<64x32xbf16>
    %cst_16 = arith.constant dense<0.000000e+00> : vector<64x64xf32>
    %51 = tpu.matmul %48, %49, %cst_16 {dimension_numbers = #tpu.dot_dimension_numbers<[1], [1], [0], [0], [0, 0, 1, 0], [], []>} : vector<64x32xbf16>, vector<64x32xbf16>, vector<64x64xf32> -> vector<64x64xf32>
    %cst_17 = arith.constant 0.176776692 : f32
    %52 = vector.broadcast %cst_17 : f32 to vector<64x64xf32>
    %53 = arith.mulf %51, %52 : vector<64x64xf32>
    %cst_18 = arith.constant dense<0xFF800000> : vector<64xf32>
    %54 = vector.multi_reduction <maximumf>, %53, %cst_18 [1] : vector<64x64xf32> to vector<64xf32>
    %55 = vector.shape_cast %54 : vector<64xf32> to vector<64x1xf32>
    %56 = vector.broadcast %55 : vector<64x1xf32> to vector<64x64xf32>
    %57 = arith.subf %53, %56 : vector<64x64xf32>
    %58 = math.exp %57 : vector<64x64xf32>
    %cst_19 = arith.constant dense<0.000000e+00> : vector<64xf32>
    %59 = vector.multi_reduction <add>, %58, %cst_19 [1] : vector<64x64xf32> to vector<64xf32>
    %60 = vector.shape_cast %59 : vector<64xf32> to vector<64x1xf32>
    %61 = arith.truncf %58 : vector<64x64xf32> to vector<64x64xbf16>
    %cst_20 = arith.constant dense<0.000000e+00> : vector<64x32xf32>
    %62 = tpu.matmul %61, %50, %cst_20 {dimension_numbers = #tpu.dot_dimension_numbers<[1], [0], [0], [1], [0, 0, 1, 1], [], []>} : vector<64x64xbf16>, vector<64x32xbf16>, vector<64x32xf32> -> vector<64x32xf32>
    %63 = tpu.reciprocal %60 {approx = true} : vector<64x1xf32> -> vector<64x1xf32>
    %64 = vector.broadcast %63 : vector<64x1xf32> to vector<64x32xf32>
    %65 = arith.mulf %62, %64 : vector<64x32xf32>
    %66 = arith.truncf %65 : vector<64x32xf32> to vector<64x32xbf16>
    %67 = vector.extract_strided_slice %2 {offsets = [64, 0], sizes = [32, 128], strides = [1, 1]} : vector<128x128xbf16> to vector<32x128xbf16>
    %cst_21 = arith.constant dense<0.000000e+00> : vector<64x128xf32>
    %68 = tpu.matmul %66, %67, %cst_21 {dimension_numbers = #tpu.dot_dimension_numbers<[1], [0], [0], [1], [0, 0, 1, 1], [], []>} : vector<64x32xbf16>, vector<32x128xbf16>, vector<64x128xf32> -> vector<64x128xf32>
    %69 = arith.addf %47, %68 : vector<64x128xf32>
    %70 = vector.extract_strided_slice %1 {offsets = [0, 96], sizes = [64, 32], strides = [1, 1]} : vector<64x384xbf16> to vector<64x32xbf16>
    %71 = vector.extract_strided_slice %1 {offsets = [0, 224], sizes = [64, 32], strides = [1, 1]} : vector<64x384xbf16> to vector<64x32xbf16>
    %72 = vector.extract_strided_slice %1 {offsets = [0, 352], sizes = [64, 32], strides = [1, 1]} : vector<64x384xbf16> to vector<64x32xbf16>
    %cst_22 = arith.constant dense<0.000000e+00> : vector<64x64xf32>
    %73 = tpu.matmul %70, %71, %cst_22 {dimension_numbers = #tpu.dot_dimension_numbers<[1], [1], [0], [0], [0, 0, 1, 0], [], []>} : vector<64x32xbf16>, vector<64x32xbf16>, vector<64x64xf32> -> vector<64x64xf32>
    %cst_23 = arith.constant 0.176776692 : f32
    %74 = vector.broadcast %cst_23 : f32 to vector<64x64xf32>
    %75 = arith.mulf %73, %74 : vector<64x64xf32>
    %cst_24 = arith.constant dense<0xFF800000> : vector<64xf32>
    %76 = vector.multi_reduction <maximumf>, %75, %cst_24 [1] : vector<64x64xf32> to vector<64xf32>
    %77 = vector.shape_cast %76 : vector<64xf32> to vector<64x1xf32>
    %78 = vector.broadcast %77 : vector<64x1xf32> to vector<64x64xf32>
    %79 = arith.subf %75, %78 : vector<64x64xf32>
    %80 = math.exp %79 : vector<64x64xf32>
    %cst_25 = arith.constant dense<0.000000e+00> : vector<64xf32>
    %81 = vector.multi_reduction <add>, %80, %cst_25 [1] : vector<64x64xf32> to vector<64xf32>
    %82 = vector.shape_cast %81 : vector<64xf32> to vector<64x1xf32>
    %83 = arith.truncf %80 : vector<64x64xf32> to vector<64x64xbf16>
    %cst_26 = arith.constant dense<0.000000e+00> : vector<64x32xf32>
    %84 = tpu.matmul %83, %72, %cst_26 {dimension_numbers = #tpu.dot_dimension_numbers<[1], [0], [0], [1], [0, 0, 1, 1], [], []>} : vector<64x64xbf16>, vector<64x32xbf16>, vector<64x32xf32> -> vector<64x32xf32>
    %85 = tpu.reciprocal %82 {approx = true} : vector<64x1xf32> -> vector<64x1xf32>
    %86 = vector.broadcast %85 : vector<64x1xf32> to vector<64x32xf32>
    %87 = arith.mulf %84, %86 : vector<64x32xf32>
    %88 = arith.truncf %87 : vector<64x32xf32> to vector<64x32xbf16>
    %89 = vector.extract_strided_slice %2 {offsets = [96, 0], sizes = [32, 128], strides = [1, 1]} : vector<128x128xbf16> to vector<32x128xbf16>
    %cst_27 = arith.constant dense<0.000000e+00> : vector<64x128xf32>
    %90 = tpu.matmul %88, %89, %cst_27 {dimension_numbers = #tpu.dot_dimension_numbers<[1], [0], [0], [1], [0, 0, 1, 1], [], []>} : vector<64x32xbf16>, vector<32x128xbf16>, vector<64x128xf32> -> vector<64x128xf32>
    %91 = arith.addf %69, %90 : vector<64x128xf32>
    %c0_28 = arith.constant 0 : index
    %c0_29 = arith.constant 0 : index
    %92 = vector.load %arg3[%c0_28, %c0_29] : memref<1x128xf32, #tpu.memory_space<vmem>>, vector<1x128xf32>
    %93 = vector.broadcast %92 : vector<1x128xf32> to vector<64x128xf32>
    %94 = arith.addf %91, %93 : vector<64x128xf32>
    %c0_30 = arith.constant 0 : index
    %c0_31 = arith.constant 0 : index
    %c0_32 = arith.constant 0 : index
    %95 = vector.load %arg4[%c0_30, %c0_31, %c0_32] : memref<1x64x128xbf16, #tpu.memory_space<vmem>>, vector<1x64x128xbf16>
    %96 = vector.shape_cast %95 : vector<1x64x128xbf16> to vector<64x128xbf16>
    %97 = arith.extf %96 : vector<64x128xbf16> to vector<64x128xf32>
    %98 = arith.addf %94, %97 : vector<64x128xf32>
    %99 = arith.truncf %98 : vector<64x128xf32> to vector<64x128xbf16>
    %c0_33 = arith.constant 0 : index
    %c0_34 = arith.constant 0 : index
    %c0_35 = arith.constant 0 : index
    %100 = vector.load %arg5[%c0_33, %c0_34, %c0_35] : memref<1x64x128xbf16, #tpu.memory_space<vmem>>, vector<1x64x128xbf16>
    %101 = vector.shape_cast %100 : vector<1x64x128xbf16> to vector<64x128xbf16>
    %102 = vector.shape_cast %99 : vector<64x128xbf16> to vector<1x64x128xbf16>
    tpu.vector_store %arg5[%c0_33, %c0_34, %c0_35], %102 {strides = array<i32>} : memref<1x64x128xbf16, #tpu.memory_space<vmem>>, vector<1x64x128xbf16>,
    return
  }
  func.func @transform_0(%arg0: i32) -> (i32, i32, i32) {
    %c0_i32 = arith.constant 0 : i32
    %c0_i32_0 = arith.constant 0 : i32
    %c0_i32_1 = arith.constant 0 : i32
    return %arg0, %c0_i32, %c0_i32_0 : i32, i32, i32
  }
  func.func @transform_1(%arg0: i32) -> (i32, i32) {
    %c0_i32 = arith.constant 0 : i32
    %c0_i32_0 = arith.constant 0 : i32
    %c0_i32_1 = arith.constant 0 : i32
    return %c0_i32, %c0_i32_0 : i32, i32
  }
  func.func @transform_2(%arg0: i32) -> (i32, i32) {
    %c0_i32 = arith.constant 0 : i32
    %c0_i32_0 = arith.constant 0 : i32
    %c0_i32_1 = arith.constant 0 : i32
    return %c0_i32, %c0_i32_0 : i32, i32
  }
  func.func @transform_3(%arg0: i32) -> (i32, i32, i32) {
    %c0_i32 = arith.constant 0 : i32
    %c0_i32_0 = arith.constant 0 : i32
    %c0_i32_1 = arith.constant 0 : i32
    return %arg0, %c0_i32, %c0_i32_0 : i32, i32, i32
  }
  func.func @transform_4(%arg0: i32) -> (i32, i32, i32) {
    %c0_i32 = arith.constant 0 : i32
    %c0_i32_0 = arith.constant 0 : i32
    %c0_i32_1 = arith.constant 0 : i32
    return %arg0, %c0_i32, %c0_i32_0 : i32, i32, i32
  }
}

module attributes {stable_mosaic.version = 11 : i64} {
  func.func @_ln_linear_kernel(%arg0: i32, %arg1: i32, %arg2: memref<128x128xbf16, #tpu.memory_space<vmem>>, %arg3: memref<1x128xf32, #tpu.memory_space<vmem>>, %arg4: memref<1x128xf32, #tpu.memory_space<vmem>>, %arg5: memref<128x256xbf16, #tpu.memory_space<vmem>>, %arg6: memref<1x256xf32, #tpu.memory_space<vmem>>, %arg7: memref<128x256xbf16, #tpu.memory_space<vmem>>, %arg8: memref<128x128xbf16, #tpu.memory_space<vmem>>) attributes {dimension_semantics = [#tpu.dimension_semantics<parallel>, #tpu.dimension_semantics<arbitrary>], iteration_bounds = array<i64: 1, 1>, scalar_prefetch = 0 : i64, scratch_operands = 1 : i64, tpu.core_type = #tpu.core_type<tc>, window_params = [{transform_indices = @transform_0, window_bounds = array<i64: 128, 128>}, {pipeline_mode = #tpu.pipeline_mode<synchronous>, transform_indices = @transform_1, window_bounds = array<i64: 1, 128>}, {pipeline_mode = #tpu.pipeline_mode<synchronous>, transform_indices = @transform_2, window_bounds = array<i64: 1, 128>}, {transform_indices = @transform_3, window_bounds = array<i64: 128, 256>}, {transform_indices = @transform_4, window_bounds = array<i64: 1, 256>}, {transform_indices = @transform_5, window_bounds = array<i64: 128, 256>}]} {
    %c0_i32 = arith.constant 0 : i32
    %0 = arith.cmpi eq, %arg1, %c0_i32 : i32
    %1 = arith.extui %0 : i1 to i32
    %c0_i32_0 = arith.constant 0 : i32
    %2 = arith.cmpi ne, %1, %c0_i32_0 : i32
    scf.if %2 {
      %c0_12 = arith.constant 0 : index
      %c0_13 = arith.constant 0 : index
      %24 = vector.load %arg2[%c0_12, %c0_13] : memref<128x128xbf16, #tpu.memory_space<vmem>>, vector<128x128xbf16>
      %25 = arith.extf %24 : vector<128x128xbf16> to vector<128x128xf32>
      %cst_14 = arith.constant dense<0.000000e+00> : vector<128xf32>
      %26 = vector.multi_reduction <add>, %25, %cst_14 [1] : vector<128x128xf32> to vector<128xf32>
      %27 = vector.shape_cast %26 : vector<128xf32> to vector<128x1xf32>
      %cst_15 = arith.constant 1.280000e+02 : f32
      %28 = vector.broadcast %cst_15 : f32 to vector<128x1xf32>
      %29 = arith.divf %27, %28 : vector<128x1xf32>
      %30 = vector.broadcast %29 : vector<128x1xf32> to vector<128x128xf32>
      %31 = arith.subf %25, %30 : vector<128x128xf32>
      %32 = arith.mulf %31, %31 : vector<128x128xf32>
      %cst_16 = arith.constant dense<0.000000e+00> : vector<128xf32>
      %33 = vector.multi_reduction <add>, %32, %cst_16 [1] : vector<128x128xf32> to vector<128xf32>
      %34 = vector.shape_cast %33 : vector<128xf32> to vector<128x1xf32>
      %cst_17 = arith.constant 1.280000e+02 : f32
      %35 = vector.broadcast %cst_17 : f32 to vector<128x1xf32>
      %36 = arith.divf %34, %35 : vector<128x1xf32>
      %cst_18 = arith.constant 9.99999997E-7 : f32
      %37 = vector.broadcast %cst_18 : f32 to vector<128x1xf32>
      %38 = arith.addf %36, %37 : vector<128x1xf32>
      %39 = math.rsqrt %38 : vector<128x1xf32>
      %40 = vector.broadcast %39 : vector<128x1xf32> to vector<128x128xf32>
      %41 = arith.mulf %31, %40 : vector<128x128xf32>
      %c0_19 = arith.constant 0 : index
      %c0_20 = arith.constant 0 : index
      %42 = vector.load %arg3[%c0_19, %c0_20] : memref<1x128xf32, #tpu.memory_space<vmem>>, vector<1x128xf32>
      %43 = vector.broadcast %42 : vector<1x128xf32> to vector<128x128xf32>
      %44 = arith.mulf %41, %43 : vector<128x128xf32>
      %c0_21 = arith.constant 0 : index
      %c0_22 = arith.constant 0 : index
      %45 = vector.load %arg4[%c0_21, %c0_22] : memref<1x128xf32, #tpu.memory_space<vmem>>, vector<1x128xf32>
      %46 = vector.broadcast %45 : vector<1x128xf32> to vector<128x128xf32>
      %47 = arith.addf %44, %46 : vector<128x128xf32>
      %48 = arith.truncf %47 : vector<128x128xf32> to vector<128x128xbf16>
      %c0_23 = arith.constant 0 : index
      %c0_24 = arith.constant 0 : index
      %49 = vector.load %arg8[%c0_23, %c0_24] : memref<128x128xbf16, #tpu.memory_space<vmem>>, vector<128x128xbf16>
      tpu.vector_store %arg8[%c0_23, %c0_24], %48 {strides = array<i32>} : memref<128x128xbf16, #tpu.memory_space<vmem>>, vector<128x128xbf16>,
    } else {
    }
    %c0 = arith.constant 0 : index
    %c0_1 = arith.constant 0 : index
    %3 = vector.load %arg8[%c0, %c0_1] : memref<128x128xbf16, #tpu.memory_space<vmem>>, vector<128x128xbf16>
    %c0_2 = arith.constant 0 : index
    %c0_3 = arith.constant 0 : index
    %4 = vector.load %arg5[%c0_2, %c0_3] : memref<128x256xbf16, #tpu.memory_space<vmem>>, vector<128x256xbf16>
    %cst = arith.constant dense<0.000000e+00> : vector<128x256xf32>
    %5 = tpu.matmul %3, %4, %cst {dimension_numbers = #tpu.dot_dimension_numbers<[1], [0], [0], [1], [0, 0, 1, 1], [], []>} : vector<128x128xbf16>, vector<128x256xbf16>, vector<128x256xf32> -> vector<128x256xf32>
    %c0_4 = arith.constant 0 : index
    %c0_5 = arith.constant 0 : index
    %6 = vector.load %arg6[%c0_4, %c0_5] : memref<1x256xf32, #tpu.memory_space<vmem>>, vector<1x256xf32>
    %7 = vector.broadcast %6 : vector<1x256xf32> to vector<128x256xf32>
    %8 = arith.addf %5, %7 : vector<128x256xf32>
    %cst_6 = arith.constant 5.000000e-01 : f32
    %9 = vector.broadcast %cst_6 : f32 to vector<128x256xf32>
    %10 = arith.mulf %9, %8 : vector<128x256xf32>
    %11 = arith.mulf %8, %8 : vector<128x256xf32>
    %12 = arith.mulf %11, %8 : vector<128x256xf32>
    %cst_7 = arith.constant 4.471500e-02 : f32
    %13 = vector.broadcast %cst_7 : f32 to vector<128x256xf32>
    %14 = arith.mulf %13, %12 : vector<128x256xf32>
    %15 = arith.addf %8, %14 : vector<128x256xf32>
    %cst_8 = arith.constant 0.797884583 : f32
    %16 = vector.broadcast %cst_8 : f32 to vector<128x256xf32>
    %17 = arith.mulf %16, %15 : vector<128x256xf32>
    %18 = math.tanh %17 : vector<128x256xf32>
    %cst_9 = arith.constant 1.000000e+00 : f32
    %19 = vector.broadcast %cst_9 : f32 to vector<128x256xf32>
    %20 = arith.addf %19, %18 : vector<128x256xf32>
    %21 = arith.mulf %10, %20 : vector<128x256xf32>
    %22 = arith.truncf %21 : vector<128x256xf32> to vector<128x256xbf16>
    %c0_10 = arith.constant 0 : index
    %c0_11 = arith.constant 0 : index
    %23 = vector.load %arg7[%c0_10, %c0_11] : memref<128x256xbf16, #tpu.memory_space<vmem>>, vector<128x256xbf16>
    tpu.vector_store %arg7[%c0_10, %c0_11], %22 {strides = array<i32>} : memref<128x256xbf16, #tpu.memory_space<vmem>>, vector<128x256xbf16>,
    return
  }
  func.func @transform_0(%arg0: i32, %arg1: i32) -> (i32, i32) {
    %c0_i32 = arith.constant 0 : i32
    %c0_i32_0 = arith.constant 0 : i32
    return %arg0, %c0_i32 : i32, i32
  }
  func.func @transform_1(%arg0: i32, %arg1: i32) -> (i32, i32) {
    %c0_i32 = arith.constant 0 : i32
    %c0_i32_0 = arith.constant 0 : i32
    %c0_i32_1 = arith.constant 0 : i32
    return %c0_i32, %c0_i32_0 : i32, i32
  }
  func.func @transform_2(%arg0: i32, %arg1: i32) -> (i32, i32) {
    %c0_i32 = arith.constant 0 : i32
    %c0_i32_0 = arith.constant 0 : i32
    %c0_i32_1 = arith.constant 0 : i32
    return %c0_i32, %c0_i32_0 : i32, i32
  }
  func.func @transform_3(%arg0: i32, %arg1: i32) -> (i32, i32) {
    %c0_i32 = arith.constant 0 : i32
    %c0_i32_0 = arith.constant 0 : i32
    return %c0_i32, %arg1 : i32, i32
  }
  func.func @transform_4(%arg0: i32, %arg1: i32) -> (i32, i32) {
    %c0_i32 = arith.constant 0 : i32
    %c0_i32_0 = arith.constant 0 : i32
    return %c0_i32, %arg1 : i32, i32
  }
  func.func @transform_5(%arg0: i32, %arg1: i32) -> (i32, i32) {
    %c0_i32 = arith.constant 0 : i32
    return %arg0, %arg1 : i32, i32
  }
}

module attributes {stable_mosaic.version = 11 : i64} {
  func.func @_matmul_kernel(%arg0: i32, %arg1: i32, %arg2: i32, %arg3: memref<128x256xbf16, #tpu.memory_space<vmem>>, %arg4: memref<256x128xbf16, #tpu.memory_space<vmem>>, %arg5: memref<1x128xf32, #tpu.memory_space<vmem>>, %arg6: memref<128x128xbf16, #tpu.memory_space<vmem>>, %arg7: memref<128x128xbf16, #tpu.memory_space<vmem>>, %arg8: memref<128x128xf32, #tpu.memory_space<vmem>>) attributes {dimension_semantics = [#tpu.dimension_semantics<parallel>, #tpu.dimension_semantics<parallel>, #tpu.dimension_semantics<arbitrary>], iteration_bounds = array<i64: 1, 1, 1>, scalar_prefetch = 0 : i64, scratch_operands = 1 : i64, tpu.core_type = #tpu.core_type<tc>, window_params = [{transform_indices = @transform_0, window_bounds = array<i64: 128, 256>}, {transform_indices = @transform_1, window_bounds = array<i64: 256, 128>}, {transform_indices = @transform_2, window_bounds = array<i64: 1, 128>}, {transform_indices = @transform_3, window_bounds = array<i64: 128, 128>}, {transform_indices = @transform_4, window_bounds = array<i64: 128, 128>}]} {
    %c0_i32 = arith.constant 0 : i32
    %0 = arith.cmpi eq, %arg2, %c0_i32 : i32
    %1 = arith.extui %0 : i1 to i32
    %c0_i32_0 = arith.constant 0 : i32
    %2 = arith.cmpi ne, %1, %c0_i32_0 : i32
    scf.if %2 {
      %cst_10 = arith.constant 0.000000e+00 : f32
      %12 = vector.broadcast %cst_10 : f32 to vector<128x128xf32>
      %c0_11 = arith.constant 0 : index
      %c0_12 = arith.constant 0 : index
      %13 = vector.load %arg8[%c0_11, %c0_12] : memref<128x128xf32, #tpu.memory_space<vmem>>, vector<128x128xf32>
      tpu.vector_store %arg8[%c0_11, %c0_12], %12 {strides = array<i32>} : memref<128x128xf32, #tpu.memory_space<vmem>>, vector<128x128xf32>,
    } else {
    }
    %c0 = arith.constant 0 : index
    %c0_1 = arith.constant 0 : index
    %3 = vector.load %arg8[%c0, %c0_1] : memref<128x128xf32, #tpu.memory_space<vmem>>, vector<128x128xf32>
    %c0_2 = arith.constant 0 : index
    %c0_3 = arith.constant 0 : index
    %4 = vector.load %arg3[%c0_2, %c0_3] : memref<128x256xbf16, #tpu.memory_space<vmem>>, vector<128x256xbf16>
    %c0_4 = arith.constant 0 : index
    %c0_5 = arith.constant 0 : index
    %5 = vector.load %arg4[%c0_4, %c0_5] : memref<256x128xbf16, #tpu.memory_space<vmem>>, vector<256x128xbf16>
    %cst = arith.constant dense<0.000000e+00> : vector<128x128xf32>
    %6 = tpu.matmul %4, %5, %cst {dimension_numbers = #tpu.dot_dimension_numbers<[1], [0], [0], [1], [0, 0, 1, 1], [], []>} : vector<128x256xbf16>, vector<256x128xbf16>, vector<128x128xf32> -> vector<128x128xf32>
    %7 = arith.addf %3, %6 : vector<128x128xf32>
    %c0_6 = arith.constant 0 : index
    %c0_7 = arith.constant 0 : index
    %8 = vector.load %arg8[%c0_6, %c0_7] : memref<128x128xf32, #tpu.memory_space<vmem>>, vector<128x128xf32>
    tpu.vector_store %arg8[%c0_6, %c0_7], %7 {strides = array<i32>} : memref<128x128xf32, #tpu.memory_space<vmem>>, vector<128x128xf32>,
    %c0_i32_8 = arith.constant 0 : i32
    %9 = arith.cmpi eq, %arg2, %c0_i32_8 : i32
    %10 = arith.extui %9 : i1 to i32
    %c0_i32_9 = arith.constant 0 : i32
    %11 = arith.cmpi ne, %10, %c0_i32_9 : i32
    scf.if %11 {
      %c0_10 = arith.constant 0 : index
      %c0_11 = arith.constant 0 : index
      %12 = vector.load %arg8[%c0_10, %c0_11] : memref<128x128xf32, #tpu.memory_space<vmem>>, vector<128x128xf32>
      %c0_12 = arith.constant 0 : index
      %c0_13 = arith.constant 0 : index
      %13 = vector.load %arg5[%c0_12, %c0_13] : memref<1x128xf32, #tpu.memory_space<vmem>>, vector<1x128xf32>
      %14 = vector.broadcast %13 : vector<1x128xf32> to vector<128x128xf32>
      %15 = arith.addf %12, %14 : vector<128x128xf32>
      %c0_14 = arith.constant 0 : index
      %c0_15 = arith.constant 0 : index
      %16 = vector.load %arg6[%c0_14, %c0_15] : memref<128x128xbf16, #tpu.memory_space<vmem>>, vector<128x128xbf16>
      %17 = arith.extf %16 : vector<128x128xbf16> to vector<128x128xf32>
      %18 = arith.addf %15, %17 : vector<128x128xf32>
      %19 = arith.truncf %18 : vector<128x128xf32> to vector<128x128xbf16>
      %c0_16 = arith.constant 0 : index
      %c0_17 = arith.constant 0 : index
      %20 = vector.load %arg7[%c0_16, %c0_17] : memref<128x128xbf16, #tpu.memory_space<vmem>>, vector<128x128xbf16>
      tpu.vector_store %arg7[%c0_16, %c0_17], %19 {strides = array<i32>} : memref<128x128xbf16, #tpu.memory_space<vmem>>, vector<128x128xbf16>,
    } else {
    }
    return
  }
  func.func @transform_0(%arg0: i32, %arg1: i32, %arg2: i32) -> (i32, i32) {
    %c0_i32 = arith.constant 0 : i32
    return %arg0, %arg2 : i32, i32
  }
  func.func @transform_1(%arg0: i32, %arg1: i32, %arg2: i32) -> (i32, i32) {
    %c0_i32 = arith.constant 0 : i32
    return %arg2, %arg1 : i32, i32
  }
  func.func @transform_2(%arg0: i32, %arg1: i32, %arg2: i32) -> (i32, i32) {
    %c0_i32 = arith.constant 0 : i32
    %c0_i32_0 = arith.constant 0 : i32
    return %c0_i32, %arg1 : i32, i32
  }
  func.func @transform_3(%arg0: i32, %arg1: i32, %arg2: i32) -> (i32, i32) {
    %c0_i32 = arith.constant 0 : i32
    return %arg0, %arg1 : i32, i32
  }
  func.func @transform_4(%arg0: i32, %arg1: i32, %arg2: i32) -> (i32, i32) {
    %c0_i32 = arith.constant 0 : i32
    return %arg0, %arg1 : i32, i32
  }
}

module attributes {stable_mosaic.version = 11 : i64} {
  func.func @_layernorm_kernel(%arg0: i32, %arg1: memref<128x128xbf16, #tpu.memory_space<vmem>>, %arg2: memref<1x128xf32, #tpu.memory_space<vmem>>, %arg3: memref<1x128xf32, #tpu.memory_space<vmem>>, %arg4: memref<128x128xf32, #tpu.memory_space<vmem>>) attributes {dimension_semantics = [#tpu.dimension_semantics<parallel>], iteration_bounds = array<i64: 1>, scalar_prefetch = 0 : i64, scratch_operands = 0 : i64, tpu.core_type = #tpu.core_type<tc>, window_params = [{transform_indices = @transform_0, window_bounds = array<i64: 128, 128>}, {pipeline_mode = #tpu.pipeline_mode<synchronous>, transform_indices = @transform_1, window_bounds = array<i64: 1, 128>}, {pipeline_mode = #tpu.pipeline_mode<synchronous>, transform_indices = @transform_2, window_bounds = array<i64: 1, 128>}, {transform_indices = @transform_3, window_bounds = array<i64: 128, 128>}]} {
    %c0 = arith.constant 0 : index
    %c0_0 = arith.constant 0 : index
    %0 = vector.load %arg1[%c0, %c0_0] : memref<128x128xbf16, #tpu.memory_space<vmem>>, vector<128x128xbf16>
    %1 = arith.extf %0 : vector<128x128xbf16> to vector<128x128xf32>
    %cst = arith.constant dense<0.000000e+00> : vector<128xf32>
    %2 = vector.multi_reduction <add>, %1, %cst [1] : vector<128x128xf32> to vector<128xf32>
    %3 = vector.shape_cast %2 : vector<128xf32> to vector<128x1xf32>
    %cst_1 = arith.constant 1.280000e+02 : f32
    %4 = vector.broadcast %cst_1 : f32 to vector<128x1xf32>
    %5 = arith.divf %3, %4 : vector<128x1xf32>
    %6 = vector.broadcast %5 : vector<128x1xf32> to vector<128x128xf32>
    %7 = arith.subf %1, %6 : vector<128x128xf32>
    %8 = arith.mulf %7, %7 : vector<128x128xf32>
    %cst_2 = arith.constant dense<0.000000e+00> : vector<128xf32>
    %9 = vector.multi_reduction <add>, %8, %cst_2 [1] : vector<128x128xf32> to vector<128xf32>
    %10 = vector.shape_cast %9 : vector<128xf32> to vector<128x1xf32>
    %cst_3 = arith.constant 1.280000e+02 : f32
    %11 = vector.broadcast %cst_3 : f32 to vector<128x1xf32>
    %12 = arith.divf %10, %11 : vector<128x1xf32>
    %cst_4 = arith.constant 9.99999997E-7 : f32
    %13 = vector.broadcast %cst_4 : f32 to vector<128x1xf32>
    %14 = arith.addf %12, %13 : vector<128x1xf32>
    %15 = math.rsqrt %14 : vector<128x1xf32>
    %16 = vector.broadcast %15 : vector<128x1xf32> to vector<128x128xf32>
    %17 = arith.mulf %7, %16 : vector<128x128xf32>
    %c0_5 = arith.constant 0 : index
    %c0_6 = arith.constant 0 : index
    %18 = vector.load %arg2[%c0_5, %c0_6] : memref<1x128xf32, #tpu.memory_space<vmem>>, vector<1x128xf32>
    %19 = vector.broadcast %18 : vector<1x128xf32> to vector<128x128xf32>
    %20 = arith.mulf %17, %19 : vector<128x128xf32>
    %c0_7 = arith.constant 0 : index
    %c0_8 = arith.constant 0 : index
    %21 = vector.load %arg3[%c0_7, %c0_8] : memref<1x128xf32, #tpu.memory_space<vmem>>, vector<1x128xf32>
    %22 = vector.broadcast %21 : vector<1x128xf32> to vector<128x128xf32>
    %23 = arith.addf %20, %22 : vector<128x128xf32>
    %c0_9 = arith.constant 0 : index
    %c0_10 = arith.constant 0 : index
    %24 = vector.load %arg4[%c0_9, %c0_10] : memref<128x128xf32, #tpu.memory_space<vmem>>, vector<128x128xf32>
    tpu.vector_store %arg4[%c0_9, %c0_10], %23 {strides = array<i32>} : memref<128x128xf32, #tpu.memory_space<vmem>>, vector<128x128xf32>,
    return
  }
  func.func @transform_0(%arg0: i32) -> (i32, i32) {
    %c0_i32 = arith.constant 0 : i32
    %c0_i32_0 = arith.constant 0 : i32
    return %arg0, %c0_i32 : i32, i32
  }
  func.func @transform_1(%arg0: i32) -> (i32, i32) {
    %c0_i32 = arith.constant 0 : i32
    %c0_i32_0 = arith.constant 0 : i32
    %c0_i32_1 = arith.constant 0 : i32
    return %c0_i32, %c0_i32_0 : i32, i32
  }
  func.func @transform_2(%arg0: i32) -> (i32, i32) {
    %c0_i32 = arith.constant 0 : i32
    %c0_i32_0 = arith.constant 0 : i32
    %c0_i32_1 = arith.constant 0 : i32
    return %c0_i32, %c0_i32_0 : i32, i32
  }
  func.func @transform_3(%arg0: i32) -> (i32, i32) {
    %c0_i32 = arith.constant 0 : i32
    %c0_i32_0 = arith.constant 0 : i32
    return %arg0, %c0_i32 : i32, i32
  }
}

</mosaic_0001>

<bundles_post_ra>
// kernel: _lambda_.10
= control target key start
LH: loop header
LB: loop body
LE: loop exit
PB: predicated region body
PF: predicated region fallthrough
CT: control target
= control target key end

     0   :  { %s954_s15 = smov 0   ;;  %s956_s16 = smov 0   ;;  %s1018_s0 = inlined_call_operand.vmem [shape: bf16[2,64,48], index: 0, kind: input, shape index: {}]   ;;  %s1019_s1 = inlined_call_operand.vmem [shape: bf16[48,128], index: 1, kind: input, shape index: {}]   ;;  %s1020_s2 = inlined_call_operand.vmem [shape: f32[1,128], index: 2, kind: input, shape index: {}]   ;;  %s1021_s3 = inlined_call_operand.vmem [shape: bf16[64,128], index: 3, kind: input, shape index: {}]   ;;  %s1022_s4 = inlined_call_operand.vmem [shape: bf16[2,64,128], index: 4, kind: output, shape index: {}]  }
   0x1   :  { %s958_s17 = smov 0  }
   0x2 LB: > { %s40_s18 = sadd.s32 1, %s923_s16  ;;  %p768_p0 = scmp.ge.s32.totalorder %s927_s17, 1  ;;  %s927_s17 = sphi %s958_s17, %s14_s17   ;;  %s923_s16 = sphi %s956_s16, %s1024_s16   ;;  %s919_s15 = sphi %s954_s15, %s1023_s15  }
   0x3   : > { %p42_p1 = scmp.ge.s32.totalorder %s40_s18, 2  ;;  %p244_p2 = scmp.lt.s32.totalorder %s927_s17, 3 }
   0x5   : > { %s1026_s18 = smov (%p42_p1, %s40_s18), 0  ;;  %p245_p3 = pnand %p768_p0, %p244_p2 }
   0x6   : > { %p304_p4 = scmp.lt.s32.totalorder (!%p245_p3), %s919_s15, 1 }
   0x7   : > { %248 = sbr.rel (%p245_p3) target bundleno = 231 (0xe7), region = 36 }
   0xc   : > { %v898_v0 = vld [vmem:[%s1019_s1 + $0x10] sm:$0xff]   ;;  %v899_v1 = vld [vmem:[%s1019_s1 + $0x8] sm:$0xff]   ;;  %s1028_s15 = smov (!%p304_p4, %s919_s15), 1  ;;  %v900_v2 = vld [vmem:[%s1019_s1] sm:$0xff]   ;;  %vm423_vm0 = vcmask 392192  }
   0xd   : > { %854 = vmatprep.subr.bf16.mxu0 %v898_v0  ;;  %868 = vmatprep.subr.bf16.mxu1 %v898_v0  ;;  %s795_s25 = sshll.u32 %s1028_s15, 5  ;;  %v784_v7 = vld [vmem:[%s1020_s2] ss:$0 sm:$0xff]  ;;  %v841_v8 = vld [vmem:[%s1021_s3 + $0x8] sm:$0xff]   ;;  %v843_v9 = vld [vmem:[%s1021_s3 + $0x18] sm:$0xff]  }
   0xe   : > { %855 = vmatpush3.bf16.msra.mxu0 %v898_v0  ;;  %871 = vmatpush3.bf16.msra.mxu1 %v898_v0  ;;  %s314_s28 = scalar_lea.vmem %s1018_s0, %s795_s25  ;;  %v806_v12 = vld [vmem:[%s1021_s3] sm:$0xff]   ;;  %v842_v13 = vld [vmem:[%s1021_s3 + $0x10] sm:$0xff]   ;;  %v811_v15 = vunpack.c.l.bf16 %v841_v8  ;;  %v819_v17 = vunpack.c.l.bf16 %v843_v9  ;;  %v812_v20 = vunpack.c.h.bf16 %v841_v8  ;;  %v820_v21 = vunpack.c.h.bf16 %v843_v9  ;;  %s348_s19 = scalar_lea.vmem %s1022_s4, %s795_s25 }
   0xf   : > { %856 = vmatprep.subr.bf16.mxu0 %v899_v1  ;;  %869 = vmatprep.subr.bf16.mxu1 %v899_v1  ;;  %v901_v3 = vld [vmem:[%s314_s28] sm:$0xff]   ;;  %v902_v4 = vld [vmem:[%s314_s28 + $0x10] sm:$0xff]   ;;  %v903_v5 = vld [vmem:[%s314_s28 + $0x8] sm:$0xff]   ;;  %v807_v23 = vunpack.c.l.bf16 %v806_v12  ;;  %v815_v25 = vunpack.c.l.bf16 %v842_v13  ;;  %v808_v30 = vunpack.c.h.bf16 %v806_v12  ;;  %v816_v31 = vunpack.c.h.bf16 %v842_v13 }
  0x10   : > { %860 = vmatprep.mubr.msk.bf16.mxu0 %vm423_vm0, %v901_v3  ;;  %864 = vmatprep.mubr.msk.bf16.mxu1 %vm423_vm0, %v902_v4  ;;  %v904_v6 = vld [vmem:[%s314_s28 + $0x18] sm:$0xff]  }
  0x12   : > { %857 = vmatpush3.bf16.msra.mxu0 %v899_v1  ;;  %872 = vmatpush3.bf16.msra.mxu1 %v899_v1 }
  0x13   : > { %858 = vmatprep.subr.bf16.mxu0 %v900_v2  ;;  %870 = vmatprep.subr.bf16.mxu1 %v900_v2 }
  0x16   : > { %859 = vmatpush3.bf16.msra.mxu0 %v900_v2  ;;  %873 = vmatpush3.bf16.msra.mxu1 %v900_v2 }
  0x19   : > { %861 = vmatmul.mubr.msk.bf16.vlgmr.msra.gmra.mxu0 %vm423_vm0, %v903_v5  ;;  %865 = vmatmul.mubr.msk.bf16.vlgmr.msra.gmra.mxu1 %vm423_vm0, %v904_v6 }
  0xd9   : > { %v862_v10 = vpop.f32.mrf.mxu0  ;;  %v866_v11 = vpop.f32.mrf.mxu1 }
  0xda   : > { %v537_v14 = vadd.f32 %v862_v10, %v784_v7  ;;  %v541_v16 = vadd.f32 %v866_v11, %v784_v7 }
  0xdb   : > { %v470_v18 = vpop.f32.mrf.mxu0  ;;  %v486_v19 = vpop.f32.mrf.mxu1 }
  0xdc   : > { %v535_v22 = vadd.f32 %v784_v7, %v470_v18  ;;  %v539_v24 = vadd.f32 %v784_v7, %v486_v19  ;;  %v561_v32 = vadd.f32 %v811_v15, %v537_v14  ;;  %v565_v33 = vadd.f32 %v819_v17, %v541_v16 }
  0xdd   : > { %v863_v26 = vpop.f32.mrf.mxu0  ;;  %v867_v27 = vpop.f32.mrf.mxu1 }
  0xde   : > { %v538_v28 = vadd.f32 %v863_v26, %v784_v7  ;;  %v542_v29 = vadd.f32 %v867_v27, %v784_v7  ;;  %v559_v40 = vadd.f32 %v807_v23, %v535_v22  ;;  %v563_v41 = vadd.f32 %v815_v25, %v539_v24 }
  0xdf   : > { %v473_v34 = vpop.f32.mrf.mxu0  ;;  %v489_v35 = vpop.f32.mrf.mxu1 }
  0xe0   : > { %v562_v36 = vadd.f32 %v812_v20, %v538_v28  ;;  %v566_v37 = vadd.f32 %v820_v21, %v542_v29  ;;  %v536_v38 = vadd.f32 %v784_v7, %v473_v34  ;;  %v540_v39 = vadd.f32 %v784_v7, %v489_v35 }
  0xe2   : > { %v829_v42 = vpack.c.bf16 %v562_v36, %v561_v32  ;;  %v839_v43 = vpack.c.bf16 %v566_v37, %v565_v33  ;;  %v560_v44 = vadd.f32 %v808_v30, %v536_v38  ;;  %v564_v45 = vadd.f32 %v816_v31, %v540_v39 }
  0xe4   : > { %844 = vst [vmem:[%s348_s19 + $0x8] sm:$0xff] %v829_v42   ;;  %846 = vst [vmem:[%s348_s19 + $0x18] sm:$0xff] %v839_v43   ;;  %v824_v46 = vpack.c.bf16 %v560_v44, %v559_v40  ;;  %v834_v47 = vpack.c.bf16 %v564_v45, %v563_v41 }
  0xe6   : > { %825 = vst [vmem:[%s348_s19] sm:$0xff] %v824_v46   ;;  %845 = vst [vmem:[%s348_s19 + $0x10] sm:$0xff] %v834_v47  }
  0xe7 PF: > { %s14_s17 = sadd.s32 1, %s927_s17   ;;  %s1023_s15 = smov %s923_s16 }
  0xe8   : > { %p11_p5 = scmp.ge.s32.totalorder %s14_s17, 4   ;;  %s1024_s16 = smov %s1026_s18 }
  0xea   :  { %13 = sbr.rel (!%p11_p5) target bundleno = 2 (0x2), region = 83 }

// kernel: _lambda_.11
= control target key start
LH: loop header
LB: loop body
LE: loop exit
PB: predicated region body
PF: predicated region fallthrough
CT: control target
= control target key end

     0   :  { %s1794_s0 = inlined_call_operand.vmem [shape: bf16[128,128], index: 0, kind: input, shape index: {}]   ;;  %s1795_s3 = inlined_call_operand.vmem [shape: bf16[128,384], index: 3, kind: input, shape index: {}]   ;;  %s1796_s1 = inlined_call_operand.vmem [shape: f32[1,128], index: 1, kind: input, shape index: {}]   ;;  %s1797_s2 = inlined_call_operand.vmem [shape: f32[1,128], index: 2, kind: input, shape index: {}]   ;;  %s1798_s4 = inlined_call_operand.vmem [shape: f32[1,384], index: 4, kind: input, shape index: {}]   ;;  %s1799_s5 = inlined_call_operand.vmem [shape: bf16[128,384], index: 5, kind: output, shape index: {}]  }
   0x1   :  { %v1138_v0 = vld [vmem:[%s1794_s0] sm:$0xff]   ;;  %v1209_v1 = vld [vmem:[%s1794_s0 + $0x8] sm:$0xff]   ;;  %v1210_v6 = vld [vmem:[%s1794_s0 + $0x10] sm:$0xff]  }
   0x2   :  { %v1139_v2 = vunpack.c.l.bf16 %v1138_v0  ;;  %v1143_v3 = vunpack.c.l.bf16 %v1209_v1  ;;  %v1140_v4 = vunpack.c.h.bf16 %v1138_v0  ;;  %v1144_v5 = vunpack.c.h.bf16 %v1209_v1  ;;  %v1211_v9 = vld [vmem:[%s1794_s0 + $0x18] sm:$0xff]   ;;  %v1390_v12 = vld [vmem:[%s1794_s0 + $0x20] sm:$0xff]   ;;  %v1397_v15 = vld [vmem:[%s1794_s0 + $0x28] sm:$0xff]  }
   0x3   :  { %v1147_v7 = vunpack.c.l.bf16 %v1210_v6  ;;  %v1148_v8 = vunpack.c.h.bf16 %v1210_v6  ;;  %v1151_v10 = vunpack.c.l.bf16 %v1211_v9  ;;  %v1152_v11 = vunpack.c.h.bf16 %v1211_v9  ;;  %v1404_v18 = vld [vmem:[%s1794_s0 + $0x30] sm:$0xff]   ;;  %v1415_v21 = vld [vmem:[%s1794_s0 + $0x38] sm:$0xff]  }
   0x4   :  { %57 = vadd.xlane.f32.xlu0 %v1139_v2  ;;  %61 = vadd.xlane.f32.xlu1 %v1143_v3  ;;  %v1155_v13 = vunpack.c.l.bf16 %v1390_v12  ;;  %v1156_v14 = vunpack.c.h.bf16 %v1390_v12  ;;  %v1159_v16 = vunpack.c.l.bf16 %v1397_v15  ;;  %v1160_v17 = vunpack.c.h.bf16 %v1397_v15  ;;  %v1272_v6 = vld [vmem:[%s1795_s3 + $0xac] ss:$12 sps:$4 sm:$0xff]   ;;  %v1274_v9 = vld [vmem:[%s1795_s3 + $0xa8] ss:$12 sps:$4 sm:$0xff]  }
   0x5   :  { %v1163_v19 = vunpack.c.l.bf16 %v1404_v18  ;;  %v1164_v20 = vunpack.c.h.bf16 %v1404_v18  ;;  %v1167_v22 = vunpack.c.l.bf16 %v1415_v21  ;;  %v1168_v23 = vunpack.c.h.bf16 %v1415_v21  ;;  %601 = vmatprep.subr.bf16.mxu0 %v1272_v6 }
   0x6   :  { %602 = vmatpush1.bf16.msra.mxu0 %v1274_v9 }
   0x8   :  { %59 = vadd.xlane.f32.xlu0 %v1140_v4  ;;  %63 = vadd.xlane.f32.xlu1 %v1144_v5 }
   0xc   :  { %65 = vadd.xlane.f32.xlu0 %v1147_v7  ;;  %67 = vadd.xlane.f32.xlu1 %v1148_v8 }
  0x10   :  { %69 = vadd.xlane.f32.xlu0 %v1151_v10  ;;  %71 = vadd.xlane.f32.xlu1 %v1152_v11 }
  0x14   :  { %73 = vadd.xlane.f32.xlu0 %v1155_v13  ;;  %75 = vadd.xlane.f32.xlu1 %v1156_v14 }
  0x18   :  { %77 = vadd.xlane.f32.xlu0 %v1159_v16  ;;  %79 = vadd.xlane.f32.xlu1 %v1160_v17 }
  0x1c   :  { %81 = vadd.xlane.f32.xlu0 %v1163_v19  ;;  %83 = vadd.xlane.f32.xlu1 %v1164_v20 }
  0x20   :  { %85 = vadd.xlane.f32.xlu0 %v1167_v22  ;;  %87 = vadd.xlane.f32.xlu1 %v1168_v23 }
  0x8d   :  { %v58_v24 = vpop.xlane.xlu0 %57  ;;  %v62_v25 = vpop.xlane.xlu1 %61 }
  0x8e   :  { %v90_v26 = vmul.f32 0.0078125, %v58_v24  ;;  %v92_v27 = vmul.f32 0.0078125, %v62_v25  ;;  %v1278_v25 = vld [vmem:[%s1795_s3 + $0x90] ss:$12 sps:$4 sm:$0xff]  }
  0x90   :  { %v1427_v28 = vsub.f32 %v1139_v2, %v90_v26  ;;  %v1429_v29 = vsub.f32 %v1143_v3, %v92_v27 }
  0x91   :  { %v60_v30 = vpop.xlane.xlu0 %59  ;;  %v64_v31 = vpop.xlane.xlu1 %63 }
  0x92   :  { %v91_v32 = vmul.f32 0.0078125, %v60_v30  ;;  %v122_v33 = vmul.f32 %v1427_v28, %v1427_v28  ;;  %v93_v34 = vmul.f32 0.0078125, %v64_v31  ;;  %v124_v37 = vmul.f32 %v1429_v29, %v1429_v29 }
  0x94   :  { %v1433_v35 = vsub.f32 %v1140_v4, %v91_v32  ;;  %138 = vadd.xlane.f32.xlu0 %v122_v33  ;;  %v1435_v36 = vsub.f32 %v1144_v5, %v93_v34  ;;  %v1279_v32 = vld [vmem:[%s1795_s3 + $0x7c] ss:$12 sps:$4 sm:$0xff]   ;;  %v1281_v33 = vld [vmem:[%s1795_s3 + $0x98] ss:$12 sps:$4 sm:$0xff]  }
  0x95   :  { %v66_v38 = vpop.xlane.xlu0 %65  ;;  %v68_v39 = vpop.xlane.xlu1 %67  ;;  %v1283_v34 = vld [vmem:[%s1795_s3 + $0x64] ss:$12 sps:$4 sm:$0xff]  }
  0x96   :  { %v94_v40 = vmul.f32 0.0078125, %v66_v38  ;;  %v123_v41 = vmul.f32 %v1433_v35, %v1433_v35  ;;  %v95_v42 = vmul.f32 0.0078125, %v68_v39  ;;  %v125_v45 = vmul.f32 %v1435_v36, %v1435_v36  ;;  %v1286_v38 = vld [vmem:[%s1795_s3 + $0x60] ss:$12 sps:$4 sm:$0xff]  }
  0x97   :  { %v1287_v39 = vld [vmem:[%s1795_s3 + $0x4c] ss:$12 sps:$4 sm:$0xff]  }
  0x98   :  { %v1441_v43 = vsub.f32 %v1147_v7, %v94_v40  ;;  %142 = vadd.xlane.f32.xlu0 %v124_v37  ;;  %140 = vadd.xlane.f32.xlu1 %v123_v41  ;;  %v1443_v44 = vsub.f32 %v1148_v8, %v95_v42  ;;  %v1285_v37 = vld [vmem:[%s1795_s3 + $0x80] ss:$12 sps:$4 sm:$0xff]   ;;  %v1289_v40 = vld [vmem:[%s1795_s3 + $0x68] ss:$12 sps:$4 sm:$0xff]  }
  0x99   :  { %v70_v46 = vpop.xlane.xlu0 %69  ;;  %v72_v47 = vpop.xlane.xlu1 %71  ;;  %v1290_v41 = vld [vmem:[%s1795_s3 + $0x48] ss:$12 sps:$4 sm:$0xff]  }
  0x9a   :  { %v96_v48 = vmul.f32 0.0078125, %v70_v46  ;;  %v126_v49 = vmul.f32 %v1441_v43, %v1441_v43  ;;  %v97_v50 = vmul.f32 0.0078125, %v72_v47  ;;  %v127_v53 = vmul.f32 %v1443_v44, %v1443_v44  ;;  %v1291_v42 = vld [vmem:[%s1795_s3 + $0x34] ss:$12 sps:$4 sm:$0xff]   ;;  %v1294_v46 = vld [vmem:[%s1795_s3 + $0x30] ss:$12 sps:$4 sm:$0xff]  }
  0x9b   :  { %v1295_v47 = vld [vmem:[%s1795_s3 + $0x1c] ss:$12 sps:$4 sm:$0xff]  }
  0x9c   :  { %v1449_v51 = vsub.f32 %v1151_v10, %v96_v48  ;;  %144 = vadd.xlane.f32.xlu1 %v125_v45  ;;  %146 = vadd.xlane.f32.xlu0 %v126_v49  ;;  %v1451_v52 = vsub.f32 %v1152_v11, %v97_v50  ;;  %v1293_v45 = vld [vmem:[%s1795_s3 + $0x50] ss:$12 sps:$4 sm:$0xff]   ;;  %v1297_v48 = vld [vmem:[%s1795_s3 + $0x38] ss:$12 sps:$4 sm:$0xff]  }
  0x9d   :  { %v74_v54 = vpop.xlane.xlu0 %73  ;;  %v76_v55 = vpop.xlane.xlu1 %75  ;;  %v1298_v49 = vld [vmem:[%s1795_s3 + $0x18] ss:$12 sps:$4 sm:$0xff]  }
  0x9e   :  { %v98_v56 = vmul.f32 0.0078125, %v74_v54  ;;  %v128_v57 = vmul.f32 %v1449_v51, %v1449_v51  ;;  %v99_v58 = vmul.f32 0.0078125, %v76_v55  ;;  %v129_v61 = vmul.f32 %v1451_v52, %v1451_v52  ;;  %v1299_v50 = vld [vmem:[%s1795_s3 + $0x4] ss:$12 sps:$4 sm:$0xff]   ;;  %v1302_v54 = vld [vmem:[%s1795_s3] ss:$12 sps:$4 sm:$0xff]  }
  0x9f   :  { %v1304_v55 = vld [vmem:[%s1795_s3 + $0x8] ss:$12 sps:$4 sm:$0xff]  }
  0xa0   :  { %v1457_v59 = vsub.f32 %v1155_v13, %v98_v56  ;;  %148 = vadd.xlane.f32.xlu1 %v127_v53  ;;  %150 = vadd.xlane.f32.xlu0 %v128_v57  ;;  %v1459_v60 = vsub.f32 %v1156_v14, %v99_v58  ;;  %v1301_v53 = vld [vmem:[%s1795_s3 + $0x20] ss:$12 sps:$4 sm:$0xff]   ;;  %v1344_v56 = vmov 0  }
  0xa1   :  { %v78_v62 = vpop.xlane.xlu0 %77  ;;  %v80_v63 = vpop.xlane.xlu1 %79  ;;  %633 = vmatprep.mubr.bf16.mxu0 %v1344_v56 }
  0xa2   :  { %v100_v0 = vmul.f32 0.0078125, %v78_v62  ;;  %v130_v1 = vmul.f32 %v1457_v59, %v1457_v59  ;;  %v101_v2 = vmul.f32 0.0078125, %v80_v63  ;;  %v131_v5 = vmul.f32 %v1459_v60, %v1459_v60 }
  0xa4   :  { %v1467_v3 = vsub.f32 %v1159_v16, %v100_v0  ;;  %152 = vadd.xlane.f32.xlu1 %v129_v61  ;;  %154 = vadd.xlane.f32.xlu0 %v130_v1  ;;  %v1471_v4 = vsub.f32 %v1160_v17, %v101_v2  ;;  %v1275_v16 = vld [vmem:[%s1795_s3 + $0x94] ss:$12 sps:$4 sm:$0xff]   ;;  %v1277_v17 = vld [vmem:[%s1795_s3 + $0xb0] ss:$12 sps:$4 sm:$0xff]  }
  0xa5   :  { %v82_v7 = vpop.xlane.xlu0 %81  ;;  %v84_v8 = vpop.xlane.xlu1 %83  ;;  %603 = vmatprep.subr.bf16.mxu0 %v1275_v16  ;;  %1239 = vmatprep.subr.bf16.mxu1 %v1277_v17 }
  0xa6   :  { %v102_v10 = vmul.f32 0.0078125, %v82_v7  ;;  %v132_v11 = vmul.f32 %v1467_v3, %v1467_v3  ;;  %v103_v12 = vmul.f32 0.0078125, %v84_v8  ;;  %v133_v15 = vmul.f32 %v1471_v4, %v1471_v4  ;;  %604 = vmatpush1.bf16.msra.mxu0 %v1278_v25  ;;  %1240 = vmatpush3.bf16.msra.mxu1 %v1277_v17 }
  0xa7   :  { %605 = vmatprep.subr.bf16.mxu0 %v1279_v32  ;;  %1241 = vmatprep.subr.bf16.mxu1 %v1281_v33  ;;  %v1579_v32 = vld [vmem:[%s1796_s1] ss:$0 sm:$0xff] }
  0xa8   :  { %v1485_v13 = vsub.f32 %v1163_v19, %v102_v10  ;;  %156 = vadd.xlane.f32.xlu1 %v131_v5  ;;  %158 = vadd.xlane.f32.xlu0 %v132_v11  ;;  %v1489_v14 = vsub.f32 %v1164_v20, %v103_v12 }
  0xa9   :  { %v86_v24 = vpop.xlane.xlu0 %85  ;;  %v88_v19 = vpop.xlane.xlu1 %87 }
  0xaa   :  { %v104_v18 = vmul.f32 0.0078125, %v86_v24  ;;  %v134_v20 = vmul.f32 %v1485_v13, %v1485_v13  ;;  %v105_v26 = vmul.f32 0.0078125, %v88_v19  ;;  %v135_v31 = vmul.f32 %v1489_v14, %v1489_v14  ;;  %1242 = vmatpush3.bf16.msra.mxu1 %v1281_v33 }
  0xab   :  { %1243 = vmatprep.subr.bf16.mxu1 %v1285_v37 }
  0xac   :  { %v1506_v27 = vsub.f32 %v1167_v22, %v104_v18  ;;  %160 = vadd.xlane.f32.xlu1 %v133_v15  ;;  %162 = vadd.xlane.f32.xlu0 %v134_v20  ;;  %v1510_v30 = vsub.f32 %v1168_v23, %v105_v26  ;;  %v1282_v22 = vld [vmem:[%s1795_s3 + $0x78] ss:$12 sps:$4 sm:$0xff]  }
  0xad   :  { %606 = vmatpush1.bf16.msra.mxu0 %v1282_v22 }
  0xae   :  { %v136_v21 = vmul.f32 %v1506_v27, %v1506_v27  ;;  %v137_v23 = vmul.f32 %v1510_v30, %v1510_v30  ;;  %607 = vmatprep.subr.bf16.mxu0 %v1283_v34  ;;  %1244 = vmatpush3.bf16.msra.mxu1 %v1285_v37 }
  0xaf   :  { %1245 = vmatprep.subr.bf16.mxu1 %v1289_v40 }
  0xb0   :  { %164 = vadd.xlane.f32.xlu1 %v135_v31  ;;  %166 = vadd.xlane.f32.xlu0 %v136_v21 }
  0xb1   :  { %608 = vmatpush1.bf16.msra.mxu0 %v1286_v38 }
  0xb2   :  { %609 = vmatprep.subr.bf16.mxu0 %v1287_v39  ;;  %1246 = vmatpush3.bf16.msra.mxu1 %v1289_v40 }
  0xb3   :  { %1247 = vmatprep.subr.bf16.mxu1 %v1293_v45 }
  0xb4   :  { %168 = vadd.xlane.f32.xlu1 %v137_v23 }
  0xb5   :  { %610 = vmatpush1.bf16.msra.mxu0 %v1290_v41 }
  0xb6   :  { %611 = vmatprep.subr.bf16.mxu0 %v1291_v42  ;;  %1248 = vmatpush3.bf16.msra.mxu1 %v1293_v45  ;;  %v1586_v42 = vld [vmem:[%s1797_s2] ss:$0 sm:$0xff] }
  0xb7   :  { %1249 = vmatprep.subr.bf16.mxu1 %v1297_v48 }
  0xb9   :  { %612 = vmatpush1.bf16.msra.mxu0 %v1294_v46 }
  0xba   :  { %613 = vmatprep.subr.bf16.mxu0 %v1295_v47  ;;  %1250 = vmatpush3.bf16.msra.mxu1 %v1297_v48 }
  0xbb   :  { %1251 = vmatprep.subr.bf16.mxu1 %v1301_v53 }
  0xbd   :  { %614 = vmatpush1.bf16.msra.mxu0 %v1298_v49 }
  0xbe   :  { %615 = vmatprep.subr.bf16.mxu0 %v1299_v50  ;;  %1252 = vmatpush3.bf16.msra.mxu1 %v1301_v53 }
  0xbf   :  { %1253 = vmatprep.subr.bf16.mxu1 %v1304_v55 }
  0xc1   :  { %616 = vmatpush1.bf16.msra.mxu0 %v1302_v54 }
  0xc2   :  { %1254 = vmatpush3.bf16.msra.mxu1 %v1304_v55 }
 0x11d   :  { %v139_v57 = vpop.xlane.xlu0 %138 }
 0x11e   :  { %v170_v58 = vmul.f32 0.0078125, %v139_v57 }
 0x120   :  { %v186_v61 = vadd.f32 1e-06, %v170_v58 }
 0x121   :  { %v141_v62 = vpop.xlane.xlu1 %140  ;;  %v143_v63 = vpop.xlane.xlu0 %142 }
 0x122   :  { %1312 = vrsqrt.f32 %v186_v61  ;;  %v171_v0 = vmul.f32 0.0078125, %v141_v62  ;;  %v172_v1 = vmul.f32 0.0078125, %v143_v63 }
 0x124   :  { %v187_v2 = vadd.f32 1e-06, %v171_v0  ;;  %v188_v5 = vadd.f32 1e-06, %v172_v1 }
 0x125   :  { %v145_v6 = vpop.xlane.xlu1 %144  ;;  %v147_v7 = vpop.xlane.xlu0 %146 }
 0x126   :  { %1314 = vrsqrt.f32 %v187_v2  ;;  %v173_v8 = vmul.f32 0.0078125, %v145_v6  ;;  %v174_v9 = vmul.f32 0.0078125, %v147_v7 }
 0x127   :  { %1316 = vrsqrt.f32 %v188_v5 }
 0x128   :  { %v189_v10 = vadd.f32 1e-06, %v173_v8  ;;  %v190_v11 = vadd.f32 1e-06, %v174_v9 }
 0x129   :  { %v149_v12 = vpop.xlane.xlu1 %148  ;;  %v151_v15 = vpop.xlane.xlu0 %150 }
 0x12a   :  { %1318 = vrsqrt.f32 %v189_v10  ;;  %v175_v16 = vmul.f32 0.0078125, %v149_v12  ;;  %v176_v17 = vmul.f32 0.0078125, %v151_v15 }
 0x12b   :  { %1320 = vrsqrt.f32 %v190_v11 }
 0x12c   :  { %v191_v24 = vadd.f32 1e-06, %v175_v16  ;;  %v192_v19 = vadd.f32 1e-06, %v176_v17 }
 0x12d   :  { %v153_v25 = vpop.xlane.xlu1 %152  ;;  %v155_v18 = vpop.xlane.xlu0 %154 }
 0x12e   :  { %1322 = vrsqrt.f32 %v191_v24  ;;  %v177_v20 = vmul.f32 0.0078125, %v153_v25  ;;  %v178_v26 = vmul.f32 0.0078125, %v155_v18 }
 0x12f   :  { %v1313_v31 = vpop.eup %1312  ;;  %1324 = vrsqrt.f32 %v192_v19 }
 0x130   :  { %v218_v33 = vmul.f32 %v1313_v31, %v1427_v28  ;;  %v193_v22 = vadd.f32 1e-06, %v177_v20  ;;  %v194_v21 = vadd.f32 1e-06, %v178_v26 }
 0x131   :  { %v157_v23 = vpop.xlane.xlu1 %156  ;;  %v159_v34 = vpop.xlane.xlu0 %158 }
 0x132   :  { %1326 = vrsqrt.f32 %v193_v22  ;;  %v179_v37 = vmul.f32 0.0078125, %v157_v23  ;;  %v180_v38 = vmul.f32 0.0078125, %v159_v34  ;;  %v241_v40 = vmul.f32 %v1579_v32, %v218_v33 }
 0x133   :  { %v1315_v39 = vpop.eup %1314  ;;  %1328 = vrsqrt.f32 %v194_v21 }
 0x134   :  { %v1317_v41 = vpop.eup %1316  ;;  %v219_v45 = vmul.f32 %v1315_v39, %v1433_v35  ;;  %v195_v28 = vadd.f32 1e-06, %v179_v37  ;;  %v196_v46 = vadd.f32 1e-06, %v180_v38  ;;  %v264_v57 = vadd.f32 %v1586_v42, %v241_v40 }
 0x135   :  { %v220_v47 = vmul.f32 %v1317_v41, %v1429_v29  ;;  %v161_v48 = vpop.xlane.xlu1 %160  ;;  %v163_v49 = vpop.xlane.xlu0 %162 }
 0x136   :  { %v242_v50 = vmul.f32 %v1579_v32, %v219_v45  ;;  %1330 = vrsqrt.f32 %v195_v28  ;;  %v181_v53 = vmul.f32 0.0078125, %v161_v48  ;;  %v182_v54 = vmul.f32 0.0078125, %v163_v49 }
 0x137   :  { %v1319_v55 = vpop.eup %1318  ;;  %v243_v58 = vmul.f32 %v1579_v32, %v220_v47  ;;  %1332 = vrsqrt.f32 %v196_v46 }
 0x138   :  { %v1321_v61 = vpop.eup %1320  ;;  %v265_v35 = vadd.f32 %v1586_v42, %v242_v50  ;;  %v221_v62 = vmul.f32 %v1319_v55, %v1435_v36  ;;  %v197_v63 = vadd.f32 1e-06, %v181_v53  ;;  %v198_v29 = vadd.f32 1e-06, %v182_v54 }
 0x139   :  { %v222_v0 = vmul.f32 %v1321_v61, %v1441_v43  ;;  %v165_v1 = vpop.xlane.xlu1 %164  ;;  %v167_v2 = vpop.xlane.xlu0 %166  ;;  %v266_v36 = vadd.f32 %v1586_v42, %v243_v58 }
 0x13a   :  { %v1172_v5 = vpack.c.bf16 %v265_v35, %v264_v57  ;;  %v244_v6 = vmul.f32 %v1579_v32, %v221_v62  ;;  %1334 = vrsqrt.f32 %v197_v63  ;;  %v183_v7 = vmul.f32 0.0078125, %v165_v1 }
 0x13b   :  { %v1323_v8 = vpop.eup %1322  ;;  %v245_v9 = vmul.f32 %v1579_v32, %v222_v0  ;;  %1336 = vrsqrt.f32 %v198_v29  ;;  %v184_v10 = vmul.f32 0.0078125, %v167_v2 }
 0x13c   :  { %v1325_v11 = vpop.eup %1324  ;;  %1173 = vst [vmem:[#allocation2] sm:$0xff] %v1172_v5   ;;  %v267_v12 = vadd.f32 %v1586_v42, %v244_v6  ;;  %v223_v43 = vmul.f32 %v1323_v8, %v1443_v44  ;;  %v199_v15 = vadd.f32 1e-06, %v183_v7 }
 0x13d   :  { %v224_v16 = vmul.f32 %v1325_v11, %v1449_v51  ;;  %v200_v17 = vadd.f32 1e-06, %v184_v10  ;;  %v169_v24 = vpop.xlane.xlu1 %168  ;;  %v268_v26 = vadd.f32 %v1586_v42, %v245_v9 }
 0x13e   :  { %v1177_v19 = vpack.c.bf16 %v267_v12, %v266_v36  ;;  %v246_v25 = vmul.f32 %v1579_v32, %v223_v43  ;;  %1338 = vrsqrt.f32 %v199_v15  ;;  %v185_v18 = vmul.f32 0.0078125, %v169_v24  ;;  %v408_v24 = vld [vmem:[%s1798_s4] sm:$0x7] }
 0x13f   :  { %v1327_v20 = vpop.eup %1326  ;;  %1340 = vrsqrt.f32 %v200_v17  ;;  %v247_v44 = vmul.f32 %v1579_v32, %v224_v16 }
 0x140   :  { %v1329_v31 = vpop.eup %1328  ;;  %1216 = vst [vmem:[#allocation2 + $0x8] sm:$0xff] %v1177_v19   ;;  %v269_v33 = vadd.f32 %v1586_v42, %v246_v25  ;;  %v225_v22 = vmul.f32 %v1327_v20, %v1451_v52  ;;  %v201_v51 = vadd.f32 1e-06, %v185_v18 }
 0x141   :  { %v226_v21 = vmul.f32 %v1329_v31, %v1457_v59  ;;  %v270_v40 = vadd.f32 %v1586_v42, %v247_v44 }
 0x142   :  { %v1182_v23 = vpack.c.bf16 %v269_v33, %v268_v26  ;;  %v248_v34 = vmul.f32 %v1579_v32, %v225_v22  ;;  %1342 = vrsqrt.f32 %v201_v51 }
 0x143   :  { %v1331_v37 = vpop.eup %1330  ;;  %v1303_v38 = vld [vmem:[#allocation2] sm:$0xff]   ;;  %v249_v45 = vmul.f32 %v1579_v32, %v226_v21 }
 0x144   :  { %v1333_v39 = vpop.eup %1332  ;;  %1217 = vst [vmem:[#allocation2 + $0x10] sm:$0xff] %v1182_v23   ;;  %v271_v41 = vadd.f32 %v1586_v42, %v248_v34  ;;  %v227_v28 = vmul.f32 %v1331_v37, %v1459_v60  ;;  %634 = vmatmul.mubr.bf16.vlgmr.msra.gmra.mxu0 %v1303_v38  ;;  %1255 = vmatprep.mubr.bf16.mxu1 %v1303_v38 }
 0x145   :  { %v228_v52 = vmul.f32 %v1333_v39, %v1467_v3  ;;  %643 = vmatprep.mubr.bf16.mxu0 %v1344_v56  ;;  %v272_v50 = vadd.f32 %v1586_v42, %v249_v45 }
 0x146   :  { %v1187_v59 = vpack.c.bf16 %v271_v41, %v270_v40  ;;  %v250_v46 = vmul.f32 %v1579_v32, %v227_v28 }
 0x147   :  { %v1335_v47 = vpop.eup %1334  ;;  %v1305_v48 = vld [vmem:[#allocation2 + $0x8] sm:$0xff]   ;;  %v251_v54 = vmul.f32 %v1579_v32, %v228_v52 }
 0x148   :  { %v1337_v49 = vpop.eup %1336  ;;  %1218 = vst [vmem:[#allocation2 + $0x18] sm:$0xff] %v1187_v59   ;;  %v273_v53 = vadd.f32 %v1586_v42, %v250_v46  ;;  %v229_v60 = vmul.f32 %v1335_v47, %v1471_v4  ;;  %1256 = vmatmul.mubr.bf16.vlgmr.msra.gmra.mxu1 %v1305_v48 }
 0x149   :  { %v230_v3 = vmul.f32 %v1337_v49, %v1485_v13  ;;  %v274_v62 = vadd.f32 %v1586_v42, %v251_v54 }
 0x14a   :  { %v1192_v55 = vpack.c.bf16 %v273_v53, %v272_v50  ;;  %v252_v57 = vmul.f32 %v1579_v32, %v229_v60 }
 0x14b   :  { %v1339_v58 = vpop.eup %1338  ;;  %v1306_v61 = vld [vmem:[#allocation2 + $0x10] sm:$0xff]   ;;  %v253_v29 = vmul.f32 %v1579_v32, %v230_v3 }
 0x14c   :  { %v1341_v35 = vpop.eup %1340  ;;  %1219 = vst [vmem:[#allocation2 + $0x20] sm:$0xff] %v1192_v55   ;;  %v275_v63 = vadd.f32 %v1586_v42, %v252_v57  ;;  %v231_v0 = vmul.f32 %v1339_v58, %v1489_v14  ;;  %644 = vmatmul.mubr.bf16.gmra.mxu0 %v1305_v48  ;;  %1259 = vmatprep.mubr.bf16.mxu1 %v1306_v61 }
 0x14d   :  { %v232_v4 = vmul.f32 %v1341_v35, %v1506_v27  ;;  %653 = vmatprep.mubr.bf16.mxu0 %v1344_v56  ;;  %v276_v6 = vadd.f32 %v1586_v42, %v253_v29 }
 0x14e   :  { %v1197_v13 = vpack.c.bf16 %v275_v63, %v274_v62  ;;  %v254_v1 = vmul.f32 %v1579_v32, %v231_v0 }
 0x14f   :  { %v1343_v2 = vpop.eup %1342  ;;  %v1307_v5 = vld [vmem:[#allocation2 + $0x18] sm:$0xff]   ;;  %v255_v8 = vmul.f32 %v1579_v32, %v232_v4 }
 0x150   :  { %1220 = vst [vmem:[#allocation2 + $0x28] sm:$0xff] %v1197_v13   ;;  %v277_v7 = vadd.f32 %v1586_v42, %v254_v1  ;;  %v233_v14 = vmul.f32 %v1343_v2, %v1510_v30  ;;  %1260 = vmatmul.mubr.bf16.gmra.mxu1 %v1307_v5 }
 0x151   :  { %v278_v11 = vadd.f32 %v1586_v42, %v255_v8 }
 0x152   :  { %v1202_v27 = vpack.c.bf16 %v277_v7, %v276_v6  ;;  %v256_v9 = vmul.f32 %v1579_v32, %v233_v14  ;;  %v410_v32 = vlaneseq }
 0x153   :  { %v1308_v10 = vld [vmem:[#allocation2 + $0x20] sm:$0xff]  }
 0x154   :  { %1221 = vst [vmem:[#allocation2 + $0x30] sm:$0xff] %v1202_v27   ;;  %v279_v36 = vadd.f32 %v1586_v42, %v256_v9  ;;  %654 = vmatmul.mubr.bf16.gmra.mxu0 %v1306_v61  ;;  %1263 = vmatprep.mubr.bf16.mxu1 %v1308_v10  ;;  %v411_v42 = vshrl.u32 %v410_v32, 7 }
 0x155   :  { %663 = vmatprep.mubr.bf16.mxu0 %v1344_v56 }
 0x156   :  { %v1207_v12 = vpack.c.bf16 %v279_v36, %v278_v11  ;;  %v412_v16 = vsub.s32 0, %v411_v42  ;;  %v416_v17 = vsub.s32 1, %v411_v42  ;;  %v420_v19 = vsub.s32 2, %v411_v42 }
 0x157   :  { %v1309_v43 = vld [vmem:[#allocation2 + $0x28] sm:$0xff]  }
 0x158   :  { %1222 = vst [vmem:[#allocation2 + $0x38] sm:$0xff] %v1207_v12   ;;  %1264 = vmatmul.mubr.bf16.gmra.mxu1 %v1309_v43  ;;  %v1644_v25 = vrot.slane %v408_v24, %v412_v16  ;;  %v1646_v18 = vrot.slane %v408_v24, %v416_v17  ;;  %v1648_v26 = vrot.slane %v408_v24, %v420_v19 }
 0x15b   :  { %v1310_v15 = vld [vmem:[#allocation2 + $0x30] sm:$0xff]  }
 0x15c   :  { %664 = vmatmul.mubr.bf16.gmra.mxu0 %v1307_v5  ;;  %1267 = vmatprep.mubr.bf16.mxu1 %v1310_v15 }
 0x15d   :  { %673 = vmatprep.mubr.bf16.mxu0 %v1344_v56 }
 0x15f   :  { %v1311_v30 = vld [vmem:[#allocation2 + $0x38] sm:$0xff]  }
 0x160   :  { %1268 = vmatmul.mubr.bf16.gmra.mxu1 %v1311_v30 }
 0x164   :  { %674 = vmatmul.mubr.bf16.gmra.mxu0 %v1308_v10 }
 0x165   :  { %683 = vmatprep.mubr.bf16.mxu0 %v1344_v56 }
 0x16c   :  { %684 = vmatmul.mubr.bf16.gmra.mxu0 %v1309_v43 }
 0x16d   :  { %693 = vmatprep.mubr.bf16.mxu0 %v1344_v56 }
 0x174   :  { %694 = vmatmul.mubr.bf16.gmra.mxu0 %v1310_v15 }
 0x175   :  { %703 = vmatprep.mubr.bf16.mxu0 %v1344_v56 }
 0x17c   :  { %704 = vmatmul.mubr.bf16.gmra.mxu0 %v1311_v30 }
 0x204   :  { %v635_v20 = vpop.f32.mrf.mxu0 }
 0x205   :  { %v636_v56 = vadd.f32 %v635_v20, %v1644_v25 }
 0x206   :  { %v637_v31 = vpop.f32.mrf.mxu0 }
 0x207   :  { %v638_v33 = vadd.f32 %v637_v31, %v1646_v18 }
 0x208   :  { %v639_v44 = vpop.f32.mrf.mxu0  ;;  %v1257_v22 = vpop.f32.mrf.mxu1 }
 0x209   :  { %v1105_v51 = vpack.c.bf16 %v638_v33, %v636_v56  ;;  %v757_v21 = vadd.f32 %v1257_v22, %v1648_v26  ;;  %v640_v37 = vadd.f32 %v639_v44, %v1644_v25 }
 0x20a   :  { %v641_v23 = vpop.f32.mrf.mxu0  ;;  %v748_v34 = vpop.f32.mrf.mxu1 }
 0x20b   :  { %971 = vst [vmem:[%s1799_s5] sm:$0xff] %v1105_v51  ;;  %v1110_v38 = vpack.c.bf16 %v757_v21, %v757_v21  ;;  %v642_v39 = vadd.f32 %v641_v23, %v1646_v18  ;;  %v749_v40 = vadd.f32 %v748_v34, %v1648_v26 }
 0x20c   :  { %v645_v41 = vpop.f32.mrf.mxu0  ;;  %v1258_v45 = vpop.f32.mrf.mxu1 }
 0x20d   :  { %976 = vst [vmem:[%s1799_s5 + $0x20] sm:$0xf] %v1110_v38  ;;  %v1107_v28 = vpack.c.bf16 %v642_v39, %v640_v37  ;;  %v1106_v52 = vpack.c.bf16 %v749_v40, %v749_v40  ;;  %v760_v59 = vadd.f32 %v1258_v45, %v1648_v26  ;;  %v646_v48 = vadd.f32 %v645_v41, %v1644_v25 }
 0x20e   :  { %v647_v46 = vpop.f32.mrf.mxu0  ;;  %v751_v47 = vpop.f32.mrf.mxu1 }
 0x20f   :  { %973 = vst [vmem:[%s1799_s5 + $0xc] sm:$0xff] %v1107_v28  ;;  %972 = vst [vmem:[%s1799_s5 + $0x8] sm:$0xf] %v1106_v52  ;;  %v1112_v49 = vpack.c.bf16 %v760_v59, %v760_v59  ;;  %v648_v50 = vadd.f32 %v647_v46, %v1646_v18  ;;  %v752_v53 = vadd.f32 %v751_v47, %v1648_v26 }
 0x210   :  { %v649_v54 = vpop.f32.mrf.mxu0  ;;  %v1261_v60 = vpop.f32.mrf.mxu1 }
 0x211   :  { %978 = vst [vmem:[%s1799_s5 + $0x2c] sm:$0xf] %v1112_v49  ;;  %v1109_v3 = vpack.c.bf16 %v648_v50, %v646_v48  ;;  %v1108_v55 = vpack.c.bf16 %v752_v53, %v752_v53  ;;  %v773_v57 = vadd.f32 %v1261_v60, %v1648_v26  ;;  %v650_v35 = vadd.f32 %v649_v54, %v1644_v25 }
 0x212   :  { %v651_v58 = vpop.f32.mrf.mxu0  ;;  %v764_v61 = vpop.f32.mrf.mxu1 }
 0x213   :  { %975 = vst [vmem:[%s1799_s5 + $0x18] sm:$0xff] %v1109_v3  ;;  %974 = vst [vmem:[%s1799_s5 + $0x14] sm:$0xf] %v1108_v55  ;;  %v1118_v62 = vpack.c.bf16 %v773_v57, %v773_v57  ;;  %v652_v63 = vadd.f32 %v651_v58, %v1646_v18  ;;  %v765_v29 = vadd.f32 %v764_v61, %v1648_v26 }
 0x214   :  { %v655_v0 = vpop.f32.mrf.mxu0  ;;  %v1262_v4 = vpop.f32.mrf.mxu1 }
 0x215   :  { %984 = vst [vmem:[%s1799_s5 + $0x50] sm:$0xf] %v1118_v62  ;;  %v1111_v13 = vpack.c.bf16 %v652_v63, %v650_v35  ;;  %v1114_v1 = vpack.c.bf16 %v765_v29, %v765_v29  ;;  %v776_v2 = vadd.f32 %v1262_v4, %v1648_v26  ;;  %v656_v7 = vadd.f32 %v655_v0, %v1644_v25 }
 0x216   :  { %v657_v5 = vpop.f32.mrf.mxu0  ;;  %v767_v6 = vpop.f32.mrf.mxu1 }
 0x217   :  { %977 = vst [vmem:[%s1799_s5 + $0x24] sm:$0xff] %v1111_v13  ;;  %980 = vst [vmem:[%s1799_s5 + $0x38] sm:$0xf] %v1114_v1  ;;  %v1120_v8 = vpack.c.bf16 %v776_v2, %v776_v2  ;;  %v658_v14 = vadd.f32 %v657_v5, %v1646_v18  ;;  %v768_v27 = vadd.f32 %v767_v6, %v1648_v26 }
 0x218   :  { %v659_v9 = vpop.f32.mrf.mxu0  ;;  %v1265_v10 = vpop.f32.mrf.mxu1 }
 0x219   :  { %986 = vst [vmem:[%s1799_s5 + $0x5c] sm:$0xf] %v1120_v8  ;;  %v1113_v11 = vpack.c.bf16 %v658_v14, %v656_v7  ;;  %v1116_v36 = vpack.c.bf16 %v768_v27, %v768_v27  ;;  %v789_v12 = vadd.f32 %v1265_v10, %v1648_v26  ;;  %v660_v30 = vadd.f32 %v659_v9, %v1644_v25 }
 0x21a   :  { %v661_v43 = vpop.f32.mrf.mxu0  ;;  %v780_v15 = vpop.f32.mrf.mxu1 }
 0x21b   :  { %979 = vst [vmem:[%s1799_s5 + $0x30] sm:$0xff] %v1113_v11  ;;  %982 = vst [vmem:[%s1799_s5 + $0x44] sm:$0xf] %v1116_v36  ;;  %v1126_v32 = vpack.c.bf16 %v789_v12, %v789_v12  ;;  %v662_v42 = vadd.f32 %v661_v43, %v1646_v18  ;;  %v781_v16 = vadd.f32 %v780_v15, %v1648_v26 }
 0x21c   :  { %v665_v17 = vpop.f32.mrf.mxu0  ;;  %v1266_v24 = vpop.f32.mrf.mxu1 }
 0x21d   :  { %992 = vst [vmem:[%s1799_s5 + $0x80] sm:$0xf] %v1126_v32  ;;  %v1115_v19 = vpack.c.bf16 %v662_v42, %v660_v30  ;;  %v1122_v20 = vpack.c.bf16 %v781_v16, %v781_v16  ;;  %v792_v31 = vadd.f32 %v1266_v24, %v1648_v26  ;;  %v666_v44 = vadd.f32 %v665_v17, %v1644_v25 }
 0x21e   :  { %v667_v56 = vpop.f32.mrf.mxu0  ;;  %v783_v33 = vpop.f32.mrf.mxu1 }
 0x21f   :  { %981 = vst [vmem:[%s1799_s5 + $0x3c] sm:$0xff] %v1115_v19  ;;  %988 = vst [vmem:[%s1799_s5 + $0x68] sm:$0xf] %v1122_v20  ;;  %v1128_v22 = vpack.c.bf16 %v792_v31, %v792_v31  ;;  %v668_v51 = vadd.f32 %v667_v56, %v1646_v18  ;;  %v784_v21 = vadd.f32 %v783_v33, %v1648_v26 }
 0x220   :  { %v669_v23 = vpop.f32.mrf.mxu0  ;;  %v1269_v34 = vpop.f32.mrf.mxu1 }
 0x221   :  { %994 = vst [vmem:[%s1799_s5 + $0x8c] sm:$0xf] %v1128_v22  ;;  %v1117_v37 = vpack.c.bf16 %v668_v51, %v666_v44  ;;  %v1124_v38 = vpack.c.bf16 %v784_v21, %v784_v21  ;;  %v805_v39 = vadd.f32 %v1269_v34, %v1648_v26  ;;  %v670_v45 = vadd.f32 %v669_v23, %v1644_v25 }
 0x222   :  { %v671_v40 = vpop.f32.mrf.mxu0  ;;  %v796_v41 = vpop.f32.mrf.mxu1 }
 0x223   :  { %983 = vst [vmem:[%s1799_s5 + $0x48] sm:$0xff] %v1117_v37  ;;  %990 = vst [vmem:[%s1799_s5 + $0x74] sm:$0xf] %v1124_v38  ;;  %v1134_v28 = vpack.c.bf16 %v805_v39, %v805_v39  ;;  %v672_v52 = vadd.f32 %v671_v40, %v1646_v18  ;;  %v797_v59 = vadd.f32 %v796_v41, %v1648_v26 }
 0x224   :  { %v675_v46 = vpop.f32.mrf.mxu0  ;;  %v1270_v47 = vpop.f32.mrf.mxu1 }
 0x225   :  { %1000 = vst [vmem:[%s1799_s5 + $0xb0] sm:$0xf] %v1134_v28  ;;  %v1119_v48 = vpack.c.bf16 %v672_v52, %v670_v45  ;;  %v1130_v49 = vpack.c.bf16 %v797_v59, %v797_v59  ;;  %v808_v50 = vadd.f32 %v1270_v47, %v1648_v26  ;;  %v676_v60 = vadd.f32 %v675_v46, %v1644_v25 }
 0x226   :  { %v677_v53 = vpop.f32.mrf.mxu0  ;;  %v799_v54 = vpop.f32.mrf.mxu1 }
 0x227   :  { %985 = vst [vmem:[%s1799_s5 + $0x54] sm:$0xff] %v1119_v48  ;;  %996 = vst [vmem:[%s1799_s5 + $0x98] sm:$0xf] %v1130_v49  ;;  %v1136_v3 = vpack.c.bf16 %v808_v50, %v808_v50  ;;  %v678_v55 = vadd.f32 %v677_v53, %v1646_v18  ;;  %v800_v57 = vadd.f32 %v799_v54, %v1648_v26 }
 0x228   :  { %v679_v58 = vpop.f32.mrf.mxu0 }
 0x229   :  { %1002 = vst [vmem:[%s1799_s5 + $0xbc] sm:$0xf] %v1136_v3  ;;  %v1121_v61 = vpack.c.bf16 %v678_v55, %v676_v60  ;;  %v1132_v35 = vpack.c.bf16 %v800_v57, %v800_v57  ;;  %v680_v63 = vadd.f32 %v679_v58, %v1644_v25 }
 0x22a   :  { %v681_v62 = vpop.f32.mrf.mxu0 }
 0x22b   :  { %987 = vst [vmem:[%s1799_s5 + $0x60] sm:$0xff] %v1121_v61  ;;  %998 = vst [vmem:[%s1799_s5 + $0xa4] sm:$0xf] %v1132_v35  ;;  %v682_v26 = vadd.f32 %v681_v62, %v1646_v18 }
 0x22c   :  { %v685_v29 = vpop.f32.mrf.mxu0 }
 0x22d   :  { %v1123_v0 = vpack.c.bf16 %v682_v26, %v680_v63  ;;  %v686_v13 = vadd.f32 %v685_v29, %v1644_v25 }
 0x22e   :  { %v687_v4 = vpop.f32.mrf.mxu0 }
 0x22f   :  { %989 = vst [vmem:[%s1799_s5 + $0x6c] sm:$0xff] %v1123_v0  ;;  %v688_v1 = vadd.f32 %v687_v4, %v1646_v18 }
 0x230   :  { %v689_v2 = vpop.f32.mrf.mxu0 }
 0x231   :  { %v1125_v5 = vpack.c.bf16 %v688_v1, %v686_v13  ;;  %v690_v7 = vadd.f32 %v689_v2, %v1644_v25 }
 0x232   :  { %v691_v6 = vpop.f32.mrf.mxu0 }
 0x233   :  { %991 = vst [vmem:[%s1799_s5 + $0x78] sm:$0xff] %v1125_v5  ;;  %v692_v8 = vadd.f32 %v691_v6, %v1646_v18 }
 0x234   :  { %v695_v14 = vpop.f32.mrf.mxu0 }
 0x235   :  { %v1127_v27 = vpack.c.bf16 %v692_v8, %v690_v7  ;;  %v696_v10 = vadd.f32 %v695_v14, %v1644_v25 }
 0x236   :  { %v697_v9 = vpop.f32.mrf.mxu0 }
 0x237   :  { %993 = vst [vmem:[%s1799_s5 + $0x84] sm:$0xff] %v1127_v27  ;;  %v698_v11 = vadd.f32 %v697_v9, %v1646_v18 }
 0x238   :  { %v699_v36 = vpop.f32.mrf.mxu0 }
 0x239   :  { %v1129_v12 = vpack.c.bf16 %v698_v11, %v696_v10  ;;  %v700_v15 = vadd.f32 %v699_v36, %v1644_v25 }
 0x23a   :  { %v701_v43 = vpop.f32.mrf.mxu0 }
 0x23b   :  { %995 = vst [vmem:[%s1799_s5 + $0x90] sm:$0xff] %v1129_v12  ;;  %v702_v30 = vadd.f32 %v701_v43, %v1646_v18 }
 0x23c   :  { %v705_v32 = vpop.f32.mrf.mxu0 }
 0x23d   :  { %v1131_v42 = vpack.c.bf16 %v702_v30, %v700_v15  ;;  %v706_v17 = vadd.f32 %v705_v32, %v1644_v25 }
 0x23e   :  { %v707_v16 = vpop.f32.mrf.mxu0 }
 0x23f   :  { %997 = vst [vmem:[%s1799_s5 + $0x9c] sm:$0xff] %v1131_v42  ;;  %v708_v24 = vadd.f32 %v707_v16, %v1646_v18 }
 0x240   :  { %v709_v19 = vpop.f32.mrf.mxu0 }
 0x241   :  { %v1133_v20 = vpack.c.bf16 %v708_v24, %v706_v17  ;;  %v710_v56 = vadd.f32 %v709_v19, %v1644_v25 }
 0x242   :  { %v711_v31 = vpop.f32.mrf.mxu0 }
 0x243   :  { %999 = vst [vmem:[%s1799_s5 + $0xa8] sm:$0xff] %v1133_v20  ;;  %v712_v33 = vadd.f32 %v711_v31, %v1646_v18 }
 0x245   :  { %v1135_v44 = vpack.c.bf16 %v712_v33, %v710_v56 }
 0x247   :  { %1001 = vst [vmem:[%s1799_s5 + $0xb4] sm:$0xff] %v1135_v44 }

// kernel: _lambda_.13
= control target key start
LH: loop header
LB: loop body
LE: loop exit
PB: predicated region body
PF: predicated region fallthrough
CT: control target
= control target key end

     0   :  { %s1957_s0 = inlined_call_operand.vmem [shape: bf16[128,128], index: 0, kind: input, shape index: {}]   ;;  %s1958_s3 = inlined_call_operand.vmem [shape: bf16[128,256], index: 3, kind: input, shape index: {}]   ;;  %s1959_s1 = inlined_call_operand.vmem [shape: f32[1,128], index: 1, kind: input, shape index: {}]   ;;  %s1960_s2 = inlined_call_operand.vmem [shape: f32[1,128], index: 2, kind: input, shape index: {}]   ;;  %s1961_s4 = inlined_call_operand.vmem [shape: f32[1,256], index: 4, kind: input, shape index: {}]   ;;  %s1962_s5 = inlined_call_operand.vmem [shape: bf16[128,256], index: 5, kind: output, shape index: {}]  }
   0x1   :  { %v1140_v0 = vld [vmem:[%s1957_s0] sm:$0xff]   ;;  %v1211_v6 = vld [vmem:[%s1957_s0 + $0x8] sm:$0xff]   ;;  %v1416_v12 = vld [vmem:[%s1957_s0 + $0x10] sm:$0xff]  }
   0x2   :  { %v1214_v1 = vld [vmem:[%s1957_s0 + $0x20] sm:$0xff]   ;;  %v1141_v2 = vunpack.c.l.bf16 %v1140_v0  ;;  %v1142_v4 = vunpack.c.h.bf16 %v1140_v0  ;;  %v1145_v7 = vunpack.c.l.bf16 %v1211_v6  ;;  %v1146_v8 = vunpack.c.h.bf16 %v1211_v6  ;;  %v1215_v9 = vld [vmem:[%s1957_s0 + $0x28] sm:$0xff]   ;;  %v1423_v15 = vld [vmem:[%s1957_s0 + $0x30] sm:$0xff]  }
   0x3   :  { %v1157_v3 = vunpack.c.l.bf16 %v1214_v1  ;;  %v1158_v5 = vunpack.c.h.bf16 %v1214_v1  ;;  %v1161_v10 = vunpack.c.l.bf16 %v1215_v9  ;;  %v1162_v11 = vunpack.c.h.bf16 %v1215_v9  ;;  %v1430_v18 = vld [vmem:[%s1957_s0 + $0x18] sm:$0xff]  }
   0x4   :  { %57 = vadd.xlane.f32.xlu0 %v1141_v2  ;;  %v1149_v13 = vunpack.c.l.bf16 %v1416_v12  ;;  %v1150_v14 = vunpack.c.h.bf16 %v1416_v12  ;;  %v1165_v16 = vunpack.c.l.bf16 %v1423_v15  ;;  %v1166_v17 = vunpack.c.h.bf16 %v1423_v15  ;;  %v1441_v21 = vld [vmem:[%s1957_s0 + $0x38] sm:$0xff]  }
   0x5   :  { %73 = vadd.xlane.f32.xlu1 %v1157_v3  ;;  %v1153_v19 = vunpack.c.l.bf16 %v1430_v18  ;;  %v1154_v20 = vunpack.c.h.bf16 %v1430_v18  ;;  %v1169_v22 = vunpack.c.l.bf16 %v1441_v21  ;;  %v1170_v23 = vunpack.c.h.bf16 %v1441_v21  ;;  %v1242_v6 = vld [vmem:[%s1958_s3 + $0x74] ss:$8 sps:$4 sm:$0xff]   ;;  %v1244_v9 = vld [vmem:[%s1958_s3 + $0x70] ss:$8 sps:$4 sm:$0xff]  }
   0x6   :  { %532 = vmatprep.subr.bf16.mxu0 %v1242_v6  ;;  %1225 = vmatprep.subr.bf16.mxu1 %v1242_v6 }
   0x7   :  { %533 = vmatpush1.bf16.msra.mxu0 %v1244_v9  ;;  %1233 = vmatpush1.bf16.msra.mxu1 %v1244_v9 }
   0x8   :  { %59 = vadd.xlane.f32.xlu0 %v1142_v4 }
   0x9   :  { %75 = vadd.xlane.f32.xlu1 %v1158_v5 }
   0xc   :  { %61 = vadd.xlane.f32.xlu0 %v1145_v7 }
   0xd   :  { %63 = vadd.xlane.f32.xlu1 %v1146_v8 }
  0x10   :  { %77 = vadd.xlane.f32.xlu0 %v1161_v10 }
  0x11   :  { %79 = vadd.xlane.f32.xlu1 %v1162_v11 }
  0x14   :  { %65 = vadd.xlane.f32.xlu0 %v1149_v13 }
  0x15   :  { %67 = vadd.xlane.f32.xlu1 %v1150_v14 }
  0x18   :  { %81 = vadd.xlane.f32.xlu0 %v1165_v16 }
  0x19   :  { %83 = vadd.xlane.f32.xlu1 %v1166_v17 }
  0x1c   :  { %69 = vadd.xlane.f32.xlu0 %v1153_v19 }
  0x1d   :  { %71 = vadd.xlane.f32.xlu1 %v1154_v20 }
  0x20   :  { %85 = vadd.xlane.f32.xlu0 %v1169_v22 }
  0x21   :  { %87 = vadd.xlane.f32.xlu1 %v1170_v23 }
  0x8d   :  { %v58_v24 = vpop.xlane.xlu0 %57 }
  0x8e   :  { %v74_v25 = vpop.xlane.xlu1 %73  ;;  %v90_v26 = vmul.f32 0.0078125, %v58_v24 }
  0x8f   :  { %v98_v27 = vmul.f32 0.0078125, %v74_v25 }
  0x90   :  { %v1453_v28 = vsub.f32 %v1141_v2, %v90_v26 }
  0x91   :  { %v1455_v29 = vsub.f32 %v1157_v3, %v98_v27  ;;  %v60_v30 = vpop.xlane.xlu0 %59 }
  0x92   :  { %v76_v31 = vpop.xlane.xlu1 %75  ;;  %v91_v32 = vmul.f32 0.0078125, %v60_v30  ;;  %v122_v33 = vmul.f32 %v1453_v28, %v1453_v28 }
  0x93   :  { %v99_v34 = vmul.f32 0.0078125, %v76_v31  ;;  %v130_v37 = vmul.f32 %v1455_v29, %v1455_v29  ;;  %v1248_v31 = vld [vmem:[%s1958_s3 + $0x54] ss:$8 sps:$4 sm:$0xff]  }
  0x94   :  { %v1459_v35 = vsub.f32 %v1142_v4, %v91_v32  ;;  %138 = vadd.xlane.f32.xlu0 %v122_v33  ;;  %v1250_v32 = vld [vmem:[%s1958_s3 + $0x50] ss:$8 sps:$4 sm:$0xff]   ;;  %v1253_v33 = vld [vmem:[%s1958_s3 + $0x40] ss:$8 sps:$4 sm:$0xff]  }
  0x95   :  { %v1461_v36 = vsub.f32 %v1158_v5, %v99_v34  ;;  %v62_v38 = vpop.xlane.xlu0 %61  ;;  %v1254_v34 = vld [vmem:[%s1958_s3 + $0x34] ss:$8 sps:$4 sm:$0xff]  }
  0x96   :  { %v64_v39 = vpop.xlane.xlu1 %63  ;;  %v92_v40 = vmul.f32 0.0078125, %v62_v38  ;;  %v123_v41 = vmul.f32 %v1459_v35, %v1459_v35  ;;  %v1257_v38 = vld [vmem:[%s1958_s3 + $0x24] ss:$8 sps:$4 sm:$0xff]  }
  0x97   :  { %v93_v42 = vmul.f32 0.0078125, %v64_v39  ;;  %v131_v45 = vmul.f32 %v1461_v36, %v1461_v36  ;;  %v1259_v39 = vld [vmem:[%s1958_s3 + $0x20] ss:$8 sps:$4 sm:$0xff]  }
  0x98   :  { %v1467_v43 = vsub.f32 %v1145_v7, %v92_v40  ;;  %154 = vadd.xlane.f32.xlu0 %v130_v37  ;;  %140 = vadd.xlane.f32.xlu1 %v123_v41  ;;  %v1256_v37 = vld [vmem:[%s1958_s3 + $0x30] ss:$8 sps:$4 sm:$0xff]   ;;  %v1260_v40 = vld [vmem:[%s1958_s3 + $0x14] ss:$8 sps:$4 sm:$0xff]  }
  0x99   :  { %v1469_v44 = vsub.f32 %v1146_v8, %v93_v42  ;;  %v78_v46 = vpop.xlane.xlu0 %77  ;;  %v1262_v41 = vld [vmem:[%s1958_s3 + $0x10] ss:$8 sps:$4 sm:$0xff]   ;;  %v1263_v42 = vld [vmem:[%s1958_s3 + $0x4] ss:$8 sps:$4 sm:$0xff]  }
  0x9a   :  { %v80_v47 = vpop.xlane.xlu1 %79  ;;  %v100_v48 = vmul.f32 0.0078125, %v78_v46  ;;  %v124_v49 = vmul.f32 %v1467_v43, %v1467_v43  ;;  %v1370_v46 = vmov 0  }
  0x9b   :  { %v101_v50 = vmul.f32 0.0078125, %v80_v47  ;;  %v125_v53 = vmul.f32 %v1469_v44, %v1469_v44  ;;  %564 = vmatprep.mubr.bf16.mxu0 %v1370_v46  ;;  %604 = vmatprep.mubr.bf16.mxu1 %v1370_v46 }
  0x9c   :  { %v1475_v51 = vsub.f32 %v1161_v10, %v100_v48  ;;  %156 = vadd.xlane.f32.xlu1 %v131_v45  ;;  %142 = vadd.xlane.f32.xlu0 %v124_v49  ;;  %v1265_v45 = vld [vmem:[%s1958_s3] ss:$8 sps:$4 sm:$0xff]  }
  0x9d   :  { %v1477_v52 = vsub.f32 %v1162_v11, %v101_v50  ;;  %v66_v54 = vpop.xlane.xlu0 %65 }
  0x9e   :  { %v68_v55 = vpop.xlane.xlu1 %67  ;;  %v94_v56 = vmul.f32 0.0078125, %v66_v54  ;;  %v132_v57 = vmul.f32 %v1475_v51, %v1475_v51 }
  0x9f   :  { %v95_v58 = vmul.f32 0.0078125, %v68_v55  ;;  %v133_v61 = vmul.f32 %v1477_v52, %v1477_v52 }
  0xa0   :  { %v1483_v59 = vsub.f32 %v1149_v13, %v94_v56  ;;  %144 = vadd.xlane.f32.xlu1 %v125_v53  ;;  %158 = vadd.xlane.f32.xlu0 %v132_v57 }
  0xa1   :  { %v1485_v60 = vsub.f32 %v1150_v14, %v95_v58  ;;  %v82_v62 = vpop.xlane.xlu0 %81 }
  0xa2   :  { %v84_v63 = vpop.xlane.xlu1 %83  ;;  %v102_v0 = vmul.f32 0.0078125, %v82_v62  ;;  %v126_v1 = vmul.f32 %v1483_v59, %v1483_v59 }
  0xa3   :  { %v103_v2 = vmul.f32 0.0078125, %v84_v63  ;;  %v127_v5 = vmul.f32 %v1485_v60, %v1485_v60 }
  0xa4   :  { %v1493_v3 = vsub.f32 %v1165_v16, %v102_v0  ;;  %160 = vadd.xlane.f32.xlu1 %v133_v61  ;;  %146 = vadd.xlane.f32.xlu0 %v126_v1  ;;  %v1245_v16 = vld [vmem:[%s1958_s3 + $0x64] ss:$8 sps:$4 sm:$0xff]  }
  0xa5   :  { %v1497_v4 = vsub.f32 %v1166_v17, %v103_v2  ;;  %v70_v7 = vpop.xlane.xlu0 %69  ;;  %534 = vmatprep.subr.bf16.mxu0 %v1245_v16  ;;  %1226 = vmatprep.subr.bf16.mxu1 %v1245_v16 }
  0xa6   :  { %v72_v8 = vpop.xlane.xlu1 %71  ;;  %v96_v10 = vmul.f32 0.0078125, %v70_v7  ;;  %v134_v11 = vmul.f32 %v1493_v3, %v1493_v3 }
  0xa7   :  { %v97_v12 = vmul.f32 0.0078125, %v72_v8  ;;  %v135_v15 = vmul.f32 %v1497_v4, %v1497_v4 }
  0xa8   :  { %v1511_v13 = vsub.f32 %v1153_v19, %v96_v10  ;;  %148 = vadd.xlane.f32.xlu1 %v127_v5  ;;  %162 = vadd.xlane.f32.xlu0 %v134_v11  ;;  %v1247_v19 = vld [vmem:[%s1958_s3 + $0x60] ss:$8 sps:$4 sm:$0xff]  }
  0xa9   :  { %v1515_v14 = vsub.f32 %v1154_v20, %v97_v12  ;;  %v86_v17 = vpop.xlane.xlu0 %85  ;;  %535 = vmatpush1.bf16.msra.mxu0 %v1247_v19  ;;  %1234 = vmatpush1.bf16.msra.mxu1 %v1247_v19 }
  0xaa   :  { %v88_v24 = vpop.xlane.xlu1 %87  ;;  %v104_v25 = vmul.f32 0.0078125, %v86_v17  ;;  %v128_v26 = vmul.f32 %v1511_v13, %v1511_v13  ;;  %536 = vmatprep.subr.bf16.mxu0 %v1248_v31  ;;  %1227 = vmatprep.subr.bf16.mxu1 %v1248_v31  ;;  %v1582_v17 = vld [vmem:[%s1959_s1] ss:$0 sm:$0xff] }
  0xab   :  { %v105_v18 = vmul.f32 0.0078125, %v88_v24  ;;  %v129_v30 = vmul.f32 %v1515_v14, %v1515_v14 }
  0xac   :  { %v1529_v20 = vsub.f32 %v1169_v22, %v104_v25  ;;  %164 = vadd.xlane.f32.xlu1 %v135_v15  ;;  %150 = vadd.xlane.f32.xlu0 %v128_v26 }
  0xad   :  { %v1533_v27 = vsub.f32 %v1170_v23, %v105_v18  ;;  %537 = vmatpush1.bf16.msra.mxu0 %v1250_v32  ;;  %1235 = vmatpush1.bf16.msra.mxu1 %v1250_v32  ;;  %v1251_v23 = vld [vmem:[%s1958_s3 + $0x44] ss:$8 sps:$4 sm:$0xff]  }
  0xae   :  { %v136_v22 = vmul.f32 %v1529_v20, %v1529_v20  ;;  %538 = vmatprep.subr.bf16.mxu0 %v1251_v23  ;;  %1228 = vmatprep.subr.bf16.mxu1 %v1251_v23  ;;  %v1589_v23 = vld [vmem:[%s1960_s2] ss:$0 sm:$0xff] }
  0xaf   :  { %v137_v21 = vmul.f32 %v1533_v27, %v1533_v27 }
  0xb0   :  { %152 = vadd.xlane.f32.xlu1 %v129_v30  ;;  %166 = vadd.xlane.f32.xlu0 %v136_v22 }
  0xb1   :  { %539 = vmatpush1.bf16.msra.mxu0 %v1253_v33  ;;  %1236 = vmatpush1.bf16.msra.mxu1 %v1253_v33 }
  0xb2   :  { %540 = vmatprep.subr.bf16.mxu0 %v1254_v34  ;;  %1229 = vmatprep.subr.bf16.mxu1 %v1254_v34 }
  0xb4   :  { %168 = vadd.xlane.f32.xlu1 %v137_v21 }
  0xb5   :  { %541 = vmatpush1.bf16.msra.mxu0 %v1256_v37  ;;  %1237 = vmatpush1.bf16.msra.mxu1 %v1256_v37 }
  0xb6   :  { %542 = vmatprep.subr.bf16.mxu0 %v1257_v38  ;;  %1230 = vmatprep.subr.bf16.mxu1 %v1257_v38 }
  0xb9   :  { %543 = vmatpush1.bf16.msra.mxu0 %v1259_v39  ;;  %1238 = vmatpush1.bf16.msra.mxu1 %v1259_v39 }
  0xba   :  { %544 = vmatprep.subr.bf16.mxu0 %v1260_v40  ;;  %1231 = vmatprep.subr.bf16.mxu1 %v1260_v40 }
  0xbd   :  { %545 = vmatpush1.bf16.msra.mxu0 %v1262_v41  ;;  %1239 = vmatpush1.bf16.msra.mxu1 %v1262_v41 }
  0xbe   :  { %546 = vmatprep.subr.bf16.mxu0 %v1263_v42  ;;  %1232 = vmatprep.subr.bf16.mxu1 %v1263_v42 }
  0xc1   :  { %547 = vmatpush1.bf16.msra.mxu0 %v1265_v45  ;;  %1240 = vmatpush1.bf16.msra.mxu1 %v1265_v45 }
 0x11d   :  { %v139_v47 = vpop.xlane.xlu0 %138 }
 0x11e   :  { %v170_v48 = vmul.f32 0.0078125, %v139_v47 }
 0x120   :  { %v186_v49 = vadd.f32 1e-06, %v170_v48 }
 0x121   :  { %v141_v50 = vpop.xlane.xlu1 %140  ;;  %v155_v53 = vpop.xlane.xlu0 %154 }
 0x122   :  { %1274 = vrsqrt.f32 %v186_v49  ;;  %v171_v54 = vmul.f32 0.0078125, %v141_v50  ;;  %v178_v55 = vmul.f32 0.0078125, %v155_v53 }
 0x124   :  { %v187_v56 = vadd.f32 1e-06, %v171_v54  ;;  %v194_v57 = vadd.f32 1e-06, %v178_v55 }
 0x125   :  { %v157_v58 = vpop.xlane.xlu1 %156  ;;  %v143_v61 = vpop.xlane.xlu0 %142 }
 0x126   :  { %1276 = vrsqrt.f32 %v187_v56  ;;  %v179_v62 = vmul.f32 0.0078125, %v157_v58  ;;  %v172_v63 = vmul.f32 0.0078125, %v143_v61 }
 0x127   :  { %1278 = vrsqrt.f32 %v194_v57 }
 0x128   :  { %v195_v0 = vadd.f32 1e-06, %v179_v62  ;;  %v188_v1 = vadd.f32 1e-06, %v172_v63 }
 0x129   :  { %v145_v2 = vpop.xlane.xlu1 %144  ;;  %v159_v5 = vpop.xlane.xlu0 %158 }
 0x12a   :  { %1280 = vrsqrt.f32 %v195_v0  ;;  %v173_v6 = vmul.f32 0.0078125, %v145_v2  ;;  %v180_v7 = vmul.f32 0.0078125, %v159_v5 }
 0x12b   :  { %1282 = vrsqrt.f32 %v188_v1 }
 0x12c   :  { %v189_v8 = vadd.f32 1e-06, %v173_v6  ;;  %v196_v9 = vadd.f32 1e-06, %v180_v7 }
 0x12d   :  { %v161_v10 = vpop.xlane.xlu1 %160  ;;  %v147_v11 = vpop.xlane.xlu0 %146 }
 0x12e   :  { %1284 = vrsqrt.f32 %v189_v8  ;;  %v181_v12 = vmul.f32 0.0078125, %v161_v10  ;;  %v174_v15 = vmul.f32 0.0078125, %v147_v11 }
 0x12f   :  { %v1275_v16 = vpop.eup %1274  ;;  %1286 = vrsqrt.f32 %v196_v9 }
 0x130   :  { %v218_v24 = vmul.f32 %v1275_v16, %v1453_v28  ;;  %v197_v19 = vadd.f32 1e-06, %v181_v12  ;;  %v190_v25 = vadd.f32 1e-06, %v174_v15 }
 0x131   :  { %v149_v26 = vpop.xlane.xlu1 %148  ;;  %v163_v18 = vpop.xlane.xlu0 %162 }
 0x132   :  { %1288 = vrsqrt.f32 %v197_v19  ;;  %v175_v30 = vmul.f32 0.0078125, %v149_v26  ;;  %v182_v31 = vmul.f32 0.0078125, %v163_v18  ;;  %v241_v22 = vmul.f32 %v1582_v17, %v218_v24 }
 0x133   :  { %v1277_v32 = vpop.eup %1276  ;;  %1290 = vrsqrt.f32 %v190_v25 }
 0x134   :  { %v1279_v21 = vpop.eup %1278  ;;  %v219_v33 = vmul.f32 %v1277_v32, %v1459_v35  ;;  %v191_v28 = vadd.f32 1e-06, %v175_v30  ;;  %v198_v34 = vadd.f32 1e-06, %v182_v31  ;;  %v264_v47 = vadd.f32 %v1589_v23, %v241_v22 }
 0x135   :  { %v226_v37 = vmul.f32 %v1279_v21, %v1455_v29  ;;  %v165_v38 = vpop.xlane.xlu1 %164  ;;  %v151_v39 = vpop.xlane.xlu0 %150 }
 0x136   :  { %v242_v40 = vmul.f32 %v1582_v17, %v219_v33  ;;  %1292 = vrsqrt.f32 %v191_v28  ;;  %v183_v41 = vmul.f32 0.0078125, %v165_v38  ;;  %v176_v42 = vmul.f32 0.0078125, %v151_v39 }
 0x137   :  { %v1281_v45 = vpop.eup %1280  ;;  %v249_v48 = vmul.f32 %v1582_v17, %v226_v37  ;;  %1294 = vrsqrt.f32 %v198_v34 }
 0x138   :  { %v1283_v49 = vpop.eup %1282  ;;  %v265_v35 = vadd.f32 %v1589_v23, %v242_v40  ;;  %v227_v50 = vmul.f32 %v1281_v45, %v1461_v36  ;;  %v199_v53 = vadd.f32 1e-06, %v183_v41  ;;  %v192_v29 = vadd.f32 1e-06, %v176_v42 }
 0x139   :  { %v220_v54 = vmul.f32 %v1283_v49, %v1467_v43  ;;  %v153_v55 = vpop.xlane.xlu1 %152  ;;  %v167_v56 = vpop.xlane.xlu0 %166  ;;  %v272_v36 = vadd.f32 %v1589_v23, %v249_v48 }
 0x13a   :  { %v1174_v57 = vpack.c.bf16 %v265_v35, %v264_v47  ;;  %v250_v58 = vmul.f32 %v1582_v17, %v227_v50  ;;  %1296 = vrsqrt.f32 %v199_v53  ;;  %v177_v61 = vmul.f32 0.0078125, %v153_v55 }
 0x13b   :  { %v1285_v62 = vpop.eup %1284  ;;  %v243_v63 = vmul.f32 %v1582_v17, %v220_v54  ;;  %1298 = vrsqrt.f32 %v192_v29  ;;  %v184_v0 = vmul.f32 0.0078125, %v167_v56 }
 0x13c   :  { %v1287_v1 = vpop.eup %1286  ;;  %1175 = vst [vmem:[#allocation2] sm:$0xff] %v1174_v57   ;;  %v273_v2 = vadd.f32 %v1589_v23, %v250_v58  ;;  %v221_v43 = vmul.f32 %v1285_v62, %v1469_v44  ;;  %v193_v5 = vadd.f32 1e-06, %v177_v61 }
 0x13d   :  { %v228_v6 = vmul.f32 %v1287_v1, %v1475_v51  ;;  %v200_v7 = vadd.f32 1e-06, %v184_v0  ;;  %v169_v8 = vpop.xlane.xlu1 %168  ;;  %v266_v15 = vadd.f32 %v1589_v23, %v243_v63 }
 0x13e   :  { %v1194_v9 = vpack.c.bf16 %v273_v2, %v272_v36  ;;  %v244_v10 = vmul.f32 %v1582_v17, %v221_v43  ;;  %1300 = vrsqrt.f32 %v193_v5  ;;  %v185_v11 = vmul.f32 0.0078125, %v169_v8 }
 0x13f   :  { %v1289_v12 = vpop.eup %1288  ;;  %1302 = vrsqrt.f32 %v200_v7  ;;  %v251_v44 = vmul.f32 %v1582_v17, %v228_v6  ;;  %v394_v5 = vlaneseq }
 0x140   :  { %v1291_v16 = vpop.eup %1290  ;;  %1221 = vst [vmem:[#allocation2 + $0x20] sm:$0xff] %v1194_v9   ;;  %v267_v24 = vadd.f32 %v1589_v23, %v244_v10  ;;  %v229_v19 = vmul.f32 %v1289_v12, %v1477_v52  ;;  %v201_v51 = vadd.f32 1e-06, %v185_v11 }
 0x141   :  { %v222_v25 = vmul.f32 %v1291_v16, %v1483_v59  ;;  %v274_v22 = vadd.f32 %v1589_v23, %v251_v44  ;;  %v395_v6 = vshrl.u32 %v394_v5, 7 }
 0x142   :  { %v1179_v26 = vpack.c.bf16 %v267_v24, %v266_v15  ;;  %v252_v18 = vmul.f32 %v1582_v17, %v229_v19  ;;  %1304 = vrsqrt.f32 %v201_v51 }
 0x143   :  { %v1293_v30 = vpop.eup %1292  ;;  %v1266_v31 = vld [vmem:[#allocation2] sm:$0xff]   ;;  %v245_v33 = vmul.f32 %v1582_v17, %v222_v25  ;;  %v396_v7 = vsub.s32 0, %v395_v6  ;;  %v400_v8 = vsub.s32 1, %v395_v6 }
 0x144   :  { %v1295_v32 = vpop.eup %1294  ;;  %1218 = vst [vmem:[#allocation2 + $0x8] sm:$0xff] %v1179_v26   ;;  %v275_v21 = vadd.f32 %v1589_v23, %v252_v18  ;;  %v223_v28 = vmul.f32 %v1293_v30, %v1485_v60  ;;  %565 = vmatmul.mubr.bf16.vlgmr.msra.gmra.mxu0 %v1266_v31 }
 0x145   :  { %v230_v52 = vmul.f32 %v1295_v32, %v1493_v3  ;;  %574 = vmatprep.mubr.bf16.mxu0 %v1370_v46  ;;  %v268_v40 = vadd.f32 %v1589_v23, %v245_v33 }
 0x146   :  { %v1199_v59 = vpack.c.bf16 %v275_v21, %v274_v22  ;;  %v246_v34 = vmul.f32 %v1582_v17, %v223_v28 }
 0x147   :  { %v1297_v37 = vpop.eup %1296  ;;  %v1267_v38 = vld [vmem:[#allocation2 + $0x20] sm:$0xff]   ;;  %v253_v42 = vmul.f32 %v1582_v17, %v230_v52 }
 0x148   :  { %v1299_v39 = vpop.eup %1298  ;;  %1222 = vst [vmem:[#allocation2 + $0x28] sm:$0xff] %v1199_v59   ;;  %v269_v41 = vadd.f32 %v1589_v23, %v246_v34  ;;  %v231_v60 = vmul.f32 %v1297_v37, %v1497_v4  ;;  %605 = vmatmul.mubr.bf16.vlgmr.msra.gmra.mxu1 %v1267_v38 }
 0x149   :  { %v224_v3 = vmul.f32 %v1299_v39, %v1511_v13  ;;  %614 = vmatprep.mubr.bf16.mxu1 %v1370_v46  ;;  %v276_v50 = vadd.f32 %v1589_v23, %v253_v42 }
 0x14a   :  { %v1184_v45 = vpack.c.bf16 %v269_v41, %v268_v40  ;;  %v254_v47 = vmul.f32 %v1582_v17, %v231_v60 }
 0x14b   :  { %v1301_v48 = vpop.eup %1300  ;;  %v1268_v49 = vld [vmem:[#allocation2 + $0x8] sm:$0xff]   ;;  %v247_v29 = vmul.f32 %v1582_v17, %v224_v3 }
 0x14c   :  { %v1303_v35 = vpop.eup %1302  ;;  %1219 = vst [vmem:[#allocation2 + $0x10] sm:$0xff] %v1184_v45   ;;  %v277_v53 = vadd.f32 %v1589_v23, %v254_v47  ;;  %v225_v4 = vmul.f32 %v1301_v48, %v1515_v14  ;;  %575 = vmatmul.mubr.bf16.gmra.mxu0 %v1268_v49 }
 0x14d   :  { %v232_v13 = vmul.f32 %v1303_v35, %v1529_v20  ;;  %584 = vmatprep.mubr.bf16.mxu0 %v1370_v46  ;;  %v270_v58 = vadd.f32 %v1589_v23, %v247_v29 }
 0x14e   :  { %v1204_v54 = vpack.c.bf16 %v277_v53, %v276_v50  ;;  %v248_v55 = vmul.f32 %v1582_v17, %v225_v4 }
 0x14f   :  { %v1305_v56 = vpop.eup %1304  ;;  %v1269_v57 = vld [vmem:[#allocation2 + $0x28] sm:$0xff]   ;;  %v255_v62 = vmul.f32 %v1582_v17, %v232_v13 }
 0x150   :  { %1223 = vst [vmem:[#allocation2 + $0x30] sm:$0xff] %v1204_v54   ;;  %v271_v61 = vadd.f32 %v1589_v23, %v248_v55  ;;  %v233_v63 = vmul.f32 %v1305_v56, %v1533_v27  ;;  %615 = vmatmul.mubr.bf16.gmra.mxu1 %v1269_v57 }
 0x151   :  { %624 = vmatprep.mubr.bf16.mxu1 %v1370_v46  ;;  %v278_v1 = vadd.f32 %v1589_v23, %v255_v62 }
 0x152   :  { %v1189_v14 = vpack.c.bf16 %v271_v61, %v270_v58  ;;  %v256_v20 = vmul.f32 %v1582_v17, %v233_v63 }
 0x153   :  { %v1270_v0 = vld [vmem:[#allocation2 + $0x10] sm:$0xff]  }
 0x154   :  { %1220 = vst [vmem:[#allocation2 + $0x18] sm:$0xff] %v1189_v14   ;;  %v279_v36 = vadd.f32 %v1589_v23, %v256_v20  ;;  %585 = vmatmul.mubr.bf16.gmra.mxu0 %v1270_v0  ;;  %v392_v23 = vld [vmem:[%s1961_s4] sm:$0x3] }
 0x155   :  { %594 = vmatprep.mubr.bf16.mxu0 %v1370_v46  ;;  %v1646_v9 = vrot.slane %v392_v23, %v396_v7  ;;  %v1648_v10 = vrot.slane %v392_v23, %v400_v8 }
 0x156   :  { %v1209_v2 = vpack.c.bf16 %v279_v36, %v278_v1 }
 0x157   :  { %v1271_v43 = vld [vmem:[#allocation2 + $0x30] sm:$0xff]  }
 0x158   :  { %1224 = vst [vmem:[#allocation2 + $0x38] sm:$0xff] %v1209_v2   ;;  %625 = vmatmul.mubr.bf16.gmra.mxu1 %v1271_v43 }
 0x159   :  { %634 = vmatprep.mubr.bf16.mxu1 %v1370_v46 }
 0x15b   :  { %v1272_v27 = vld [vmem:[#allocation2 + $0x18] sm:$0xff]  }
 0x15c   :  { %595 = vmatmul.mubr.bf16.gmra.mxu0 %v1272_v27 }
 0x15f   :  { %v1273_v17 = vld [vmem:[#allocation2 + $0x38] sm:$0xff]  }
 0x160   :  { %635 = vmatmul.mubr.bf16.gmra.mxu1 %v1273_v17 }
 0x204   :  { %v566_v11 = vpop.f32.mrf.mxu0 }
 0x205   :  { %v1651_v12 = vadd.f32 %v566_v11, %v1646_v9 }
 0x206   :  { %v568_v46 = vpop.f32.mrf.mxu0 }
 0x207   :  { %v677_v15 = vmul.f32 %v1651_v12, %v1651_v12  ;;  %v1656_v16 = vadd.f32 %v568_v46, %v1648_v10 }
 0x208   :  { %v570_v24 = vpop.f32.mrf.mxu0  ;;  %v606_v44 = vpop.f32.mrf.mxu1 }
 0x209   :  { %v709_v19 = vmul.f32 %v677_v15, %v1651_v12  ;;  %v678_v51 = vmul.f32 %v1656_v16, %v1656_v16  ;;  %v1662_v25 = vadd.f32 %v570_v24, %v1646_v9  ;;  %v1665_v26 = vadd.f32 %v606_v44, %v1646_v9 }
 0x20a   :  { %v572_v18 = vpop.f32.mrf.mxu0  ;;  %v608_v30 = vpop.f32.mrf.mxu1  ;;  %v645_v44 = vmul.f32 0.5, %v1651_v12 }
 0x20b   :  { %v741_v31 = vmul.f32 0.044715, %v709_v19  ;;  %v710_v32 = vmul.f32 %v678_v51, %v1656_v16  ;;  %v679_v22 = vmul.f32 %v1662_v25, %v1662_v25  ;;  %v693_v21 = vmul.f32 %v1665_v26, %v1665_v26 }
 0x20c   :  { %v1673_v33 = vadd.f32 %v572_v18, %v1648_v10  ;;  %v1676_v28 = vadd.f32 %v608_v30, %v1648_v10  ;;  %v576_v52 = vpop.f32.mrf.mxu0  ;;  %v610_v39 = vpop.f32.mrf.mxu1  ;;  %v646_v19 = vmul.f32 0.5, %v1656_v16  ;;  %v1727_v30 = vmul.f32 0.5, %v1662_v25 }
 0x20d   :  { %v773_v59 = vadd.f32 %v741_v31, %v1651_v12  ;;  %v742_v34 = vmul.f32 0.044715, %v710_v32  ;;  %v711_v37 = vmul.f32 %v679_v22, %v1662_v25  ;;  %v1681_v38 = vadd.f32 %v576_v52, %v1646_v9 }
 0x20e   :  { %v725_v40 = vmul.f32 %v693_v21, %v1665_v26  ;;  %v680_v41 = vmul.f32 %v1673_v33, %v1673_v33  ;;  %v694_v45 = vmul.f32 %v1676_v28, %v1676_v28  ;;  %v578_v35 = vpop.f32.mrf.mxu0  ;;  %v612_v4 = vpop.f32.mrf.mxu1  ;;  %v1697_v56 = vadd.f32 %v610_v39, %v1646_v9 }
 0x20f   :  { %v805_v42 = vmul.f32 0.7978846, %v773_v59  ;;  %v774_v60 = vadd.f32 %v742_v34, %v1656_v16  ;;  %v743_v3 = vmul.f32 0.044715, %v711_v37  ;;  %v681_v49 = vmul.f32 %v1681_v38, %v1681_v38 }
 0x210   :  { %v757_v47 = vmul.f32 0.044715, %v725_v40  ;;  %v712_v48 = vmul.f32 %v680_v41, %v1673_v33  ;;  %v726_v29 = vmul.f32 %v694_v45, %v1676_v28  ;;  %v1700_v61 = vadd.f32 %v578_v35, %v1648_v10  ;;  %v580_v20 = vpop.f32.mrf.mxu0  ;;  %v616_v36 = vpop.f32.mrf.mxu1 }
 0x211   :  { %1306 = vtanh.f32 %v805_v42  ;;  %v806_v50 = vmul.f32 0.7978846, %v774_v60  ;;  %v775_v53 = vadd.f32 %v743_v3, %v1662_v25  ;;  %v713_v55 = vmul.f32 %v681_v49, %v1681_v38 }
 0x212   :  { %v789_v13 = vadd.f32 %v757_v47, %v1665_v26  ;;  %v744_v54 = vmul.f32 0.044715, %v712_v48  ;;  %v758_v58 = vmul.f32 0.044715, %v726_v29  ;;  %v695_v1 = vmul.f32 %v1697_v56, %v1697_v56  ;;  %v582_v24 = vpop.f32.mrf.mxu0  ;;  %v618_v21 = vpop.f32.mrf.mxu1 }
 0x213   :  { %1308 = vtanh.f32 %v806_v50  ;;  %v807_v57 = vmul.f32 0.7978846, %v775_v53  ;;  %v745_v14 = vmul.f32 0.044715, %v713_v55  ;;  %v682_v27 = vmul.f32 %v1700_v61, %v1700_v61 }
 0x214   :  { %v821_v62 = vmul.f32 0.7978846, %v789_v13  ;;  %v776_v63 = vadd.f32 %v744_v54, %v1673_v33  ;;  %v790_v0 = vadd.f32 %v758_v58, %v1676_v28  ;;  %v727_v5 = vmul.f32 %v695_v1, %v1697_v56  ;;  %v586_v3 = vpop.f32.mrf.mxu0 }
 0x215   :  { %1310 = vtanh.f32 %v807_v57  ;;  %v777_v43 = vadd.f32 %v745_v14, %v1681_v38  ;;  %v1711_v6 = vadd.f32 %v612_v4, %v1648_v10  ;;  %v1714_v7 = vadd.f32 %v580_v20, %v1646_v9 }
 0x216   :  { %1312 = vtanh.f32 %v821_v62  ;;  %v808_v2 = vmul.f32 0.7978846, %v776_v63  ;;  %v822_v17 = vmul.f32 0.7978846, %v790_v0  ;;  %v714_v8 = vmul.f32 %v682_v27, %v1700_v61  ;;  %v620_v62 = vpop.f32.mrf.mxu1 }
 0x217   :  { %v809_v23 = vmul.f32 0.7978846, %v777_v43  ;;  %v1718_v11 = vadd.f32 %v616_v36, %v1646_v9  ;;  %v759_v46 = vmul.f32 0.044715, %v727_v5  ;;  %v696_v15 = vmul.f32 %v1711_v6, %v1711_v6  ;;  %v588_v43 = vpop.f32.mrf.mxu0 }
 0x218   :  { %1314 = vtanh.f32 %v808_v2  ;;  %v746_v51 = vmul.f32 0.044715, %v714_v8  ;;  %v683_v18 = vmul.f32 %v1714_v7, %v1714_v7  ;;  %v1736_v52 = vadd.f32 %v582_v24, %v1648_v10 }
 0x219   :  { %1316 = vtanh.f32 %v822_v17  ;;  %v791_v31 = vadd.f32 %v759_v46, %v1697_v56  ;;  %v728_v32 = vmul.f32 %v696_v15, %v1711_v6  ;;  %v697_v22 = vmul.f32 %v1718_v11, %v1718_v11 }
 0x21a   :  { %1318 = vtanh.f32 %v809_v23  ;;  %v778_v12 = vadd.f32 %v746_v51, %v1700_v61  ;;  %v715_v16 = vmul.f32 %v683_v18, %v1714_v7  ;;  %v661_v59 = vmul.f32 0.5, %v1665_v26 }
 0x21b   :  { %v823_v25 = vmul.f32 0.7978846, %v791_v31  ;;  %v760_v34 = vmul.f32 0.044715, %v728_v32  ;;  %v729_v37 = vmul.f32 %v697_v22, %v1718_v11  ;;  %v684_v42 = vmul.f32 %v1736_v52, %v1736_v52 }
 0x21c   :  { %v810_v40 = vmul.f32 0.7978846, %v778_v12  ;;  %v747_v41 = vmul.f32 0.044715, %v715_v16  ;;  %v1743_v60 = vadd.f32 %v618_v21, %v1648_v10  ;;  %v648_v49 = vmul.f32 0.5, %v1673_v33 }
 0x21d   :  { %1320 = vtanh.f32 %v823_v25  ;;  %v792_v47 = vadd.f32 %v760_v34, %v1711_v6  ;;  %v761_v48 = vmul.f32 0.044715, %v729_v37  ;;  %v716_v50 = vmul.f32 %v684_v42, %v1736_v52  ;;  %v590_v37 = vpop.f32.mrf.mxu0 }
 0x21e   :  { %v1307_v39 = vpop.eup %1306  ;;  %1322 = vtanh.f32 %v810_v40  ;;  %v779_v35 = vadd.f32 %v747_v41, %v1714_v7  ;;  %v1751_v13 = vadd.f32 %v586_v3, %v1646_v9  ;;  %v662_v55 = vmul.f32 0.5, %v1676_v28 }
 0x21f   :  { %v869_v45 = vadd.f32 1.0, %v1307_v39  ;;  %v824_v29 = vmul.f32 0.7978846, %v792_v47  ;;  %v793_v4 = vadd.f32 %v761_v48, %v1718_v11  ;;  %v748_v58 = vmul.f32 0.044715, %v716_v50 }
 0x220   :  { %v1309_v26 = vpop.eup %1308  ;;  %v811_v57 = vmul.f32 0.7978846, %v779_v35  ;;  %v698_v33 = vmul.f32 %v1743_v60, %v1743_v60  ;;  %v649_v5 = vmul.f32 0.5, %v1681_v38  ;;  %v685_v23 = vmul.f32 %v1751_v13, %v1751_v13 }
 0x221   :  { %v870_v53 = vadd.f32 1.0, %v1309_v26  ;;  %v901_v14 = vmul.f32 %v869_v45, %v645_v44  ;;  %1324 = vtanh.f32 %v824_v29  ;;  %v825_v0 = vmul.f32 0.7978846, %v793_v4  ;;  %v622_v44 = vpop.f32.mrf.mxu1 }
 0x222   :  { %v1311_v54 = vpop.eup %1310  ;;  %1326 = vtanh.f32 %v811_v57  ;;  %v780_v36 = vadd.f32 %v748_v58, %v1736_v52  ;;  %v730_v2 = vmul.f32 %v698_v33, %v1743_v60  ;;  %v717_v51 = vmul.f32 %v685_v23, %v1751_v13 }
 0x223   :  { %v1313_v63 = vpop.eup %1312  ;;  %v902_v20 = vmul.f32 %v870_v53, %v646_v19  ;;  %v871_v1 = vadd.f32 1.0, %v1311_v54  ;;  %1328 = vtanh.f32 %v825_v0  ;;  %v1766_v18 = vadd.f32 %v620_v62, %v1646_v9  ;;  %v626_v3 = vpop.f32.mrf.mxu1 }
 0x224   :  { %v885_v17 = vadd.f32 1.0, %v1313_v63  ;;  %v812_v15 = vmul.f32 0.7978846, %v780_v36  ;;  %v762_v24 = vmul.f32 0.044715, %v730_v2  ;;  %v1769_v38 = vadd.f32 %v588_v43, %v1648_v10  ;;  %v592_v36 = vpop.f32.mrf.mxu0 }
 0x225   :  { %v1315_v27 = vpop.eup %1314  ;;  %v1123_v28 = vpack.c.bf16 %v902_v20, %v901_v14  ;;  %v903_v31 = vmul.f32 %v871_v1, %v1727_v30  ;;  %v749_v25 = vmul.f32 0.044715, %v717_v51  ;;  %v699_v34 = vmul.f32 %v1766_v18, %v1766_v18 }
 0x226   :  { %v1317_v8 = vpop.eup %1316  ;;  %v872_v46 = vadd.f32 1.0, %v1315_v27  ;;  %1330 = vtanh.f32 %v812_v15  ;;  %v794_v22 = vadd.f32 %v762_v24, %v1743_v60  ;;  %v917_v12 = vmul.f32 %v885_v17, %v661_v59 }
 0x227   :  { %1029 = vst [vmem:[%s1962_s5] sm:$0xff] %v1123_v28  ;;  %v886_v19 = vadd.f32 1.0, %v1317_v8  ;;  %v1319_v21 = vpop.eup %1318  ;;  %v663_v40 = vmul.f32 0.5, %v1697_v56  ;;  %v650_v41 = vmul.f32 0.5, %v1700_v61  ;;  %v781_v45 = vadd.f32 %v749_v25, %v1751_v13  ;;  %v628_v28 = vpop.f32.mrf.mxu1 }
 0x228   :  { %v904_v32 = vmul.f32 %v872_v46, %v648_v49  ;;  %v826_v42 = vmul.f32 0.7978846, %v794_v22  ;;  %v731_v47 = vmul.f32 %v699_v34, %v1766_v18  ;;  %v686_v59 = vmul.f32 %v1769_v38, %v1769_v38  ;;  %v596_v22 = vpop.f32.mrf.mxu0 }
 0x229   :  { %v918_v16 = vmul.f32 %v886_v19, %v662_v55  ;;  %v873_v26 = vadd.f32 1.0, %v1319_v21  ;;  %v1785_v56 = vadd.f32 %v622_v44, %v1648_v10  ;;  %v1788_v61 = vadd.f32 %v590_v37, %v1646_v9  ;;  %v630_v25 = vpop.f32.mrf.mxu1 }
 0x22a   :  { %v1124_v39 = vpack.c.bf16 %v904_v32, %v903_v31  ;;  %v1321_v48 = vpop.eup %1320  ;;  %1332 = vtanh.f32 %v826_v42  ;;  %v813_v35 = vmul.f32 0.7978846, %v781_v45  ;;  %v763_v50 = vmul.f32 0.044715, %v731_v47 }
 0x22b   :  { %v1131_v30 = vpack.c.bf16 %v918_v16, %v917_v12  ;;  %v1323_v49 = vpop.eup %1322  ;;  %v718_v53 = vmul.f32 %v686_v59, %v1769_v38  ;;  %v1795_v29 = vadd.f32 %v626_v3, %v1646_v9  ;;  %v664_v54 = vmul.f32 0.5, %v1711_v6 }
 0x22c   :  { %1030 = vst [vmem:[%s1962_s5 + $0x8] sm:$0xff] %v1124_v39  ;;  %v874_v4 = vadd.f32 1.0, %v1323_v49  ;;  %v651_v55 = vmul.f32 0.5, %v1714_v7  ;;  %v700_v57 = vmul.f32 %v1785_v56, %v1785_v56  ;;  %v887_v58 = vadd.f32 1.0, %v1321_v48 }
 0x22d   :  { %1037 = vst [vmem:[%s1962_s5 + $0x40] sm:$0xff] %v1131_v30  ;;  %1334 = vtanh.f32 %v813_v35  ;;  %v795_v33 = vadd.f32 %v763_v50, %v1766_v18  ;;  %v750_v62 = vmul.f32 0.044715, %v718_v53  ;;  %v905_v14 = vmul.f32 %v873_v26, %v649_v5  ;;  %v598_v50 = vpop.f32.mrf.mxu0  ;;  %v632_v53 = vpop.f32.mrf.mxu1 }
 0x22e   :  { %v1325_v63 = vpop.eup %1324  ;;  %v906_v20 = vmul.f32 %v874_v4, %v650_v41  ;;  %v732_v0 = vmul.f32 %v700_v57, %v1785_v56  ;;  %v687_v1 = vmul.f32 %v1788_v61, %v1788_v61  ;;  %v701_v27 = vmul.f32 %v1795_v29, %v1795_v29 }
 0x22f   :  { %v1327_v6 = vpop.eup %1326  ;;  %v888_v2 = vadd.f32 1.0, %v1325_v63  ;;  %v827_v7 = vmul.f32 0.7978846, %v795_v33  ;;  %v782_v43 = vadd.f32 %v750_v62, %v1769_v38  ;;  %v665_v23 = vmul.f32 0.5, %v1718_v11 }
 0x230   :  { %v1125_v17 = vpack.c.bf16 %v906_v20, %v905_v14  ;;  %v764_v5 = vmul.f32 0.044715, %v732_v0  ;;  %v719_v8 = vmul.f32 %v687_v1, %v1788_v61  ;;  %v1329_v46 = vpop.eup %1328  ;;  %v919_v15 = vmul.f32 %v887_v58, %v663_v40 }
 0x231   :  { %v920_v24 = vmul.f32 %v888_v2, %v664_v54  ;;  %v875_v44 = vadd.f32 1.0, %v1327_v6  ;;  %v814_v19 = vmul.f32 0.7978846, %v782_v43  ;;  %1336 = vtanh.f32 %v827_v7 }
 0x232   :  { %1031 = vst [vmem:[%s1962_s5 + $0x10] sm:$0xff] %v1125_v17  ;;  %v796_v51 = vadd.f32 %v764_v5, %v1785_v56  ;;  %v751_v31 = vmul.f32 0.044715, %v719_v8  ;;  %v733_v32 = vmul.f32 %v701_v27, %v1795_v29  ;;  %v652_v12 = vmul.f32 0.5, %v1736_v52  ;;  %v636_v27 = vpop.f32.mrf.mxu1  ;;  %v600_v8 = vpop.f32.mrf.mxu0 }
 0x233   :  { %v1331_v11 = vpop.eup %1330  ;;  %v1132_v21 = vpack.c.bf16 %v920_v24, %v919_v15  ;;  %1338 = vtanh.f32 %v814_v19  ;;  %v1817_v16 = vadd.f32 %v592_v36, %v1648_v10  ;;  %v889_v41 = vadd.f32 1.0, %v1329_v46 }
 0x234   :  { %v876_v34 = vadd.f32 1.0, %v1331_v11  ;;  %v828_v37 = vmul.f32 0.7978846, %v796_v51  ;;  %v783_v39 = vadd.f32 %v751_v31, %v1788_v61  ;;  %v765_v40 = vmul.f32 0.044715, %v733_v32 }
 0x235   :  { %1038 = vst [vmem:[%s1962_s5 + $0x48] sm:$0xff] %v1132_v21  ;;  %v688_v42 = vmul.f32 %v1817_v16, %v1817_v16  ;;  %v1826_v52 = vadd.f32 %v628_v28, %v1648_v10  ;;  %v1829_v3 = vadd.f32 %v596_v22, %v1646_v9  ;;  %v907_v30 = vmul.f32 %v875_v44, %v651_v55 }
 0x236   :  { %v908_v45 = vmul.f32 %v876_v34, %v652_v12  ;;  %1340 = vtanh.f32 %v828_v37  ;;  %v797_v47 = vadd.f32 %v765_v40, %v1795_v29  ;;  %v666_v48 = vmul.f32 0.5, %v1743_v60  ;;  %v638_v12 = vpop.f32.mrf.mxu1 }
 0x237   :  { %v1333_v59 = vpop.eup %1332  ;;  %v815_v26 = vmul.f32 0.7978846, %v783_v39  ;;  %v720_v49 = vmul.f32 %v688_v42, %v1817_v16  ;;  %v702_v35 = vmul.f32 %v1826_v52, %v1826_v52  ;;  %v653_v57 = vmul.f32 0.5, %v1751_v13 }
 0x238   :  { %v1126_v4 = vpack.c.bf16 %v908_v45, %v907_v30  ;;  %v890_v54 = vadd.f32 1.0, %v1333_v59  ;;  %v829_v55 = vmul.f32 0.7978846, %v797_v47  ;;  %v689_v62 = vmul.f32 %v1829_v3, %v1829_v3 }
 0x239   :  { %v752_v58 = vmul.f32 0.044715, %v720_v49  ;;  %v734_v33 = vmul.f32 %v702_v35, %v1826_v52  ;;  %v1841_v60 = vadd.f32 %v630_v25, %v1646_v9  ;;  %v921_v14 = vmul.f32 %v889_v41, %v665_v23  ;;  %v602_v35 = vpop.f32.mrf.mxu0 }
 0x23a   :  { %v1335_v63 = vpop.eup %1334  ;;  %1032 = vst [vmem:[%s1962_s5 + $0x18] sm:$0xff] %v1126_v4  ;;  %v922_v20 = vmul.f32 %v890_v54, %v666_v48  ;;  %v1847_v0 = vadd.f32 %v598_v50, %v1648_v10  ;;  %v1850_v13 = vadd.f32 %v632_v53, %v1648_v10  ;;  %1342 = vtanh.f32 %v815_v26  ;;  %v640_v50 = vpop.f32.mrf.mxu1 }
 0x23b   :  { %v784_v1 = vadd.f32 %v752_v58, %v1817_v16  ;;  %v766_v36 = vmul.f32 0.044715, %v734_v33  ;;  %v721_v6 = vmul.f32 %v689_v62, %v1829_v3  ;;  %v667_v7 = vmul.f32 0.5, %v1766_v18 }
 0x23c   :  { %v1133_v2 = vpack.c.bf16 %v922_v20, %v921_v14  ;;  %1344 = vtanh.f32 %v829_v55  ;;  %v703_v43 = vmul.f32 %v1841_v60, %v1841_v60  ;;  %v877_v28 = vadd.f32 1.0, %v1335_v63 }
 0x23d   :  { %v816_v17 = vmul.f32 0.7978846, %v784_v1  ;;  %v798_v23 = vadd.f32 %v766_v36, %v1826_v52  ;;  %v753_v5 = vmul.f32 0.044715, %v721_v6  ;;  %v654_v46 = vmul.f32 0.5, %v1769_v38  ;;  %v642_v36 = vpop.f32.mrf.mxu1 }
 0x23e   :  { %1039 = vst [vmem:[%s1962_s5 + $0x50] sm:$0xff] %v1133_v2  ;;  %v735_v15 = vmul.f32 %v703_v43, %v1841_v60  ;;  %v690_v18 = vmul.f32 %v1847_v0, %v1847_v0  ;;  %v704_v24 = vmul.f32 %v1850_v13, %v1850_v13  ;;  %v1337_v44 = vpop.eup %1336  ;;  %v668_v19 = vmul.f32 0.5, %v1785_v56 }
 0x23f   :  { %1346 = vtanh.f32 %v816_v17  ;;  %v830_v51 = vmul.f32 0.7978846, %v798_v23  ;;  %v785_v31 = vadd.f32 %v753_v5, %v1829_v3  ;;  %v1872_v21 = vadd.f32 %v600_v8, %v1646_v9 }
 0x240   :  { %v1339_v32 = vpop.eup %1338  ;;  %v767_v22 = vmul.f32 0.044715, %v735_v15  ;;  %v722_v11 = vmul.f32 %v690_v18, %v1847_v0  ;;  %v736_v38 = vmul.f32 %v704_v24, %v1850_v13  ;;  %v909_v25 = vmul.f32 %v877_v28, %v653_v57 }
 0x241   :  { %v878_v34 = vadd.f32 1.0, %v1339_v32  ;;  %1348 = vtanh.f32 %v830_v51  ;;  %v817_v37 = vmul.f32 0.7978846, %v785_v31  ;;  %v891_v39 = vadd.f32 1.0, %v1337_v44 }
 0x242   :  { %v799_v56 = vadd.f32 %v767_v22, %v1841_v60  ;;  %v754_v40 = vmul.f32 0.044715, %v722_v11  ;;  %v768_v41 = vmul.f32 0.044715, %v736_v38  ;;  %v691_v45 = vmul.f32 %v1872_v21, %v1872_v21 }
 0x243   :  { %v1341_v42 = vpop.eup %1340  ;;  %v910_v30 = vmul.f32 %v878_v34, %v654_v46  ;;  %1350 = vtanh.f32 %v817_v37  ;;  %v1878_v47 = vadd.f32 %v636_v27, %v1646_v9  ;;  %v923_v57 = vmul.f32 %v891_v39, %v667_v7 }
 0x244   :  { %v892_v59 = vadd.f32 1.0, %v1341_v42  ;;  %v831_v48 = vmul.f32 0.7978846, %v799_v56  ;;  %v786_v26 = vadd.f32 %v754_v40, %v1847_v0  ;;  %v800_v49 = vadd.f32 %v768_v41, %v1850_v13 }
 0x245   :  { %v1127_v53 = vpack.c.bf16 %v910_v30, %v909_v25  ;;  %v723_v4 = vmul.f32 %v691_v45, %v1872_v21  ;;  %v705_v54 = vmul.f32 %v1878_v47, %v1878_v47  ;;  %v1890_v14 = vadd.f32 %v602_v35, %v1648_v10 }
 0x246   :  { %v924_v55 = vmul.f32 %v892_v59, %v668_v19  ;;  %1352 = vtanh.f32 %v831_v48  ;;  %v818_v58 = vmul.f32 0.7978846, %v786_v26  ;;  %v832_v33 = vmul.f32 0.7978846, %v800_v49 }
 0x247   :  { %1033 = vst [vmem:[%s1962_s5 + $0x20] sm:$0xff] %v1127_v53  ;;  %v755_v62 = vmul.f32 0.044715, %v723_v4  ;;  %v737_v63 = vmul.f32 %v705_v54, %v1878_v47  ;;  %v1343_v20 = vpop.eup %1342  ;;  %v655_v43 = vmul.f32 0.5, %v1788_v61  ;;  %v692_v27 = vmul.f32 %v1890_v14, %v1890_v14 }
 0x248   :  { %v1134_v1 = vpack.c.bf16 %v924_v55, %v923_v57  ;;  %1354 = vtanh.f32 %v818_v58  ;;  %v1900_v28 = vadd.f32 %v638_v12, %v1648_v10  ;;  %v1903_v17 = vadd.f32 %v640_v50, %v1646_v9 }
 0x249   :  { %v1345_v6 = vpop.eup %1344  ;;  %1356 = vtanh.f32 %v832_v33  ;;  %v787_v2 = vadd.f32 %v755_v62, %v1872_v21  ;;  %v769_v7 = vmul.f32 0.044715, %v737_v63  ;;  %v879_v23 = vadd.f32 1.0, %v1343_v20 }
 0x24a   :  { %1040 = vst [vmem:[%s1962_s5 + $0x58] sm:$0xff] %v1134_v1  ;;  %v669_v5 = vmul.f32 0.5, %v1795_v29  ;;  %v1908_v46 = vadd.f32 %v642_v36, %v1648_v10  ;;  %v656_v61 = vmul.f32 0.5, %v1817_v16  ;;  %v724_v24 = vmul.f32 %v692_v27, %v1890_v14 }
 0x24b   :  { %v801_v8 = vadd.f32 %v769_v7, %v1878_v47  ;;  %v819_v18 = vmul.f32 0.7978846, %v787_v2  ;;  %v706_v44 = vmul.f32 %v1900_v28, %v1900_v28  ;;  %v893_v19 = vadd.f32 1.0, %v1345_v6 }
 0x24c   :  { %v1347_v15 = vpop.eup %1346  ;;  %v670_v51 = vmul.f32 0.5, %v1826_v52  ;;  %v707_v29 = vmul.f32 %v1903_v17, %v1903_v17  ;;  %v756_v10 = vmul.f32 0.044715, %v724_v24  ;;  %v708_v16 = vmul.f32 %v1908_v46, %v1908_v46 }
 0x24d   :  { %v880_v9 = vadd.f32 1.0, %v1347_v15  ;;  %v833_v32 = vmul.f32 0.7978846, %v801_v8  ;;  %v738_v22 = vmul.f32 %v706_v44, %v1900_v28  ;;  %v911_v11 = vmul.f32 %v879_v23, %v655_v43 }
 0x24e   :  { %v1349_v31 = vpop.eup %1348  ;;  %v739_v25 = vmul.f32 %v707_v29, %v1903_v17  ;;  %1358 = vtanh.f32 %v819_v18  ;;  %v788_v52 = vadd.f32 %v756_v10, %v1890_v14  ;;  %v740_v39 = vmul.f32 %v708_v16, %v1908_v46 }
 0x24f   :  { %v912_v38 = vmul.f32 %v880_v9, %v656_v61  ;;  %v894_v12 = vadd.f32 1.0, %v1349_v31  ;;  %v770_v37 = vmul.f32 0.044715, %v738_v22  ;;  %v925_v56 = vmul.f32 %v893_v19, %v669_v5 }
 0x250   :  { %v1351_v34 = vpop.eup %1350  ;;  %v771_v42 = vmul.f32 0.044715, %v739_v25  ;;  %1360 = vtanh.f32 %v833_v32  ;;  %v820_v30 = vmul.f32 0.7978846, %v788_v52  ;;  %v772_v59 = vmul.f32 0.044715, %v740_v39 }
 0x251   :  { %v1128_v40 = vpack.c.bf16 %v912_v38, %v911_v11  ;;  %v926_v41 = vmul.f32 %v894_v12, %v670_v51  ;;  %v802_v45 = vadd.f32 %v770_v37, %v1900_v28  ;;  %v881_v35 = vadd.f32 1.0, %v1351_v34 }
 0x252   :  { %v803_v49 = vadd.f32 %v771_v42, %v1903_v17  ;;  %1362 = vtanh.f32 %v820_v30  ;;  %v804_v53 = vadd.f32 %v772_v59, %v1908_v46  ;;  %v657_v54 = vmul.f32 0.5, %v1829_v3 }
 0x253   :  { %v1353_v48 = vpop.eup %1352  ;;  %1034 = vst [vmem:[%s1962_s5 + $0x28] sm:$0xff] %v1128_v40  ;;  %v1135_v26 = vpack.c.bf16 %v926_v41, %v925_v56  ;;  %v834_v50 = vmul.f32 0.7978846, %v802_v45  ;;  %v658_v33 = vmul.f32 0.5, %v1847_v0  ;;  %v671_v20 = vmul.f32 0.5, %v1841_v60 }
 0x254   :  { %v895_v57 = vadd.f32 1.0, %v1353_v48  ;;  %v835_v55 = vmul.f32 0.7978846, %v803_v49  ;;  %v836_v63 = vmul.f32 0.7978846, %v804_v53  ;;  %v672_v1 = vmul.f32 0.5, %v1850_v13 }
 0x255   :  { %v1355_v4 = vpop.eup %1354  ;;  %1041 = vst [vmem:[%s1962_s5 + $0x60] sm:$0xff] %v1135_v26  ;;  %1364 = vtanh.f32 %v834_v50  ;;  %v913_v6 = vmul.f32 %v881_v35, %v657_v54  ;;  %v659_v5 = vmul.f32 0.5, %v1872_v21  ;;  %v660_v15 = vmul.f32 0.5, %v1890_v14 }
 0x256   :  { %v1357_v58 = vpop.eup %1356  ;;  %v882_v62 = vadd.f32 1.0, %v1355_v4  ;;  %1366 = vtanh.f32 %v835_v55  ;;  %v927_v7 = vmul.f32 %v895_v57, %v671_v20  ;;  %v673_v24 = vmul.f32 0.5, %v1878_v47 }
 0x257   :  { %v896_v36 = vadd.f32 1.0, %v1357_v58  ;;  %1368 = vtanh.f32 %v836_v63  ;;  %v674_v51 = vmul.f32 0.5, %v1900_v28  ;;  %v675_v32 = vmul.f32 0.5, %v1903_v17 }
 0x258   :  { %v914_v2 = vmul.f32 %v882_v62, %v658_v33  ;;  %v676_v22 = vmul.f32 0.5, %v1908_v46 }
 0x259   :  { %v928_v43 = vmul.f32 %v896_v36, %v672_v1 }
 0x25a   :  { %v1129_v3 = vpack.c.bf16 %v914_v2, %v913_v6 }
 0x25b   :  { %v1136_v27 = vpack.c.bf16 %v928_v43, %v927_v7  ;;  %v1359_v0 = vpop.eup %1358 }
 0x25c   :  { %1035 = vst [vmem:[%s1962_s5 + $0x30] sm:$0xff] %v1129_v3  ;;  %v883_v13 = vadd.f32 1.0, %v1359_v0 }
 0x25d   :  { %1042 = vst [vmem:[%s1962_s5 + $0x68] sm:$0xff] %v1136_v27  ;;  %v1361_v60 = vpop.eup %1360 }
 0x25e   :  { %v897_v8 = vadd.f32 1.0, %v1361_v60  ;;  %v915_v19 = vmul.f32 %v883_v13, %v659_v5 }
 0x25f   :  { %v1363_v23 = vpop.eup %1362 }
 0x260   :  { %v884_v61 = vadd.f32 1.0, %v1363_v23  ;;  %v929_v21 = vmul.f32 %v897_v8, %v673_v24 }
 0x262   :  { %v1365_v18 = vpop.eup %1364  ;;  %v916_v9 = vmul.f32 %v884_v61, %v660_v15 }
 0x263   :  { %v1367_v44 = vpop.eup %1366  ;;  %v898_v29 = vadd.f32 1.0, %v1365_v18 }
 0x264   :  { %v1369_v31 = vpop.eup %1368  ;;  %v899_v10 = vadd.f32 1.0, %v1367_v44  ;;  %v1130_v16 = vpack.c.bf16 %v916_v9, %v915_v19 }
 0x265   :  { %v930_v11 = vmul.f32 %v898_v29, %v674_v51  ;;  %v900_v14 = vadd.f32 1.0, %v1369_v31 }
 0x266   :  { %1036 = vst [vmem:[%s1962_s5 + $0x38] sm:$0xff] %v1130_v16  ;;  %v931_v38 = vmul.f32 %v899_v10, %v675_v32 }
 0x267   :  { %v1137_v47 = vpack.c.bf16 %v930_v11, %v929_v21  ;;  %v932_v12 = vmul.f32 %v900_v14, %v676_v22 }
 0x269   :  { %1043 = vst [vmem:[%s1962_s5 + $0x70] sm:$0xff] %v1137_v47  ;;  %v1138_v28 = vpack.c.bf16 %v932_v12, %v931_v38 }
 0x26b   :  { %1044 = vst [vmem:[%s1962_s5 + $0x78] sm:$0xff] %v1138_v28 }

// kernel: _lambda_.14
= control target key start
LH: loop header
LB: loop body
LE: loop exit
PB: predicated region body
PF: predicated region fallthrough
CT: control target
= control target key end

     0   :  { %s1042_s1 = inlined_call_operand.vmem [shape: bf16[256,128], index: 1, kind: input, shape index: {}]   ;;  %s1043_s0 = inlined_call_operand.vmem [shape: bf16[128,256], index: 0, kind: input, shape index: {}]   ;;  %s1044_s2 = inlined_call_operand.vmem [shape: f32[1,128], index: 2, kind: input, shape index: {}]   ;;  %s1045_s3 = inlined_call_operand.vmem [shape: bf16[128,128], index: 3, kind: input, shape index: {}]   ;;  %s1046_s4 = inlined_call_operand.vmem [shape: bf16[128,128], index: 4, kind: output, shape index: {}]  }
   0x1   :  { %v812_v0 = vld [vmem:[%s1042_s1 + $0x78] sm:$0xff]   ;;  %v814_v2 = vld [vmem:[%s1042_s1 + $0x70] sm:$0xff]   ;;  %v816_v4 = vld [vmem:[%s1042_s1 + $0x68] sm:$0xff]  }
   0x2   :  { %v813_v1 = vld [vmem:[%s1042_s1 + $0x38] sm:$0xff]   ;;  %732 = vmatprep.subr.bf16.mxu0 %v812_v0  ;;  %796 = vmatprep.subr.bf16.mxu1 %v812_v0  ;;  %v815_v3 = vld [vmem:[%s1042_s1 + $0x30] sm:$0xff]   ;;  %v817_v5 = vld [vmem:[%s1042_s1 + $0x28] sm:$0xff]  }
   0x3   :  { %733 = vmatpush3.bf16.msra.mxu0 %v813_v1  ;;  %804 = vmatpush3.bf16.msra.mxu1 %v813_v1  ;;  %v818_v6 = vld [vmem:[%s1042_s1 + $0x60] sm:$0xff]   ;;  %v820_v8 = vld [vmem:[%s1042_s1 + $0x58] sm:$0xff]   ;;  %v822_v10 = vld [vmem:[%s1042_s1 + $0x50] sm:$0xff]  }
   0x4   :  { %734 = vmatprep.subr.bf16.mxu0 %v814_v2  ;;  %797 = vmatprep.subr.bf16.mxu1 %v814_v2  ;;  %v819_v7 = vld [vmem:[%s1042_s1 + $0x20] sm:$0xff]   ;;  %v821_v9 = vld [vmem:[%s1042_s1 + $0x18] sm:$0xff]   ;;  %v823_v13 = vld [vmem:[%s1042_s1 + $0x10] sm:$0xff]  }
   0x5   :  { %v830_v11 = vld [vmem:[%s1043_s0 + $0x4] ss:$8 sps:$4 sm:$0xff]   ;;  %v828_v18 = vld [vmem:[%s1043_s0] ss:$8 sps:$4 sm:$0xff]   ;;  %v834_v20 = vld [vmem:[%s1043_s0 + $0x14] ss:$8 sps:$4 sm:$0xff]  }
   0x6   :  { %v833_v12 = vld [vmem:[%s1043_s0 + $0x44] ss:$8 sps:$4 sm:$0xff]   ;;  %310 = vmatprep.mubr.bf16.mxu0 %v830_v11  ;;  %v831_v19 = vld [vmem:[%s1043_s0 + $0x40] ss:$8 sps:$4 sm:$0xff]   ;;  %v836_v21 = vld [vmem:[%s1043_s0 + $0x54] ss:$8 sps:$4 sm:$0xff]  }
   0x7   :  { %735 = vmatpush3.bf16.msra.mxu0 %v815_v3  ;;  %805 = vmatpush3.bf16.msra.mxu1 %v815_v3  ;;  %v824_v14 = vld [vmem:[%s1042_s1 + $0x48] sm:$0xff]   ;;  %v826_v16 = vld [vmem:[%s1042_s1 + $0x40] sm:$0xff]   ;;  %v838_v22 = vld [vmem:[%s1043_s0 + $0x10] ss:$8 sps:$4 sm:$0xff]  }
   0x8   :  { %736 = vmatprep.subr.bf16.mxu0 %v816_v4  ;;  %798 = vmatprep.subr.bf16.mxu1 %v816_v4  ;;  %v825_v15 = vld [vmem:[%s1042_s1 + $0x8] sm:$0xff]   ;;  %v827_v17 = vld [vmem:[%s1042_s1] sm:$0xff]   ;;  %v839_v23 = vld [vmem:[%s1043_s0 + $0x50] ss:$8 sps:$4 sm:$0xff]  }
   0x9   :  { %342 = vmatprep.mubr.bf16.mxu1 %v833_v12  ;;  %v840_v24 = vld [vmem:[%s1043_s0 + $0x24] ss:$8 sps:$4 sm:$0xff]   ;;  %v844_v26 = vld [vmem:[%s1043_s0 + $0x20] ss:$8 sps:$4 sm:$0xff]   ;;  %v846_v28 = vld [vmem:[%s1043_s0 + $0x34] ss:$8 sps:$4 sm:$0xff]  }
   0xa   :  { %v842_v25 = vld [vmem:[%s1043_s0 + $0x64] ss:$8 sps:$4 sm:$0xff]   ;;  %v845_v27 = vld [vmem:[%s1043_s0 + $0x60] ss:$8 sps:$4 sm:$0xff]   ;;  %v848_v29 = vld [vmem:[%s1043_s0 + $0x74] ss:$8 sps:$4 sm:$0xff]  }
   0xb   :  { %737 = vmatpush3.bf16.msra.mxu0 %v817_v5  ;;  %806 = vmatpush3.bf16.msra.mxu1 %v817_v5  ;;  %v850_v30 = vld [vmem:[%s1043_s0 + $0x30] ss:$8 sps:$4 sm:$0xff]   ;;  %v976_v37 = vld [vmem:[%s1044_s2] ss:$0 sm:$0xff]  ;;  %v718_v0 = vld [vmem:[%s1045_s3 + $0x8] sm:$0xff]  }
   0xc   :  { %738 = vmatprep.subr.bf16.mxu0 %v818_v6  ;;  %799 = vmatprep.subr.bf16.mxu1 %v818_v6  ;;  %v851_v31 = vld [vmem:[%s1043_s0 + $0x70] ss:$8 sps:$4 sm:$0xff]   ;;  %v647_v38 = vld [vmem:[%s1045_s3] sm:$0xff]   ;;  %v722_v2 = vld [vmem:[%s1045_s3 + $0x28] sm:$0xff]  }
   0xd   :  { %v721_v40 = vld [vmem:[%s1045_s3 + $0x20] sm:$0xff]   ;;  %v648_v44 = vunpack.c.l.bf16 %v647_v38  ;;  %v649_v50 = vunpack.c.h.bf16 %v647_v38 }
   0xe   :  { %v664_v46 = vunpack.c.l.bf16 %v721_v40  ;;  %v665_v52 = vunpack.c.h.bf16 %v721_v40 }
   0xf   :  { %739 = vmatpush3.bf16.msra.mxu0 %v819_v7  ;;  %807 = vmatpush3.bf16.msra.mxu1 %v819_v7 }
  0x10   :  { %740 = vmatprep.subr.bf16.mxu0 %v820_v8  ;;  %800 = vmatprep.subr.bf16.mxu1 %v820_v8  ;;  %v652_v8 = vunpack.c.l.bf16 %v718_v0 }
  0x13   :  { %741 = vmatpush3.bf16.msra.mxu0 %v821_v9  ;;  %808 = vmatpush3.bf16.msra.mxu1 %v821_v9 }
  0x14   :  { %742 = vmatprep.subr.bf16.mxu0 %v822_v10  ;;  %801 = vmatprep.subr.bf16.mxu1 %v822_v10  ;;  %v668_v10 = vunpack.c.l.bf16 %v722_v2 }
  0x17   :  { %743 = vmatpush3.bf16.msra.mxu0 %v823_v13  ;;  %809 = vmatpush3.bf16.msra.mxu1 %v823_v13 }
  0x18   :  { %744 = vmatprep.subr.bf16.mxu0 %v824_v14  ;;  %802 = vmatprep.subr.bf16.mxu1 %v824_v14  ;;  %v653_v14 = vunpack.c.h.bf16 %v718_v0 }
  0x1b   :  { %745 = vmatpush3.bf16.msra.mxu0 %v825_v15  ;;  %810 = vmatpush3.bf16.msra.mxu1 %v825_v15 }
  0x1c   :  { %746 = vmatprep.subr.bf16.mxu0 %v826_v16  ;;  %803 = vmatprep.subr.bf16.mxu1 %v826_v16  ;;  %v669_v16 = vunpack.c.h.bf16 %v722_v2 }
  0x1f   :  { %747 = vmatpush3.bf16.msra.mxu0 %v827_v17  ;;  %811 = vmatpush3.bf16.msra.mxu1 %v827_v17 }
  0x22   :  { %311 = vmatmul.mubr.bf16.vlgmr.msra.gmra.mxu0 %v828_v18  ;;  %343 = vmatmul.mubr.bf16.vlgmr.msra.gmra.mxu1 %v831_v19 }
  0x23   :  { %318 = vmatprep.mubr.bf16.mxu0 %v834_v20  ;;  %350 = vmatprep.mubr.bf16.mxu1 %v836_v21 }
  0x2a   :  { %319 = vmatmul.mubr.bf16.gmra.mxu0 %v838_v22  ;;  %351 = vmatmul.mubr.bf16.gmra.mxu1 %v839_v23 }
  0x2b   :  { %326 = vmatprep.mubr.bf16.mxu0 %v840_v24  ;;  %358 = vmatprep.mubr.bf16.mxu1 %v842_v25 }
  0x32   :  { %327 = vmatmul.mubr.bf16.gmra.mxu0 %v844_v26  ;;  %359 = vmatmul.mubr.bf16.gmra.mxu1 %v845_v27 }
  0x33   :  { %334 = vmatprep.mubr.bf16.mxu0 %v846_v28  ;;  %366 = vmatprep.mubr.bf16.mxu1 %v848_v29  ;;  %v719_v28 = vld [vmem:[%s1045_s3 + $0x10] sm:$0xff]  }
  0x3a   :  { %335 = vmatmul.mubr.bf16.gmra.mxu0 %v850_v30  ;;  %367 = vmatmul.mubr.bf16.gmra.mxu1 %v851_v31  ;;  %v723_v30 = vld [vmem:[%s1045_s3 + $0x30] sm:$0xff]  }
  0xe2   :  { %v748_v32 = vpop.f32.mrf.mxu0  ;;  %v772_v33 = vpop.f32.mrf.mxu1 }
  0xe4   :  { %v749_v34 = vpop.f32.mrf.mxu0  ;;  %v773_v35 = vpop.f32.mrf.mxu1 }
  0xe5   :  { %v750_v36 = vadd.f32 %v749_v34, %v748_v32  ;;  %v774_v39 = vadd.f32 %v773_v35, %v772_v33 }
  0xe6   :  { %v751_v41 = vpop.f32.mrf.mxu0  ;;  %v775_v42 = vpop.f32.mrf.mxu1 }
  0xe7   :  { %v433_v43 = vadd.f32 %v750_v36, %v976_v37  ;;  %v441_v45 = vadd.f32 %v774_v39, %v976_v37  ;;  %v656_v36 = vunpack.c.l.bf16 %v719_v28  ;;  %v672_v39 = vunpack.c.l.bf16 %v723_v30 }
  0xe8   :  { %v752_v47 = vpop.f32.mrf.mxu0  ;;  %v776_v48 = vpop.f32.mrf.mxu1 }
  0xe9   :  { %v753_v49 = vadd.f32 %v752_v47, %v751_v41  ;;  %v777_v51 = vadd.f32 %v776_v48, %v775_v42  ;;  %v481_v57 = vadd.f32 %v648_v44, %v433_v43  ;;  %v489_v58 = vadd.f32 %v664_v46, %v441_v45 }
  0xea   :  { %v754_v53 = vpop.f32.mrf.mxu0  ;;  %v778_v54 = vpop.f32.mrf.mxu1  ;;  %v657_v43 = vunpack.c.h.bf16 %v719_v28  ;;  %v673_v45 = vunpack.c.h.bf16 %v723_v30 }
  0xeb   :  { %v434_v55 = vadd.f32 %v753_v49, %v976_v37  ;;  %v442_v56 = vadd.f32 %v777_v51, %v976_v37 }
  0xec   :  { %v755_v59 = vpop.f32.mrf.mxu0  ;;  %v779_v60 = vpop.f32.mrf.mxu1 }
  0xed   :  { %v482_v61 = vadd.f32 %v649_v50, %v434_v55  ;;  %v490_v62 = vadd.f32 %v665_v52, %v442_v56  ;;  %v756_v63 = vadd.f32 %v755_v59, %v754_v53  ;;  %v780_v1 = vadd.f32 %v779_v60, %v778_v54  ;;  %v724_v59 = vld [vmem:[%s1045_s3 + $0x38] sm:$0xff]  }
  0xee   :  { %v757_v3 = vpop.f32.mrf.mxu0  ;;  %v781_v4 = vpop.f32.mrf.mxu1 }
  0xef   :  { %v681_v5 = vpack.c.bf16 %v482_v61, %v481_v57  ;;  %v701_v6 = vpack.c.bf16 %v490_v62, %v489_v58  ;;  %v435_v7 = vadd.f32 %v756_v63, %v976_v37  ;;  %v443_v9 = vadd.f32 %v780_v1, %v976_v37  ;;  %v720_v57 = vld [vmem:[%s1045_s3 + $0x18] sm:$0xff]  }
  0xf0   :  { %v758_v11 = vpop.f32.mrf.mxu0  ;;  %v782_v12 = vpop.f32.mrf.mxu1  ;;  %v660_v0 = vunpack.c.l.bf16 %v720_v57  ;;  %v676_v1 = vunpack.c.l.bf16 %v724_v59 }
  0xf1   :  { %682 = vst [vmem:[%s1046_s4] sm:$0xff] %v681_v5   ;;  %728 = vst [vmem:[%s1046_s4 + $0x20] sm:$0xff] %v701_v6   ;;  %v759_v13 = vadd.f32 %v758_v11, %v757_v3  ;;  %v783_v15 = vadd.f32 %v782_v12, %v781_v4  ;;  %v483_v21 = vadd.f32 %v652_v8, %v435_v7  ;;  %v661_v3 = vunpack.c.h.bf16 %v720_v57 }
  0xf2   :  { %v760_v17 = vpop.f32.mrf.mxu0  ;;  %v784_v18 = vpop.f32.mrf.mxu1  ;;  %v491_v22 = vadd.f32 %v668_v10, %v443_v9  ;;  %v677_v5 = vunpack.c.h.bf16 %v724_v59 }
  0xf3   :  { %v436_v19 = vadd.f32 %v759_v13, %v976_v37  ;;  %v444_v20 = vadd.f32 %v783_v15, %v976_v37 }
  0xf4   :  { %v761_v23 = vpop.f32.mrf.mxu0  ;;  %v785_v24 = vpop.f32.mrf.mxu1 }
  0xf5   :  { %v484_v25 = vadd.f32 %v653_v14, %v436_v19  ;;  %v492_v26 = vadd.f32 %v669_v16, %v444_v20  ;;  %v762_v27 = vadd.f32 %v761_v23, %v760_v17  ;;  %v786_v29 = vadd.f32 %v785_v24, %v784_v18 }
  0xf6   :  { %v763_v31 = vpop.f32.mrf.mxu0  ;;  %v787_v32 = vpop.f32.mrf.mxu1 }
  0xf7   :  { %v686_v33 = vpack.c.bf16 %v484_v25, %v483_v21  ;;  %v706_v34 = vpack.c.bf16 %v492_v26, %v491_v22  ;;  %v437_v35 = vadd.f32 %v762_v27, %v976_v37  ;;  %v445_v38 = vadd.f32 %v786_v29, %v976_v37 }
  0xf8   :  { %v764_v40 = vpop.f32.mrf.mxu0  ;;  %v788_v41 = vpop.f32.mrf.mxu1 }
  0xf9   :  { %725 = vst [vmem:[%s1046_s4 + $0x8] sm:$0xff] %v686_v33   ;;  %729 = vst [vmem:[%s1046_s4 + $0x28] sm:$0xff] %v706_v34   ;;  %v765_v42 = vadd.f32 %v764_v40, %v763_v31  ;;  %v789_v44 = vadd.f32 %v788_v41, %v787_v32  ;;  %v485_v50 = vadd.f32 %v656_v36, %v437_v35 }
  0xfa   :  { %v766_v46 = vpop.f32.mrf.mxu0  ;;  %v790_v47 = vpop.f32.mrf.mxu1  ;;  %v493_v51 = vadd.f32 %v672_v39, %v445_v38 }
  0xfb   :  { %v438_v48 = vadd.f32 %v765_v42, %v976_v37  ;;  %v446_v49 = vadd.f32 %v789_v44, %v976_v37 }
  0xfc   :  { %v767_v52 = vpop.f32.mrf.mxu0  ;;  %v791_v53 = vpop.f32.mrf.mxu1 }
  0xfd   :  { %v486_v54 = vadd.f32 %v657_v43, %v438_v48  ;;  %v494_v55 = vadd.f32 %v673_v45, %v446_v49  ;;  %v768_v56 = vadd.f32 %v767_v52, %v766_v46  ;;  %v792_v58 = vadd.f32 %v791_v53, %v790_v47 }
  0xfe   :  { %v769_v60 = vpop.f32.mrf.mxu0  ;;  %v793_v61 = vpop.f32.mrf.mxu1 }
  0xff   :  { %v691_v62 = vpack.c.bf16 %v486_v54, %v485_v50  ;;  %v711_v63 = vpack.c.bf16 %v494_v55, %v493_v51  ;;  %v439_v6 = vadd.f32 %v768_v56, %v976_v37  ;;  %v447_v7 = vadd.f32 %v792_v58, %v976_v37 }
 0x100   :  { %v770_v2 = vpop.f32.mrf.mxu0  ;;  %v794_v4 = vpop.f32.mrf.mxu1 }
 0x101   :  { %726 = vst [vmem:[%s1046_s4 + $0x10] sm:$0xff] %v691_v62   ;;  %730 = vst [vmem:[%s1046_s4 + $0x30] sm:$0xff] %v711_v63   ;;  %v771_v8 = vadd.f32 %v770_v2, %v769_v60  ;;  %v795_v9 = vadd.f32 %v794_v4, %v793_v61  ;;  %v487_v12 = vadd.f32 %v660_v0, %v439_v6 }
 0x102   :  { %v495_v13 = vadd.f32 %v676_v1, %v447_v7 }
 0x103   :  { %v440_v10 = vadd.f32 %v771_v8, %v976_v37  ;;  %v448_v11 = vadd.f32 %v795_v9, %v976_v37 }
 0x105   :  { %v488_v14 = vadd.f32 %v661_v3, %v440_v10  ;;  %v496_v15 = vadd.f32 %v677_v5, %v448_v11 }
 0x107   :  { %v696_v16 = vpack.c.bf16 %v488_v14, %v487_v12  ;;  %v716_v17 = vpack.c.bf16 %v496_v15, %v495_v13 }
 0x109   :  { %727 = vst [vmem:[%s1046_s4 + $0x18] sm:$0xff] %v696_v16   ;;  %731 = vst [vmem:[%s1046_s4 + $0x38] sm:$0xff] %v716_v17  }

// kernel: _lambda_.12
= control target key start
LH: loop header
LB: loop body
LE: loop exit
PB: predicated region body
PF: predicated region fallthrough
CT: control target
= control target key end

     0   :  { %s2616_s15 = smov 0   ;;  %s3195_s0 = inlined_call_operand.vmem [shape: bf16[2,64,384], index: 0, kind: input, shape index: {}]   ;;  %s3196_s1 = inlined_call_operand.vmem [shape: bf16[128,128], index: 1, kind: input, shape index: {}]   ;;  %s3197_s2 = inlined_call_operand.vmem [shape: f32[1,128], index: 2, kind: input, shape index: {}]   ;;  %s3198_s3 = inlined_call_operand.vmem [shape: bf16[2,64,128], index: 3, kind: input, shape index: {}]   ;;  %s3199_s4 = inlined_call_operand.vmem [shape: bf16[2,64,128], index: 4, kind: output, shape index: {}]  }
   0x1 LB: > { %s1991_s16 = sadd.s32 4294967295, %s2586_s15   ;;  %p1995_p0 = scmp.ge.s32.totalorder %s2586_s15, 1  ;;  %s2586_s15 = sphi %s2616_s15, %s14_s15  }
   0x2   : > { %p172_p1 = scmp.lt.s32.totalorder %s2586_s15, 3 }
   0x4   : > { %p173_p2 = pnand %p1995_p0, %p172_p1 }
   0x5   : > { %p203_p3 = scmp.lt.s32.totalorder (!%p173_p2), %s1991_s16, 1  ;;  %s2588_s21 = smov (!%p173_p2), 96  }
   0x6   : > { %176 = sbr.rel (%p173_p2) target bundleno = 2131 (0x853), region = 36  ;;  %s2589_s22 = smov (!%p173_p2), 64  }
   0x7   : > { %s2590_s25 = smov (!%p173_p2), 32  }
   0xb   : > { %s3201_s16 = smov (!%p203_p3, %s1991_s16), 1  ;;  %vm283_vm0 = vcmask 261120   ;;  %vm381_vm1 = vcmask 523264  }
   0xc   : > { %s2412_s17 = smul.u32 96, %s3201_s16  ;;  %s2080_s14 = sshll.u32 %s3201_s16, 5 }
   0xd   : > { %s3170_s19 = scalar_lea.vmem %s3198_s3, %s2080_s14  ;;  %s217_s23 = scalar_lea.vmem %s3199_s4, %s2080_s14 }
   0xe   : > { %s2630_s20 = scalar_lea.vmem %s3195_s0, %s2412_s17 }
   0xf   : > { %v2633_v0 = vld [vmem:[%s2630_s20 + $0x4c] ss:$12 sps:$4 sm:$0xff]   ;;  %v2636_v1 = vld [vmem:[%s2630_s20 + $0x34] ss:$12 sps:$4 sm:$0xff]   ;;  %v2648_v4 = vld [vmem:[%s2630_s20 + $0x1c] ss:$12 sps:$4 sm:$0xff]  }
  0x10   : > { %2396 = vmatprep.subr.msk.bf16.mxu0 %vm283_vm0, %v2633_v0  ;;  %v306_v2 = vsel %vm283_vm0, %v2633_v0, 0  ;;  %v2645_v3 = vld [vmem:[%s2630_s20] ss:$12 sps:$4 sm:$0xff]   ;;  %v303_v5 = vsel %vm283_vm0, %v2636_v1, 0  ;;  %v300_v6 = vsel %vm283_vm0, %v2648_v4, 0 }
  0x11   : > { %2221 = vmatpush3.bf16.xpose.msra.mxu0 %v306_v2  ;;  %2228 = vmatprep.mubr.msk.bf16.mxu0 %vm283_vm0, %v2645_v3  ;;  %v2659_v7 = vld [vmem:[%s2630_s20 + $0x4] ss:$12 sps:$4 sm:$0xff]   ;;  %v2676_v11 = vld [vmem:[%s2630_s20 + $0x48] ss:$12 sps:$4 sm:$0xff]   ;;  %v2710_v32 = vld [vmem:[%s2630_s20 + $0x20] ss:$12 sps:$4 sm:$0xff]  }
  0x12   : > { %2397 = vmatprep.subr.msk.bf16.mxu0 %vm283_vm0, %v2636_v1  ;;  %v297_v8 = vsel %vm283_vm0, %v2659_v7, 0  ;;  %v2666_v9 = vld [vmem:[%s2630_s20 + $0x18] ss:$12 sps:$4 sm:$0xff]   ;;  %v2669_v10 = vld [vmem:[%s2630_s20 + $0x30] ss:$12 sps:$4 sm:$0xff]  }
  0x13   : > { %v2696_v30 = vld [vmem:[%s2630_s20 + $0x50] ss:$12 sps:$4 sm:$0xff]   ;;  %v2703_v31 = vld [vmem:[%s2630_s20 + $0x38] ss:$12 sps:$4 sm:$0xff]   ;;  %v2714_v33 = vld [vmem:[%s2630_s20 + $0x8] ss:$12 sps:$4 sm:$0xff]  }
  0x14   : > { %2236 = vmatprep.subr.bf16.mxu1 %v2696_v30 }
  0x15   : > { %2237 = vmatpush3.bf16.msra.mxu1 %v2696_v30 }
  0x16   : > { %2238 = vmatprep.subr.bf16.mxu1 %v2703_v31 }
  0x19   : > { %2223 = vmatpush3.bf16.xpose.msra.mxu0 %v303_v5  ;;  %2239 = vmatpush3.bf16.msra.mxu1 %v2703_v31 }
  0x1a   : > { %2398 = vmatprep.subr.msk.bf16.mxu0 %vm283_vm0, %v2648_v4  ;;  %2240 = vmatprep.subr.bf16.mxu1 %v2710_v32 }
  0x1d   : > { %2241 = vmatpush3.bf16.msra.mxu1 %v2710_v32 }
  0x1e   : > { %2242 = vmatprep.subr.bf16.mxu1 %v2714_v33 }
  0x21   : > { %2225 = vmatpush3.bf16.xpose.msra.mxu0 %v300_v6  ;;  %2243 = vmatpush3.bf16.msra.mxu1 %v2714_v33 }
  0x22   : > { %2399 = vmatprep.subr.msk.bf16.mxu0 %vm283_vm0, %v2659_v7 }
  0x29   : > { %2227 = vmatpush3.bf16.xpose.msra.mxu0 %v297_v8 }
  0x30   : > { %2229 = vmatmul.mubr.msk.bf16.vlgmr.msra.gmra.mxu0 %vm283_vm0, %v2666_v9 }
  0x31   : > { %2232 = vmatprep.mubr.msk.bf16.mxu0 %vm283_vm0, %v2669_v10 }
  0x38   : > { %2233 = vmatmul.mubr.msk.bf16.gmra.mxu0 %vm283_vm0, %v2676_v11 }
  0xf0   : > { %v2230_v12 = vpop.f32.mrf.mxu0 }
  0xf1   : > { %v2680_v13 = vmul.f32 0.17677669, %v2230_v12 }
  0xf2   : > { %v342_v14 = vpop.f32.mrf.mxu0 }
  0xf3   : > { %v373_v15 = vmul.f32 0.17677669, %v342_v14  ;;  %v388_v16 = vsel %vm381_vm1, %v2680_v13, -inf }
  0xf4   : > { %389 = vmax.xlane.f32.xlu1 %v388_v16  ;;  %v2231_v17 = vpop.f32.mrf.mxu0 }
  0xf5   : > { %v376_v18 = vmul.f32 0.17677669, %v2231_v17  ;;  %v382_v19 = vsel %vm381_vm1, %v373_v15, -inf }
  0xf6   : > { %383 = vmax.xlane.f32.xlu0 %v382_v19  ;;  %v345_v20 = vpop.f32.mrf.mxu0 }
  0xf7   : > { %v374_v21 = vmul.f32 0.17677669, %v345_v20  ;;  %v391_v22 = vsel %vm381_vm1, %v376_v18, -inf }
  0xf8   : > { %392 = vmax.xlane.f32.xlu1 %v391_v22  ;;  %v2234_v23 = vpop.f32.mrf.mxu0 }
  0xf9   : > { %v385_v24 = vsel %vm381_vm1, %v374_v21, -inf  ;;  %v2687_v25 = vmul.f32 0.17677669, %v2234_v23 }
  0xfa   : > { %386 = vmax.xlane.f32.xlu0 %v385_v24  ;;  %v358_v26 = vpop.f32.mrf.mxu0 }
  0xfb   : > { %v400_v27 = vsel %vm381_vm1, %v2687_v25, -inf  ;;  %v2691_v28 = vmul.f32 0.17677669, %v358_v26 }
  0xfc   : > { %v2235_v34 = vpop.f32.mrf.mxu0 }
  0xfd   : > { %v394_v29 = vsel %vm381_vm1, %v2691_v28, -inf  ;;  %v380_v35 = vmul.f32 0.17677669, %v2235_v34 }
  0xfe   : > { %401 = vmax.xlane.f32.xlu0 %v400_v27  ;;  %v361_v36 = vpop.f32.mrf.mxu0 }
  0xff   : > { %v378_v37 = vmul.f32 0.17677669, %v361_v36  ;;  %v403_v38 = vsel %vm381_vm1, %v380_v35, -inf }
 0x101   : > { %v397_v39 = vsel %vm381_vm1, %v378_v37, -inf }
 0x102   : > { %395 = vmax.xlane.f32.xlu0 %v394_v29 }
 0x109   : > { %591 = vrot.lane.b32.xlu1 %v2636_v1, %s2588_s21 }
 0x10d   : > { %589 = vrot.lane.b32.xlu1 %v2648_v4, %s2588_s21 }
 0x118   : > { %593 = vrot.lane.b32.xlu0 %v2633_v0, %s2588_s21 }
 0x11c   : > { %579 = vrot.lane.b32.xlu0 %v2645_v3, %s2588_s21 }
 0x120   : > { %583 = vrot.lane.b32.xlu0 %v2669_v10, %s2588_s21 }
 0x124   : > { %774 = vrot.lane.b32.xlu0 %v2696_v30, %s2588_s21 }
 0x131   : > { %404 = vmax.xlane.f32.xlu1 %v403_v38 }
 0x135   : > { %398 = vmax.xlane.f32.xlu1 %v397_v39 }
 0x146   : > { %587 = vrot.lane.b32.xlu1 %v2659_v7, %s2588_s21 }
 0x14a   : > { %581 = vrot.lane.b32.xlu1 %v2666_v9, %s2588_s21 }
 0x14e   : > { %585 = vrot.lane.b32.xlu1 %v2676_v11, %s2588_s21 }
 0x152   : > { %772 = vrot.lane.b32.xlu1 %v2703_v31, %s2588_s21 }
 0x17d   : > { %v390_v40 = vpop.xlane.xlu1 %389 }
 0x17e   : > { %v408_v43 = vsub.f32 %v2680_v13, %v390_v40 }
 0x17f   : > { %v384_v41 = vpop.xlane.xlu0 %383 }
 0x180   : > { %v406_v42 = vsub.f32 %v373_v15, %v384_v41  ;;  %v418_v50 = vmul.f32 1.442695, %v408_v43 }
 0x181   : > { %v393_v44 = vpop.xlane.xlu1 %392 }
 0x182   : > { %v414_v45 = vmul.f32 1.442695, %v406_v42  ;;  %v409_v46 = vsub.f32 %v376_v18, %v393_v44 }
 0x183   : > { %v387_v47 = vpop.xlane.xlu0 %386 }
 0x184   : > { %v420_v48 = vmul.f32 1.442695, %v409_v46  ;;  %v407_v49 = vsub.f32 %v374_v21, %v387_v47  ;;  %2448 = vpow2.f32 %v414_v45 }
 0x185   : > { %v592_v62 = vpop.permute.xlu1 %591 }
 0x186   : > { %v416_v51 = vmul.f32 1.442695, %v407_v49  ;;  %2450 = vpow2.f32 %v420_v48  ;;  %v614_v63 = vsel %vm283_vm0, %v592_v62, 0 }
 0x187   : > { %v402_v52 = vpop.xlane.xlu0 %401 }
 0x188   : > { %2452 = vpow2.f32 %v416_v51  ;;  %v412_v13 = vsub.f32 %v2687_v25, %v402_v52 }
 0x189   : > { %2454 = vpow2.f32 %v418_v50  ;;  %v590_v2 = vpop.permute.xlu1 %589 }
 0x18a   : > { %v611_v5 = vsel %vm283_vm0, %v590_v2, 0  ;;  %v426_v18 = vmul.f32 1.442695, %v412_v13 }
 0x18b   : > { %v396_v53 = vpop.xlane.xlu0 %395 }
 0x18c   : > { %v410_v6 = vsub.f32 %v2691_v28, %v396_v53 }
 0x18e   : > { %v422_v14 = vmul.f32 1.442695, %v410_v6 }
 0x18f   : > { %v594_v54 = vpop.permute.xlu0 %593 }
 0x190   : > { %2400 = vmatprep.subr.msk.bf16.mxu1 %vm283_vm0, %v594_v54  ;;  %v617_v60 = vsel %vm283_vm0, %v594_v54, 0  ;;  %2456 = vpow2.f32 %v422_v14 }
 0x191   : > { %v2739_v55 = vpop.eup %2448 }
 0x193   : > { %v2741_v56 = vpop.eup %2450  ;;  %v580_v28 = vpop.permute.xlu0 %579 }
 0x195   : > { %v2743_v57 = vpop.eup %2452 }
 0x196   : > { %v2745_v58 = vpop.eup %2454  ;;  %v454_v59 = vpack.c.bf16 %v2743_v57, %v2739_v55 }
 0x197   : > { %v455_v61 = vpack.c.bf16 %v2741_v56, %v2745_v58  ;;  %v584_v34 = vpop.permute.xlu0 %583 }
 0x198   : > { %2244 = vmatprep.mubr.msk.bf16.mxu1 %vm381_vm1, %v454_v59 }
 0x199   : > { %2245 = vmatmul.mubr.msk.bf16.vlgmr.msra.gmra.mxu1 %vm381_vm1, %v455_v61 }
 0x19a   : > { %2253 = vmatpush3.bf16.xpose.msra.mxu1 %v617_v60 }
 0x19b   : > { %2401 = vmatprep.subr.msk.bf16.mxu1 %vm283_vm0, %v592_v62  ;;  %v775_v36 = vpop.permute.xlu0 %774 }
 0x19c   : > { %2268 = vmatprep.subr.bf16.mxu0 %v775_v36 }
 0x19d   : > { %v2762_v22 = vpop.eup %2456  ;;  %2269 = vmatpush3.bf16.msra.mxu0 %v775_v36 }
 0x1a2   : > { %2255 = vmatpush3.bf16.xpose.msra.mxu1 %v614_v63 }
 0x1a3   : > { %2402 = vmatprep.subr.msk.bf16.mxu1 %vm283_vm0, %v590_v2 }
 0x1aa   : > { %2257 = vmatpush3.bf16.xpose.msra.mxu1 %v611_v5 }
 0x1ba   : > { %v405_v8 = vpop.xlane.xlu1 %404 }
 0x1bb   : > { %v413_v12 = vsub.f32 %v380_v35, %v405_v8 }
 0x1bd   : > { %v428_v15 = vmul.f32 1.442695, %v413_v12 }
 0x1be   : > { %v399_v16 = vpop.xlane.xlu1 %398 }
 0x1bf   : > { %v411_v17 = vsub.f32 %v378_v37, %v399_v16  ;;  %2458 = vpow2.f32 %v428_v15 }
 0x1c1   : > { %v424_v19 = vmul.f32 1.442695, %v411_v17 }
 0x1c2   : > { %v588_v20 = vpop.permute.xlu1 %587 }
 0x1c3   : > { %2460 = vpow2.f32 %v424_v19  ;;  %v608_v21 = vsel %vm283_vm0, %v588_v20, 0  ;;  %2403 = vmatprep.subr.msk.bf16.mxu1 %vm283_vm0, %v588_v20 }
 0x1c4   : > { %2462 = vpow2.f32 %v426_v18  ;;  %2259 = vmatpush3.bf16.xpose.msra.mxu1 %v608_v21 }
 0x1c6   : > { %v582_v29 = vpop.permute.xlu1 %581 }
 0x1ca   : > { %v586_v35 = vpop.permute.xlu1 %585 }
 0x1cc   : > { %v2764_v23 = vpop.eup %2458 }
 0x1ce   : > { %v773_v37 = vpop.permute.xlu1 %772 }
 0x1cf   : > { %2270 = vmatprep.subr.bf16.mxu0 %v773_v37 }
 0x1d0   : > { %v2766_v24 = vpop.eup %2460  ;;  %2271 = vmatpush3.bf16.msra.mxu0 %v773_v37 }
 0x1d1   : > { %v2768_v25 = vpop.eup %2462  ;;  %v456_v26 = vpack.c.bf16 %v2766_v24, %v2762_v22 }
 0x1d2   : > { %v457_v27 = vpack.c.bf16 %v2764_v23, %v2768_v25 }
 0x1d3   : > { %2248 = vmatprep.mubr.msk.bf16.mxu1 %vm381_vm1, %v456_v26 }
 0x1d4   : > { %2249 = vmatmul.mubr.msk.bf16.gmra.mxu1 %vm381_vm1, %v457_v27 }
 0x1d5   : > { %2260 = vmatprep.mubr.msk.bf16.mxu1 %vm283_vm0, %v580_v28 }
 0x1dc   : > { %2261 = vmatmul.mubr.msk.bf16.vlgmr.msra.gmra.mxu1 %vm283_vm0, %v582_v29 }
 0x1dd   : > { %2264 = vmatprep.mubr.msk.bf16.mxu1 %vm283_vm0, %v584_v34 }
 0x1e4   : > { %2265 = vmatmul.mubr.msk.bf16.gmra.mxu1 %vm283_vm0, %v586_v35 }
 0x259   : > { %v2780_v38 = vpop.f32.mrf.mxu1 }
 0x25b   : > { %v2782_v39 = vpop.f32.mrf.mxu1 }
 0x25d   : > { %v2784_v40 = vpop.f32.mrf.mxu1 }
 0x25f   : > { %v2786_v41 = vpop.f32.mrf.mxu1 }
 0x294   : > { %v2788_v42 = vpop.f32.mrf.mxu1 }
 0x296   : > { %v2790_v43 = vpop.f32.mrf.mxu1 }
 0x298   : > { %v2792_v44 = vpop.f32.mrf.mxu1 }
 0x29a   : > { %v2794_v45 = vpop.f32.mrf.mxu1 }
 0x29c   : > { %v2262_v46 = vpop.f32.mrf.mxu1 }
 0x29d   : > { %v686_v47 = vmul.f32 0.17677669, %v2262_v46 }
 0x29e   : > { %v653_v48 = vpop.f32.mrf.mxu1 }
 0x29f   : > { %v684_v49 = vmul.f32 0.17677669, %v653_v48  ;;  %v698_v50 = vsel %vm381_vm1, %v686_v47, -inf }
 0x2a0   : > { %699 = vmax.xlane.f32.xlu0 %v698_v50  ;;  %v2263_v51 = vpop.f32.mrf.mxu1 }
 0x2a1   : > { %v687_v53 = vmul.f32 0.17677669, %v2263_v51  ;;  %v692_v59 = vsel %vm381_vm1, %v684_v49, -inf }
 0x2a2   : > { %v656_v52 = vpop.f32.mrf.mxu1 }
 0x2a3   : > { %v685_v54 = vmul.f32 0.17677669, %v656_v52  ;;  %v701_v5 = vsel %vm381_vm1, %v687_v53, -inf }
 0x2a4   : > { %693 = vmax.xlane.f32.xlu0 %v692_v59  ;;  %v2266_v60 = vpop.f32.mrf.mxu1 }
 0x2a5   : > { %v695_v61 = vsel %vm381_vm1, %v685_v54, -inf  ;;  %v690_v63 = vmul.f32 0.17677669, %v2266_v60 }
 0x2a6   : > { %696 = vmax.xlane.f32.xlu1 %v695_v61  ;;  %v669_v62 = vpop.f32.mrf.mxu1 }
 0x2a7   : > { %v688_v2 = vmul.f32 0.17677669, %v669_v62  ;;  %v710_v15 = vsel %vm381_vm1, %v690_v63, -inf }
 0x2a8   : > { %702 = vmax.xlane.f32.xlu0 %v701_v5  ;;  %v2267_v6 = vpop.f32.mrf.mxu1 }
 0x2a9   : > { %v691_v8 = vmul.f32 0.17677669, %v2267_v6  ;;  %v704_v12 = vsel %vm381_vm1, %v688_v2, -inf }
 0x2aa   : > { %705 = vmax.xlane.f32.xlu1 %v704_v12  ;;  %v672_v13 = vpop.f32.mrf.mxu1 }
 0x2ab   : > { %v689_v14 = vmul.f32 0.17677669, %v672_v13  ;;  %v713_v16 = vsel %vm381_vm1, %v691_v8, -inf }
 0x2ac   : > { %711 = vmax.xlane.f32.xlu0 %v710_v15 }
 0x2ad   : > { %v707_v17 = vsel %vm381_vm1, %v689_v14, -inf }
 0x2ae   : > { %714 = vmax.xlane.f32.xlu1 %v713_v16 }
 0x2b0   : > { %708 = vmax.xlane.f32.xlu0 %v707_v17 }
 0x2bf   : > { %768 = vrot.lane.b32.xlu1 %v2714_v33, %s2588_s21 }
 0x2c6   : > { %770 = vrot.lane.b32.xlu0 %v2710_v32, %s2588_s21 }
 0x329   : > { %v700_v18 = vpop.xlane.xlu0 %699 }
 0x32a   : > { %v718_v19 = vsub.f32 %v686_v47, %v700_v18 }
 0x32c   : > { %v728_v20 = vmul.f32 1.442695, %v718_v19 }
 0x32d   : > { %v694_v21 = vpop.xlane.xlu0 %693 }
 0x32e   : > { %2464 = vpow2.f32 %v728_v20  ;;  %v716_v26 = vsub.f32 %v684_v49, %v694_v21 }
 0x32f   : > { %v697_v27 = vpop.xlane.xlu1 %696 }
 0x330   : > { %v724_v28 = vmul.f32 1.442695, %v716_v26  ;;  %v717_v29 = vsub.f32 %v685_v54, %v697_v27 }
 0x331   : > { %v703_v34 = vpop.xlane.xlu0 %702 }
 0x332   : > { %2466 = vpow2.f32 %v724_v28  ;;  %v726_v35 = vmul.f32 1.442695, %v717_v29  ;;  %v719_v36 = vsub.f32 %v687_v53, %v703_v34  ;;  %v2440_v34 = vld [vmem:[%s3196_s1 + $0x18] sm:$0xff]  }
 0x333   : > { %v706_v37 = vpop.xlane.xlu1 %705 }
 0x334   : > { %2468 = vpow2.f32 %v726_v35  ;;  %v730_v46 = vmul.f32 1.442695, %v719_v36  ;;  %v720_v48 = vsub.f32 %v688_v2, %v706_v37  ;;  %v2441_v37 = vld [vmem:[%s3196_s1 + $0x10] sm:$0xff]  }
 0x335   : > { %v712_v50 = vpop.xlane.xlu0 %711 }
 0x336   : > { %2470 = vpow2.f32 %v730_v46  ;;  %v722_v51 = vsub.f32 %v690_v63, %v712_v50  ;;  %v732_v47 = vmul.f32 1.442695, %v720_v48 }
 0x337   : > { %v715_v52 = vpop.xlane.xlu1 %714 }
 0x338   : > { %v736_v59 = vmul.f32 1.442695, %v722_v51  ;;  %v723_v60 = vsub.f32 %v691_v8, %v715_v52 }
 0x339   : > { %v709_v61 = vpop.xlane.xlu0 %708 }
 0x33a   : > { %2472 = vpow2.f32 %v736_v59  ;;  %v738_v49 = vmul.f32 1.442695, %v723_v60  ;;  %v721_v62 = vsub.f32 %v689_v14, %v709_v61 }
 0x33b   : > { %v2465_v54 = vpop.eup %2464  ;;  %2474 = vpow2.f32 %v732_v47  ;;  %v769_v2 = vpop.permute.xlu1 %768 }
 0x33c   : > { %v734_v5 = vmul.f32 1.442695, %v721_v62  ;;  %v746_v53 = vsel %vm381_vm1, %v2465_v54, 0.0  ;;  %2476 = vpow2.f32 %v738_v49 }
 0x33d   : > { %747 = vadd.xlane.f32.xlu0 %v746_v53  ;;  %v771_v6 = vpop.permute.xlu0 %770 }
 0x33e   : > { %2478 = vpow2.f32 %v734_v5  ;;  %2272 = vmatprep.subr.bf16.mxu0 %v771_v6 }
 0x33f   : > { %v2467_v63 = vpop.eup %2466  ;;  %2273 = vmatpush3.bf16.msra.mxu0 %v771_v6 }
 0x340   : > { %v740_v12 = vsel %vm381_vm1, %v2467_v63, 0.0  ;;  %2274 = vmatprep.subr.bf16.mxu0 %v769_v2 }
 0x341   : > { %v2469_v8 = vpop.eup %2468  ;;  %741 = vadd.xlane.f32.xlu1 %v740_v12 }
 0x342   : > { %v743_v13 = vsel %vm381_vm1, %v2469_v8, 0.0  ;;  %v764_v14 = vpack.c.bf16 %v2469_v8, %v2467_v63 }
 0x343   : > { %v2471_v15 = vpop.eup %2470  ;;  %744 = vadd.xlane.f32.xlu0 %v743_v13  ;;  %2275 = vmatpush3.bf16.msra.mxu0 %v769_v2 }
 0x344   : > { %v765_v16 = vpack.c.bf16 %v2471_v15, %v2465_v54  ;;  %2276 = vmatprep.mubr.msk.bf16.mxu0 %vm381_vm1, %v764_v14  ;;  %v749_v17 = vsel %vm381_vm1, %v2471_v15, 0.0  ;;  %2284 = vmatprep.subr.bf16.mxu0 %v2440_v34 }
 0x345   : > { %750 = vadd.xlane.f32.xlu1 %v749_v17 }
 0x346   : > { %2277 = vmatmul.mubr.msk.bf16.vlgmr.msra.gmra.mxu0 %vm381_vm1, %v765_v16 }
 0x347   : > { %v2473_v18 = vpop.eup %2472  ;;  %2285 = vmatpush3.bf16.msra.mxu0 %v2440_v34 }
 0x348   : > { %v758_v19 = vsel %vm381_vm1, %v2473_v18, 0.0  ;;  %v2475_v20 = vpop.eup %2474  ;;  %2286 = vmatprep.subr.bf16.mxu0 %v2441_v37 }
 0x349   : > { %759 = vadd.xlane.f32.xlu0 %v758_v19  ;;  %v2477_v21 = vpop.eup %2476  ;;  %v752_v27 = vsel %vm381_vm1, %v2475_v20, 0.0 }
 0x34a   : > { %v767_v29 = vpack.c.bf16 %v2477_v21, %v2473_v18  ;;  %v761_v35 = vsel %vm381_vm1, %v2477_v21, 0.0 }
 0x34b   : > { %v2479_v26 = vpop.eup %2478  ;;  %2287 = vmatpush3.bf16.msra.mxu0 %v2441_v37 }
 0x34c   : > { %v766_v28 = vpack.c.bf16 %v2479_v26, %v2475_v20  ;;  %v755_v36 = vsel %vm381_vm1, %v2479_v26, 0.0 }
 0x34d   : > { %753 = vadd.xlane.f32.xlu0 %v752_v27 }
 0x34e   : > { %2280 = vmatprep.mubr.msk.bf16.mxu0 %vm381_vm1, %v766_v28 }
 0x34f   : > { %2281 = vmatmul.mubr.msk.bf16.gmra.mxu0 %vm381_vm1, %v767_v29 }
 0x356   : > { %1067 = vrot.lane.b32.xlu1 %v2636_v1, %s2589_s22 }
 0x35a   : > { %1065 = vrot.lane.b32.xlu1 %v2648_v4, %s2589_s22 }
 0x363   : > { %1069 = vrot.lane.b32.xlu0 %v2633_v0, %s2589_s22 }
 0x367   : > { %1055 = vrot.lane.b32.xlu0 %v2645_v3, %s2589_s22 }
 0x36b   : > { %1059 = vrot.lane.b32.xlu0 %v2669_v10, %s2589_s22 }
 0x36f   : > { %1464 = vrot.lane.b32.xlu0 %v2633_v0, %s2590_s25  ;;  %v430_v0 = vsel %vm381_vm1, %v2739_v55, 0.0  ;;  %v448_v55 = vsel %vm381_vm1, %v2768_v25, 0.0 }
 0x373   : > { %1460 = vrot.lane.b32.xlu0 %v2648_v4, %s2590_s25  ;;  %v439_v4 = vsel %vm381_vm1, %v2741_v56, 0.0 }
 0x377   : > { %1450 = vrot.lane.b32.xlu0 %v2645_v3, %s2590_s25  ;;  %v436_v3 = vsel %vm381_vm1, %v2745_v58, 0.0  ;;  %v433_v58 = vsel %vm381_vm1, %v2743_v57, 0.0  ;;  %v2443_v57 = vld [vmem:[%s3196_s1] sm:$0xff]  }
 0x37b   : > { %1454 = vrot.lane.b32.xlu0 %v2669_v10, %s2590_s25  ;;  %v442_v10 = vsel %vm381_vm1, %v2762_v22, 0.0  ;;  %v445_v22 = vsel %vm381_vm1, %v2766_v24, 0.0 }
 0x37e   : > { %762 = vadd.xlane.f32.xlu1 %v761_v35 }
 0x382   : > { %756 = vadd.xlane.f32.xlu1 %v755_v36 }
 0x393   : > { %1063 = vrot.lane.b32.xlu1 %v2659_v7, %s2589_s22 }
 0x397   : > { %1057 = vrot.lane.b32.xlu1 %v2666_v9, %s2589_s22 }
 0x39a   : > { %431 = vadd.xlane.f32.xlu0 %v430_v0 }
 0x39b   : > { %1061 = vrot.lane.b32.xlu1 %v2676_v11, %s2589_s22 }
 0x39e   : > { %437 = vadd.xlane.f32.xlu0 %v436_v3 }
 0x39f   : > { %1462 = vrot.lane.b32.xlu1 %v2636_v1, %s2590_s25 }
 0x3a2   : > { %440 = vadd.xlane.f32.xlu0 %v439_v4 }
 0x3a3   : > { %1458 = vrot.lane.b32.xlu1 %v2659_v7, %s2590_s25 }
 0x3a6   : > { %443 = vadd.xlane.f32.xlu0 %v442_v10 }
 0x3a7   : > { %1452 = vrot.lane.b32.xlu1 %v2666_v9, %s2590_s25  ;;  %v451_v9 = vsel %vm381_vm1, %v2764_v23, 0.0 }
 0x3aa   : > { %449 = vadd.xlane.f32.xlu0 %v448_v55 }
 0x3ab   : > { %1456 = vrot.lane.b32.xlu1 %v2676_v11, %s2590_s25  ;;  %v2442_v11 = vld [vmem:[%s3196_s1 + $0x8] sm:$0xff]  }
 0x3ac   : > { %2296 = vmatprep.subr.bf16.mxu1 %v2442_v11 }
 0x3ad   : > { %2297 = vmatpush3.bf16.msra.mxu1 %v2442_v11 }
 0x3ae   : > { %2298 = vmatprep.subr.bf16.mxu1 %v2443_v57 }
 0x3b1   : > { %2299 = vmatpush3.bf16.msra.mxu1 %v2443_v57 }
 0x3c6   : > { %v748_v1 = vpop.xlane.xlu0 %747 }
 0x3ca   : > { %v742_v24 = vpop.xlane.xlu1 %741 }
 0x3cb   : > { %2480 = vrcp.f32 %v742_v24 }
 0x3cc   : > { %v745_v56 = vpop.xlane.xlu0 %744 }
 0x3ce   : > { %v751_v48 = vpop.xlane.xlu1 %750 }
 0x3cf   : > { %434 = vadd.xlane.f32.xlu1 %v433_v58  ;;  %2482 = vrcp.f32 %v751_v48 }
 0x3d0   : > { %2484 = vrcp.f32 %v745_v56 }
 0x3d1   : > { %2486 = vrcp.f32 %v748_v1 }
 0x3d2   : > { %v760_v7 = vpop.xlane.xlu0 %759  ;;  %v1068_v23 = vpop.permute.xlu1 %1067 }
 0x3d3   : > { %446 = vadd.xlane.f32.xlu1 %v445_v22  ;;  %v1090_v27 = vsel %vm283_vm0, %v1068_v23, 0 }
 0x3d6   : > { %v754_v46 = vpop.xlane.xlu0 %753  ;;  %v1066_v50 = vpop.permute.xlu1 %1065 }
 0x3d7   : > { %452 = vadd.xlane.f32.xlu1 %v451_v9  ;;  %v1087_v3 = vsel %vm283_vm0, %v1066_v50, 0 }
 0x3d8   : > { %v2481_v59 = vpop.eup %2480 }
 0x3da   : > { %v1070_v25 = vpop.permute.xlu0 %1069 }
 0x3db   : > { %2404 = vmatprep.subr.msk.bf16.mxu0 %vm283_vm0, %v1070_v25  ;;  %v1093_v13 = vsel %vm283_vm0, %v1070_v25, 0 }
 0x3dc   : > { %v2483_v61 = vpop.eup %2482 }
 0x3dd   : > { %v2485_v62 = vpop.eup %2484 }
 0x3de   : > { %v2487_v53 = vpop.eup %2486  ;;  %v1056_v37 = vpop.permute.xlu0 %1055 }
 0x3e2   : > { %v1060_v4 = vpop.permute.xlu0 %1059 }
 0x3e6   : > { %v1465_v55 = vpop.permute.xlu0 %1464 }
 0x3e7   : > { %v1488_v58 = vsel %vm283_vm0, %v1465_v55, 0 }
 0x406   : > { %v2278_v51 = vpop.f32.mrf.mxu0 }
 0x407   : > { %v763_v52 = vpop.xlane.xlu1 %762  ;;  %v867_v63 = vmul.f32 %v2487_v53, %v2278_v51 }
 0x408   : > { %v826_v47 = vpop.f32.mrf.mxu0  ;;  %2488 = vrcp.f32 %v763_v52 }
 0x409   : > { %2490 = vrcp.f32 %v754_v46  ;;  %v865_v6 = vmul.f32 %v2481_v59, %v826_v47 }
 0x40a   : > { %v2279_v60 = vpop.f32.mrf.mxu0 }
 0x40b   : > { %v757_v49 = vpop.xlane.xlu1 %756  ;;  %v868_v54 = vmul.f32 %v2483_v61, %v2279_v60 }
 0x40c   : > { %2492 = vrcp.f32 %v757_v49  ;;  %v829_v5 = vpop.f32.mrf.mxu0 }
 0x40d   : > { %2494 = vrcp.f32 %v760_v7  ;;  %v866_v2 = vmul.f32 %v2485_v62, %v829_v5  ;;  %v874_v14 = vpack.c.bf16 %v868_v54, %v867_v63  ;;  %v1461_v7 = vpop.permute.xlu0 %1460 }
 0x40e   : > { %v1482_v11 = vsel %vm283_vm0, %v1461_v7, 0 }
 0x40f   : > { %v873_v12 = vpack.c.bf16 %v866_v2, %v865_v6  ;;  %v2282_v8 = vpop.f32.mrf.mxu0  ;;  %v1064_v0 = vpop.permute.xlu1 %1063 }
 0x410   : > { %v1084_v10 = vsel %vm283_vm0, %v1064_v0, 0 }
 0x411   : > { %v842_v15 = vpop.f32.mrf.mxu0  ;;  %2288 = vmatprep.mubr.msk.bf16.mxu0 %vm283_vm0, %v873_v12  ;;  %v1451_v46 = vpop.permute.xlu0 %1450 }
 0x412   : > { %2289 = vmatmul.mubr.msk.bf16.vlgmr.msra.gmra.mxu0 %vm283_vm0, %v874_v14 }
 0x413   : > { %2309 = vmatpush3.bf16.xpose.msra.mxu0 %v1093_v13  ;;  %v2283_v16 = vpop.f32.mrf.mxu0  ;;  %v1058_v1 = vpop.permute.xlu1 %1057 }
 0x414   : > { %2405 = vmatprep.subr.msk.bf16.mxu0 %vm283_vm0, %v1068_v23 }
 0x415   : > { %v2489_v17 = vpop.eup %2488  ;;  %v845_v21 = vpop.f32.mrf.mxu0 }
 0x416   : > { %v2491_v18 = vpop.eup %2490  ;;  %v872_v20 = vmul.f32 %v2489_v17, %v2283_v16  ;;  %v1455_v25 = vpop.permute.xlu0 %1454 }
 0x417   : > { %v869_v28 = vmul.f32 %v2491_v18, %v842_v15  ;;  %v1062_v56 = vpop.permute.xlu1 %1061 }
 0x419   : > { %v2493_v19 = vpop.eup %2492 }
 0x41a   : > { %v2495_v26 = vpop.eup %2494  ;;  %v870_v29 = vmul.f32 %v2493_v19, %v845_v21 }
 0x41b   : > { %v871_v34 = vmul.f32 %v2495_v26, %v2282_v8  ;;  %2311 = vmatpush3.bf16.xpose.msra.mxu0 %v1090_v27  ;;  %v1463_v22 = vpop.permute.xlu1 %1462 }
 0x41c   : > { %v875_v35 = vpack.c.bf16 %v870_v29, %v869_v28  ;;  %2406 = vmatprep.subr.msk.bf16.mxu0 %vm283_vm0, %v1066_v50  ;;  %v1485_v9 = vsel %vm283_vm0, %v1463_v22, 0 }
 0x41d   : > { %v876_v36 = vpack.c.bf16 %v872_v20, %v871_v34 }
 0x41e   : > { %2292 = vmatprep.mubr.msk.bf16.mxu0 %vm283_vm0, %v875_v35 }
 0x41f   : > { %2293 = vmatmul.mubr.msk.bf16.gmra.mxu0 %vm283_vm0, %v876_v36  ;;  %v1459_v57 = vpop.permute.xlu1 %1458 }
 0x420   : > { %2316 = vmatprep.mubr.msk.bf16.mxu0 %vm283_vm0, %v1056_v37  ;;  %v1479_v48 = vsel %vm283_vm0, %v1459_v57, 0 }
 0x423   : > { %2313 = vmatpush3.bf16.xpose.msra.mxu0 %v1087_v3  ;;  %v432_v24 = vpop.xlane.xlu0 %431  ;;  %v1453_v50 = vpop.permute.xlu1 %1452 }
 0x424   : > { %2407 = vmatprep.subr.msk.bf16.mxu0 %vm283_vm0, %v1064_v0 }
 0x427   : > { %v438_v23 = vpop.xlane.xlu0 %437  ;;  %v1457_v52 = vpop.permute.xlu1 %1456 }
 0x42b   : > { %2315 = vmatpush3.bf16.xpose.msra.mxu0 %v1084_v10  ;;  %v441_v51 = vpop.xlane.xlu0 %440 }
 0x42c   : > { %2408 = vmatprep.subr.msk.bf16.mxu0 %vm283_vm0, %v1465_v55  ;;  %2496 = vrcp.f32 %v441_v51 }
 0x42d   : > { %2498 = vrcp.f32 %v432_v24 }
 0x42e   : > { %2500 = vrcp.f32 %v438_v23 }
 0x42f   : > { %v444_v47 = vpop.xlane.xlu0 %443 }
 0x432   : > { %2317 = vmatmul.mubr.msk.bf16.vlgmr.msra.gmra.mxu0 %vm283_vm0, %v1058_v1 }
 0x433   : > { %2320 = vmatprep.mubr.msk.bf16.mxu0 %vm283_vm0, %v1060_v4  ;;  %2353 = vmatpush3.bf16.xpose.msra.mxu0 %v1488_v58  ;;  %v450_v60 = vpop.xlane.xlu0 %449 }
 0x434   : > { %2409 = vmatprep.subr.msk.bf16.mxu0 %vm283_vm0, %v1463_v22 }
 0x439   : > { %v2497_v62 = vpop.eup %2496 }
 0x43a   : > { %2321 = vmatmul.mubr.msk.bf16.gmra.mxu0 %vm283_vm0, %v1062_v56  ;;  %v2499_v54 = vpop.eup %2498  ;;  %v570_v6 = vmul.f32 %v2497_v62, %v2784_v40 }
 0x43b   : > { %2355 = vmatpush3.bf16.xpose.msra.mxu0 %v1485_v9  ;;  %2360 = vmatprep.mubr.msk.bf16.mxu0 %vm283_vm0, %v1451_v46  ;;  %v2501_v5 = vpop.eup %2500  ;;  %v567_v2 = vmul.f32 %v2499_v54, %v2782_v39 }
 0x43c   : > { %2410 = vmatprep.subr.msk.bf16.mxu0 %vm283_vm0, %v1461_v7  ;;  %v569_v8 = vmul.f32 %v2501_v5, %v2780_v38 }
 0x43e   : > { %v576_v15 = vpack.c.bf16 %v570_v6, %v569_v8 }
 0x443   : > { %2357 = vmatpush3.bf16.xpose.msra.mxu0 %v1482_v11 }
 0x444   : > { %2411 = vmatprep.subr.msk.bf16.mxu0 %vm283_vm0, %v1459_v57 }
 0x44b   : > { %2359 = vmatpush3.bf16.xpose.msra.mxu0 %v1479_v48 }
 0x452   : > { %2361 = vmatmul.mubr.msk.bf16.vlgmr.msra.gmra.mxu0 %vm283_vm0, %v1453_v50 }
 0x453   : > { %2364 = vmatprep.mubr.msk.bf16.mxu0 %vm283_vm0, %v1455_v25 }
 0x458   : > { %v435_v59 = vpop.xlane.xlu1 %434 }
 0x459   : > { %2502 = vrcp.f32 %v435_v59 }
 0x45a   : > { %2365 = vmatmul.mubr.msk.bf16.gmra.mxu0 %vm283_vm0, %v1457_v52  ;;  %2504 = vrcp.f32 %v444_v47 }
 0x45c   : > { %v447_v61 = vpop.xlane.xlu1 %446 }
 0x45d   : > { %2506 = vrcp.f32 %v447_v61 }
 0x45e   : > { %2508 = vrcp.f32 %v450_v60 }
 0x460   : > { %v453_v49 = vpop.xlane.xlu1 %452 }
 0x461   : > { %2510 = vrcp.f32 %v453_v49 }
 0x466   : > { %v2503_v53 = vpop.eup %2502 }
 0x467   : > { %v568_v63 = vmul.f32 %v2503_v53, %v2786_v41  ;;  %v2505_v12 = vpop.eup %2504 }
 0x468   : > { %v571_v16 = vmul.f32 %v2505_v12, %v2790_v43 }
 0x469   : > { %v575_v13 = vpack.c.bf16 %v568_v63, %v567_v2 }
 0x46a   : > { %v2507_v14 = vpop.eup %2506 }
 0x46b   : > { %2300 = vmatprep.mubr.msk.bf16.mxu1 %vm283_vm0, %v575_v13  ;;  %v572_v17 = vmul.f32 %v2507_v14, %v2794_v45  ;;  %v2509_v18 = vpop.eup %2508 }
 0x46c   : > { %2301 = vmatmul.mubr.msk.bf16.vlgmr.msra.gmra.mxu1 %vm283_vm0, %v576_v15  ;;  %v573_v39 = vmul.f32 %v2509_v18, %v2788_v42 }
 0x46d   : > { %v577_v40 = vpack.c.bf16 %v572_v17, %v571_v16 }
 0x46e   : > { %v2511_v19 = vpop.eup %2510 }
 0x46f   : > { %2304 = vmatprep.mubr.msk.bf16.mxu1 %vm283_vm0, %v577_v40  ;;  %v574_v38 = vmul.f32 %v2511_v19, %v2792_v44 }
 0x471   : > { %v578_v41 = vpack.c.bf16 %v574_v38, %v573_v39 }
 0x474   : > { %2305 = vmatmul.mubr.msk.bf16.gmra.mxu1 %vm283_vm0, %v578_v41 }
 0x4d2   : > { %v2920_v20 = vpop.f32.mrf.mxu0 }
 0x4d4   : > { %v2922_v21 = vpop.f32.mrf.mxu0 }
 0x4d6   : > { %v2924_v43 = vpop.f32.mrf.mxu0 }
 0x4d8   : > { %v2926_v45 = vpop.f32.mrf.mxu0 }
 0x4df   : > { %v2928_v26 = vpop.f32.mrf.mxu0 }
 0x4e1   : > { %v2930_v27 = vpop.f32.mrf.mxu0 }
 0x4e3   : > { %v2932_v28 = vpop.f32.mrf.mxu0 }
 0x4e5   : > { %v2934_v42 = vpop.f32.mrf.mxu0 }
 0x4f2   : > { %v2318_v44 = vpop.f32.mrf.mxu0 }
 0x4f3   : > { %v2936_v29 = vmul.f32 0.17677669, %v2318_v44 }
 0x4f4   : > { %v1129_v34 = vpop.f32.mrf.mxu0 }
 0x4f5   : > { %v2938_v35 = vmul.f32 0.17677669, %v1129_v34  ;;  %v1174_v36 = vsel %vm381_vm1, %v2936_v29, -inf }
 0x4f6   : > { %1175 = vmax.xlane.f32.xlu0 %v1174_v36  ;;  %v2319_v37 = vpop.f32.mrf.mxu0 }
 0x4f7   : > { %v2942_v0 = vmul.f32 0.17677669, %v2319_v37  ;;  %v1168_v10 = vsel %vm381_vm1, %v2938_v35, -inf }
 0x4f8   : > { %v1132_v3 = vpop.f32.mrf.mxu0 }
 0x4f9   : > { %v2944_v4 = vmul.f32 0.17677669, %v1132_v3  ;;  %v1177_v55 = vsel %vm381_vm1, %v2942_v0, -inf }
 0x4fa   : > { %1169 = vmax.xlane.f32.xlu0 %v1168_v10  ;;  %1178 = vmax.xlane.f32.xlu1 %v1177_v55  ;;  %v2322_v1 = vpop.f32.mrf.mxu0 }
 0x4fb   : > { %v2950_v56 = vmul.f32 0.17677669, %v2322_v1  ;;  %v1171_v7 = vsel %vm381_vm1, %v2944_v4, -inf }
 0x4fc   : > { %v1145_v58 = vpop.f32.mrf.mxu0 }
 0x4fd   : > { %v1186_v22 = vsel %vm381_vm1, %v2950_v56, -inf  ;;  %v2956_v46 = vmul.f32 0.17677669, %v1145_v58 }
 0x4fe   : > { %1172 = vmax.xlane.f32.xlu1 %v1171_v7  ;;  %1187 = vmax.xlane.f32.xlu0 %v1186_v22  ;;  %v2323_v25 = vpop.f32.mrf.mxu0 }
 0x4ff   : > { %v1180_v9 = vsel %vm381_vm1, %v2956_v46, -inf  ;;  %v2968_v51 = vmul.f32 0.17677669, %v2323_v25 }
 0x500   : > { %v1148_v11 = vpop.f32.mrf.mxu0 }
 0x502   : > { %1181 = vmax.xlane.f32.xlu0 %v1180_v9 }
 0x50f   : > { %1248 = vrot.lane.b32.xlu1 %v2703_v31, %s2589_s22 }
 0x512   : > { %v2362_v57 = vpop.f32.mrf.mxu0 }
 0x513   : > { %1246 = vrot.lane.b32.xlu1 %v2710_v32, %s2589_s22  ;;  %v2966_v23 = vmul.f32 0.17677669, %v2362_v57  ;;  %v2974_v32 = vmul.f32 0.17677669, %v1148_v11 }
 0x514   : > { %v1524_v24 = vpop.f32.mrf.mxu0 }
 0x515   : > { %v2970_v52 = vmul.f32 0.17677669, %v1524_v24  ;;  %v1569_v31 = vsel %vm381_vm1, %v2966_v23, -inf  ;;  %v1183_v49 = vsel %vm381_vm1, %v2974_v32, -inf }
 0x516   : > { %v2363_v48 = vpop.f32.mrf.mxu0 }
 0x517   : > { %v1563_v59 = vsel %vm381_vm1, %v2970_v52, -inf  ;;  %v2992_v53 = vmul.f32 0.17677669, %v2363_v48 }
 0x518   : > { %1250 = vrot.lane.b32.xlu0 %v2696_v30, %s2589_s22  ;;  %v1527_v50 = vpop.f32.mrf.mxu0  ;;  %v1189_v30 = vsel %vm381_vm1, %v2968_v51, -inf }
 0x519   : > { %v2994_v6 = vmul.f32 0.17677669, %v1527_v50  ;;  %v1572_v2 = vsel %vm381_vm1, %v2992_v53, -inf }
 0x51a   : > { %v2366_v47 = vpop.f32.mrf.mxu0 }
 0x51b   : > { %v2980_v60 = vmul.f32 0.17677669, %v2366_v47  ;;  %v1566_v12 = vsel %vm381_vm1, %v2994_v6, -inf }
 0x51c   : > { %v1540_v61 = vpop.f32.mrf.mxu0 }
 0x51d   : > { %v1581_v62 = vsel %vm381_vm1, %v2980_v60, -inf  ;;  %v2986_v54 = vmul.f32 0.17677669, %v1540_v61  ;;  %v2578_v61 = vld [vmem:[%s2630_s20 + $0x50] ss:$12 sps:$4 sm:$0xff]  }
 0x51e   : > { %v2367_v63 = vpop.f32.mrf.mxu0 }
 0x51f   : > { %v1575_v5 = vsel %vm381_vm1, %v2986_v54, -inf  ;;  %v3000_v8 = vmul.f32 0.17677669, %v2367_v63 }
 0x520   : > { %v1543_v13 = vpop.f32.mrf.mxu0 }
 0x521   : > { %v1584_v14 = vsel %vm381_vm1, %v3000_v8, -inf }
 0x537   : > { %1190 = vmax.xlane.f32.xlu1 %v1189_v30  ;;  %1570 = vmax.xlane.f32.xlu0 %v1569_v31  ;;  %v2576_v30 = vld [vmem:[%s2630_s20 + $0x38] ss:$12 sps:$4 sm:$0xff]  }
 0x53b   : > { %1184 = vmax.xlane.f32.xlu1 %v1183_v49  ;;  %1564 = vmax.xlane.f32.xlu0 %v1563_v59  ;;  %v2577_v59 = vld [vmem:[%s2630_s20 + $0x20] ss:$12 sps:$4 sm:$0xff]  }
 0x53f   : > { %1582 = vmax.xlane.f32.xlu0 %v1581_v62 }
 0x543   : > { %1576 = vmax.xlane.f32.xlu0 %v1575_v5 }
 0x54c   : > { %1244 = vrot.lane.b32.xlu1 %v2714_v33, %s2589_s22  ;;  %v3004_v33 = vmul.f32 0.17677669, %v1543_v13 }
 0x54e   : > { %v1578_v15 = vsel %vm381_vm1, %v3004_v33, -inf }
 0x570   : > { %1573 = vmax.xlane.f32.xlu1 %v1572_v2 }
 0x574   : > { %1567 = vmax.xlane.f32.xlu1 %v1566_v12 }
 0x578   : > { %1585 = vmax.xlane.f32.xlu1 %v1584_v14 }
 0x57c   : > { %1579 = vmax.xlane.f32.xlu1 %v1578_v15 }
 0x57f   : > { %v1176_v16 = vpop.xlane.xlu0 %1175 }
 0x580   : > { %v1194_v17 = vsub.f32 %v2936_v29, %v1176_v16 }
 0x582   : > { %v1204_v18 = vmul.f32 1.442695, %v1194_v17 }
 0x583   : > { %v1170_v40 = vpop.xlane.xlu0 %1169  ;;  %v1179_v19 = vpop.xlane.xlu1 %1178 }
 0x584   : > { %2512 = vpow2.f32 %v1204_v18  ;;  %v1192_v39 = vsub.f32 %v2938_v35, %v1170_v40  ;;  %v1195_v38 = vsub.f32 %v2942_v0, %v1179_v19 }
 0x586   : > { %v1200_v41 = vmul.f32 1.442695, %v1192_v39  ;;  %v1206_v44 = vmul.f32 1.442695, %v1195_v38 }
 0x587   : > { %v1188_v34 = vpop.xlane.xlu0 %1187  ;;  %v1173_v36 = vpop.xlane.xlu1 %1172 }
 0x588   : > { %2514 = vpow2.f32 %v1200_v41  ;;  %v1198_v37 = vsub.f32 %v2950_v56, %v1188_v34  ;;  %v1193_v3 = vsub.f32 %v2944_v4, %v1173_v36 }
 0x589   : > { %2516 = vpow2.f32 %v1206_v44 }
 0x58a   : > { %v1212_v10 = vmul.f32 1.442695, %v1198_v37  ;;  %v1202_v29 = vmul.f32 1.442695, %v1193_v3  ;;  %v2579_v37 = vld [vmem:[%s2630_s20 + $0x8] ss:$12 sps:$4 sm:$0xff]  }
 0x58b   : > { %v1182_v55 = vpop.xlane.xlu0 %1181  ;;  %v1249_v58 = vpop.permute.xlu1 %1248 }
 0x58c   : > { %v1196_v1 = vsub.f32 %v2956_v46, %v1182_v55  ;;  %2518 = vpow2.f32 %v1202_v29 }
 0x58d   : > { %2520 = vpow2.f32 %v1212_v10 }
 0x58e   : > { %v1208_v35 = vmul.f32 1.442695, %v1196_v1 }
 0x58f   : > { %v1251_v0 = vpop.permute.xlu0 %1250  ;;  %v1247_v22 = vpop.permute.xlu1 %1246 }
 0x590   : > { %2324 = vmatprep.subr.bf16.mxu1 %v1251_v0  ;;  %2522 = vpow2.f32 %v1208_v35 }
 0x591   : > { %v2513_v7 = vpop.eup %2512  ;;  %2325 = vmatpush3.bf16.msra.mxu1 %v1251_v0 }
 0x592   : > { %2326 = vmatprep.subr.bf16.mxu1 %v1249_v58  ;;  %v1222_v56 = vsel %vm381_vm1, %v2513_v7, 0.0 }
 0x593   : > { %1223 = vadd.xlane.f32.xlu0 %v1222_v56 }
 0x595   : > { %v2515_v4 = vpop.eup %2514  ;;  %2327 = vmatpush3.bf16.msra.mxu1 %v1249_v58 }
 0x596   : > { %2328 = vmatprep.subr.bf16.mxu1 %v1247_v22  ;;  %v1216_v9 = vsel %vm381_vm1, %v2515_v4, 0.0  ;;  %v2517_v46 = vpop.eup %2516 }
 0x597   : > { %1217 = vadd.xlane.f32.xlu0 %v1216_v9  ;;  %v1225_v11 = vsel %vm381_vm1, %v2517_v46, 0.0  ;;  %v1241_v19 = vpack.c.bf16 %v2517_v46, %v2513_v7 }
 0x599   : > { %2329 = vmatpush3.bf16.msra.mxu1 %v1247_v22  ;;  %v2519_v25 = vpop.eup %2518 }
 0x59a   : > { %v2521_v57 = vpop.eup %2520  ;;  %v1219_v24 = vsel %vm381_vm1, %v2519_v25, 0.0  ;;  %v1240_v48 = vpack.c.bf16 %v2519_v25, %v2515_v4 }
 0x59b   : > { %1226 = vadd.xlane.f32.xlu0 %v1225_v11  ;;  %1220 = vadd.xlane.f32.xlu1 %v1219_v24  ;;  %v1234_v50 = vsel %vm381_vm1, %v2521_v57, 0.0 }
 0x59c   : > { %2332 = vmatprep.mubr.msk.bf16.mxu1 %vm381_vm1, %v1240_v48 }
 0x59d   : > { %v2523_v31 = vpop.eup %2522 }
 0x59e   : > { %v1228_v47 = vsel %vm381_vm1, %v2523_v31, 0.0 }
 0x59f   : > { %1235 = vadd.xlane.f32.xlu0 %v1234_v50 }
 0x5a3   : > { %1229 = vadd.xlane.f32.xlu0 %v1228_v47 }
 0x5ac   : > { %1643 = vrot.lane.b32.xlu1 %v2576_v30, %s2590_s25 }
 0x5b0   : > { %1641 = vrot.lane.b32.xlu1 %v2577_v59, %s2590_s25  ;;  %v2445_v59 = vld [vmem:[%s3196_s1 + $0x20] sm:$0xff]  }
 0x5b9   : > { %1645 = vrot.lane.b32.xlu0 %v2578_v61, %s2590_s25 }
 0x5c0   : > { %v1571_v49 = vpop.xlane.xlu0 %1570  ;;  %v1191_v62 = vpop.xlane.xlu1 %1190 }
 0x5c1   : > { %v1199_v5 = vsub.f32 %v2968_v51, %v1191_v62  ;;  %v1589_v2 = vsub.f32 %v2966_v23, %v1571_v49 }
 0x5c3   : > { %v1214_v63 = vmul.f32 1.442695, %v1199_v5  ;;  %v1599_v16 = vmul.f32 1.442695, %v1589_v2 }
 0x5c4   : > { %v1565_v12 = vpop.xlane.xlu0 %1564  ;;  %v1185_v13 = vpop.xlane.xlu1 %1184 }
 0x5c5   : > { %v1587_v14 = vsub.f32 %v2970_v52, %v1565_v12  ;;  %v1197_v15 = vsub.f32 %v2974_v32, %v1185_v13  ;;  %2524 = vpow2.f32 %v1214_v63 }
 0x5c7   : > { %v1595_v17 = vmul.f32 1.442695, %v1587_v14  ;;  %v1210_v18 = vmul.f32 1.442695, %v1197_v15 }
 0x5c8   : > { %v1245_v40 = vpop.permute.xlu1 %1244  ;;  %v1583_v3 = vpop.xlane.xlu0 %1582 }
 0x5c9   : > { %2526 = vpow2.f32 %v1595_v17  ;;  %2330 = vmatprep.subr.bf16.mxu1 %v1245_v40  ;;  %v1593_v35 = vsub.f32 %v2980_v60, %v1583_v3 }
 0x5ca   : > { %2528 = vpow2.f32 %v1210_v18  ;;  %2331 = vmatpush3.bf16.msra.mxu1 %v1245_v40  ;;  %v3090_v18 = vpop.f32.mrf.mxu1 }
 0x5cb   : > { %2530 = vpow2.f32 %v1599_v16  ;;  %v1607_v4 = vmul.f32 1.442695, %v1593_v35 }
 0x5cc   : > { %v1577_v10 = vpop.xlane.xlu0 %1576  ;;  %v3092_v40 = vpop.f32.mrf.mxu1 }
 0x5cd   : > { %2333 = vmatmul.mubr.msk.bf16.vlgmr.msra.gmra.mxu1 %vm381_vm1, %v1241_v19  ;;  %v1591_v29 = vsub.f32 %v2986_v54, %v1577_v10 }
 0x5ce   : > { %v3094_v19 = vpop.f32.mrf.mxu1 }
 0x5cf   : > { %v1603_v58 = vmul.f32 1.442695, %v1591_v29 }
 0x5d2   : > { %v2525_v23 = vpop.eup %2524 }
 0x5d3   : > { %v1237_v51 = vsel %vm381_vm1, %v2525_v23, 0.0  ;;  %v1243_v34 = vpack.c.bf16 %v2525_v23, %v2521_v57  ;;  %v3096_v23 = vpop.f32.mrf.mxu1 }
 0x5d4   : > { %1238 = vadd.xlane.f32.xlu1 %v1237_v51 }
 0x5d6   : > { %v3033_v52 = vpop.eup %2526 }
 0x5d7   : > { %v2529_v32 = vpop.eup %2528  ;;  %v1611_v39 = vsel %vm381_vm1, %v3033_v52, 0.0 }
 0x5d8   : > { %v3037_v38 = vpop.eup %2530  ;;  %1612 = vadd.xlane.f32.xlu0 %v1611_v39  ;;  %v1231_v41 = vsel %vm381_vm1, %v2529_v32, 0.0  ;;  %v1242_v44 = vpack.c.bf16 %v2529_v32, %v2523_v31  ;;  %v3098_v32 = vpop.f32.mrf.mxu1 }
 0x5d9   : > { %1232 = vadd.xlane.f32.xlu1 %v1231_v41  ;;  %v1617_v36 = vsel %vm381_vm1, %v3037_v38, 0.0 }
 0x5da   : > { %2336 = vmatprep.mubr.msk.bf16.mxu1 %vm381_vm1, %v1242_v44  ;;  %v3100_v41 = vpop.f32.mrf.mxu1 }
 0x5db   : > { %2337 = vmatmul.mubr.msk.bf16.gmra.mxu1 %vm381_vm1, %v1243_v34 }
 0x5dc   : > { %1618 = vadd.xlane.f32.xlu0 %v1617_v36  ;;  %v3102_v44 = vpop.f32.mrf.mxu1 }
 0x5de   : > { %v3104_v36 = vpop.f32.mrf.mxu1 }
 0x5ea   : > { %1639 = vrot.lane.b32.xlu1 %v2579_v37, %s2590_s25 }
 0x5f9   : > { %v1574_v55 = vpop.xlane.xlu1 %1573 }
 0x5fa   : > { %v1590_v1 = vsub.f32 %v2992_v53, %v1574_v55 }
 0x5fc   : > { %v1601_v0 = vmul.f32 1.442695, %v1590_v1 }
 0x5fd   : > { %v1568_v7 = vpop.xlane.xlu1 %1567 }
 0x5fe   : > { %2532 = vpow2.f32 %v1601_v0  ;;  %v1588_v56 = vsub.f32 %v2994_v6, %v1568_v7 }
 0x5ff   : > { %2534 = vpow2.f32 %v1603_v58 }
 0x600   : > { %v1597_v22 = vmul.f32 1.442695, %v1588_v56 }
 0x601   : > { %v1586_v9 = vpop.xlane.xlu1 %1585 }
 0x602   : > { %2536 = vpow2.f32 %v1597_v22  ;;  %v1594_v46 = vsub.f32 %v3000_v8, %v1586_v9  ;;  %v2444_v8 = vld [vmem:[%s3196_s1 + $0x28] sm:$0xff]  }
 0x603   : > { %2538 = vpow2.f32 %v1607_v4  ;;  %2340 = vmatprep.subr.bf16.mxu1 %v2444_v8 }
 0x604   : > { %v1609_v54 = vmul.f32 1.442695, %v1594_v46  ;;  %2341 = vmatpush3.bf16.msra.mxu1 %v2444_v8 }
 0x605   : > { %v1580_v25 = vpop.xlane.xlu1 %1579  ;;  %2342 = vmatprep.subr.bf16.mxu1 %v2445_v59 }
 0x606   : > { %2540 = vpow2.f32 %v1609_v54  ;;  %v1592_v53 = vsub.f32 %v3004_v33, %v1580_v25 }
 0x608   : > { %v1605_v60 = vmul.f32 1.442695, %v1592_v53  ;;  %2343 = vmatpush3.bf16.msra.mxu1 %v2445_v59 }
 0x60a   : > { %2542 = vpow2.f32 %v1605_v60 }
 0x60b   : > { %v3052_v11 = vpop.eup %2532 }
 0x60c   : > { %v1636_v6 = vpack.c.bf16 %v3052_v11, %v3037_v38  ;;  %v1620_v57 = vsel %vm381_vm1, %v3052_v11, 0.0  ;;  %v3058_v24 = vpop.eup %2534  ;;  %v2447_v38 = vld [vmem:[%s3196_s1 + $0x30] sm:$0xff]   ;;  %v1033_v11 = vadd.f32 %v3090_v18, %v2920_v20 }
 0x60d   : > { %1621 = vadd.xlane.f32.xlu0 %v1620_v57  ;;  %v1623_v33 = vsel %vm381_vm1, %v3058_v24, 0.0 }
 0x60f   : > { %v3063_v48 = vpop.eup %2536 }
 0x610   : > { %v1614_v50 = vsel %vm381_vm1, %v3063_v48, 0.0  ;;  %v1635_v31 = vpack.c.bf16 %v3063_v48, %v3033_v52  ;;  %v3071_v47 = vpop.eup %2538  ;;  %v2446_v52 = vld [vmem:[%s3196_s1 + $0x38] sm:$0xff]   ;;  %v1025_v48 = vadd.f32 %v3092_v40, %v2922_v21  ;;  %v1049_v40 = vadd.f32 %v3098_v32, %v2928_v26 }
 0x611   : > { %1624 = vadd.xlane.f32.xlu0 %v1623_v33  ;;  %1615 = vadd.xlane.f32.xlu1 %v1614_v50  ;;  %v1629_v61 = vsel %vm381_vm1, %v3071_v47, 0.0 }
 0x613   : > { %v3073_v30 = vpop.eup %2540 }
 0x614   : > { %v1638_v49 = vpack.c.bf16 %v3073_v30, %v3071_v47  ;;  %v1632_v12 = vsel %vm381_vm1, %v3073_v30, 0.0  ;;  %v1036_v30 = vadd.f32 %v3094_v19, %v2924_v43  ;;  %v1041_v19 = vadd.f32 %v3100_v41, %v2930_v27 }
 0x615   : > { %1630 = vadd.xlane.f32.xlu0 %v1629_v61 }
 0x617   : > { %v3082_v62 = vpop.eup %2542 }
 0x618   : > { %v1626_v5 = vsel %vm381_vm1, %v3082_v62, 0.0  ;;  %v1637_v2 = vpack.c.bf16 %v3082_v62, %v3058_v24 }
 0x619   : > { %1627 = vadd.xlane.f32.xlu1 %v1626_v5 }
 0x61c   : > { %v1224_v63 = vpop.xlane.xlu0 %1223 }
 0x61d   : > { %1633 = vadd.xlane.f32.xlu1 %v1632_v12  ;;  %2544 = vrcp.f32 %v1224_v63 }
 0x620   : > { %v1218_v13 = vpop.xlane.xlu0 %1217 }
 0x624   : > { %v1227_v14 = vpop.xlane.xlu0 %1226  ;;  %v1221_v51 = vpop.xlane.xlu1 %1220 }
 0x625   : > { %2546 = vrcp.f32 %v1227_v14 }
 0x626   : > { %2548 = vrcp.f32 %v1218_v13 }
 0x627   : > { %2550 = vrcp.f32 %v1221_v51 }
 0x628   : > { %v1236_v15 = vpop.xlane.xlu0 %1235  ;;  %v1644_v39 = vpop.permute.xlu1 %1643 }
 0x62a   : > { %v2545_v29 = vpop.eup %2544 }
 0x62c   : > { %v1230_v16 = vpop.xlane.xlu0 %1229  ;;  %v1642_v34 = vpop.permute.xlu1 %1641 }
 0x62d   : > { %2552 = vrcp.f32 %v1230_v16 }
 0x630   : > { %v1646_v17 = vpop.permute.xlu0 %1645 }
 0x631   : > { %2368 = vmatprep.subr.bf16.mxu1 %v1646_v17 }
 0x632   : > { %v2547_v55 = vpop.eup %2546 }
 0x633   : > { %v2549_v58 = vpop.eup %2548 }
 0x634   : > { %v2551_v56 = vpop.eup %2550 }
 0x63a   : > { %v2553_v60 = vpop.eup %2552 }
 0x65d   : > { %v1239_v37 = vpop.xlane.xlu1 %1238 }
 0x65e   : > { %2554 = vrcp.f32 %v1239_v37  ;;  %v1052_v37 = vadd.f32 %v3102_v44, %v2932_v28 }
 0x662   : > { %v1233_v1 = vpop.xlane.xlu1 %1232 }
 0x663   : > { %2556 = vrcp.f32 %v1233_v1 }
 0x664   : > { %2558 = vrcp.f32 %v1236_v15 }
 0x666   : > { %v1640_v5 = vpop.permute.xlu1 %1639 }
 0x66b   : > { %v2555_v8 = vpop.eup %2554 }
 0x670   : > { %v2557_v33 = vpop.eup %2556 }
 0x671   : > { %v2559_v61 = vpop.eup %2558 }
 0x68d   : > { %v2334_v3 = vpop.f32.mrf.mxu1 }
 0x68e   : > { %v1343_v0 = vmul.f32 %v2545_v29, %v2334_v3 }
 0x68f   : > { %v1302_v10 = vpop.f32.mrf.mxu1 }
 0x690   : > { %v1341_v22 = vmul.f32 %v2549_v58, %v1302_v10 }
 0x691   : > { %v2335_v35 = vpop.f32.mrf.mxu1 }
 0x692   : > { %v1344_v7 = vmul.f32 %v2547_v55, %v2335_v35 }
 0x693   : > { %v1305_v4 = vpop.f32.mrf.mxu1 }
 0x694   : > { %v1350_v9 = vpack.c.bf16 %v1344_v7, %v1343_v0  ;;  %v1342_v46 = vmul.f32 %v2551_v56, %v1305_v4 }
 0x696   : > { %v1349_v54 = vpack.c.bf16 %v1342_v46, %v1341_v22 }
 0x698   : > { %2344 = vmatprep.mubr.msk.bf16.mxu1 %vm283_vm0, %v1349_v54 }
 0x699   : > { %2345 = vmatmul.mubr.msk.bf16.vlgmr.msra.gmra.mxu1 %vm283_vm0, %v1350_v9 }
 0x69a   : > { %2369 = vmatpush3.bf16.msra.mxu1 %v1646_v17  ;;  %v1616_v21 = vpop.xlane.xlu1 %1615 }
 0x69b   : > { %v2338_v25 = vpop.f32.mrf.mxu1  ;;  %2370 = vmatprep.subr.bf16.mxu1 %v1644_v39 }
 0x69c   : > { %v1347_v13 = vmul.f32 %v2559_v61, %v2338_v25 }
 0x69d   : > { %v1318_v53 = vpop.f32.mrf.mxu1 }
 0x69e   : > { %2371 = vmatpush3.bf16.msra.mxu1 %v1644_v39  ;;  %v1345_v63 = vmul.f32 %v2553_v60, %v1318_v53 }
 0x69f   : > { %v2339_v57 = vpop.f32.mrf.mxu1  ;;  %2372 = vmatprep.subr.bf16.mxu1 %v1642_v34 }
 0x6a0   : > { %v1348_v50 = vmul.f32 %v2555_v8, %v2339_v57 }
 0x6a1   : > { %v1321_v59 = vpop.f32.mrf.mxu1 }
 0x6a2   : > { %v1346_v12 = vmul.f32 %v2557_v33, %v1321_v59  ;;  %2373 = vmatpush3.bf16.msra.mxu1 %v1642_v34  ;;  %v1352_v15 = vpack.c.bf16 %v1348_v50, %v1347_v13  ;;  %v1628_v39 = vpop.xlane.xlu1 %1627 }
 0x6a3   : > { %2374 = vmatprep.subr.bf16.mxu1 %v1640_v5 }
 0x6a4   : > { %v1351_v14 = vpack.c.bf16 %v1346_v12, %v1345_v63 }
 0x6a6   : > { %2348 = vmatprep.mubr.msk.bf16.mxu1 %vm283_vm0, %v1351_v14  ;;  %2375 = vmatpush3.bf16.msra.mxu1 %v1640_v5  ;;  %v1634_v26 = vpop.xlane.xlu1 %1633 }
 0x6a7   : > { %2349 = vmatmul.mubr.msk.bf16.gmra.mxu1 %vm283_vm0, %v1352_v15  ;;  %2384 = vmatprep.subr.bf16.mxu1 %v2446_v52 }
 0x6a8   : > { %2376 = vmatprep.mubr.msk.bf16.mxu1 %vm381_vm1, %v1635_v31 }
 0x6af   : > { %2377 = vmatmul.mubr.msk.bf16.vlgmr.msra.gmra.mxu1 %vm381_vm1, %v1636_v6  ;;  %v1613_v6 = vpop.xlane.xlu0 %1612 }
 0x6b0   : > { %2380 = vmatprep.mubr.msk.bf16.mxu1 %vm381_vm1, %v1637_v2  ;;  %2385 = vmatpush3.bf16.msra.mxu1 %v2446_v52  ;;  %v1028_v2 = vadd.f32 %v3096_v23, %v2926_v45  ;;  %2560 = vrcp.f32 %v1613_v6  ;;  %v2069_v52 = vld [vmem:[%s3197_s2] ss:$0 sm:$0xff] }
 0x6b1   : > { %2386 = vmatprep.subr.bf16.mxu1 %v2447_v38 }
 0x6b3   : > { %v1619_v16 = vpop.xlane.xlu0 %1618 }
 0x6b4   : > { %2387 = vmatpush3.bf16.msra.mxu1 %v2447_v38  ;;  %v2126_v38 = vld [vmem:[%s3170_s19 + $0x8] sm:$0xff]  }
 0x6b7   : > { %2381 = vmatmul.mubr.msk.bf16.gmra.mxu1 %vm381_vm1, %v1638_v49  ;;  %v1622_v51 = vpop.xlane.xlu0 %1621 }
 0x6b8   : > { %2562 = vrcp.f32 %v1622_v51 }
 0x6b9   : > { %2564 = vrcp.f32 %v1616_v21 }
 0x6ba   : > { %2566 = vrcp.f32 %v1619_v16 }
 0x6bb   : > { %v1625_v34 = vpop.xlane.xlu0 %1624 }
 0x6bc   : > { %2568 = vrcp.f32 %v1625_v34 }
 0x6bd   : > { %2570 = vrcp.f32 %v1634_v26  ;;  %v2561_v1 = vpop.eup %2560 }
 0x6be   : > { %2572 = vrcp.f32 %v1628_v39 }
 0x6bf   : > { %v1631_v55 = vpop.xlane.xlu0 %1630 }
 0x6c0   : > { %2574 = vrcp.f32 %v1631_v55 }
 0x6c5   : > { %v2563_v58 = vpop.eup %2562 }
 0x6c6   : > { %v2565_v0 = vpop.eup %2564 }
 0x6c7   : > { %v2567_v7 = vpop.eup %2566 }
 0x6c9   : > { %v2569_v53 = vpop.eup %2568 }
 0x6ca   : > { %v2571_v57 = vpop.eup %2570 }
 0x6cb   : > { %v2573_v8 = vpop.eup %2572 }
 0x6cd   : > { %v2575_v59 = vpop.eup %2574 }
 0x759   : > { %v2346_v24 = vpop.f32.mrf.mxu1 }
 0x75a   : > { %v3136_v31 = vadd.f32 %v2346_v24, %v1033_v11  ;;  %v2091_v24 = vld [vmem:[%s3170_s19] sm:$0xff]  }
 0x75b   : > { %v1411_v47 = vpop.f32.mrf.mxu1  ;;  %v2092_v16 = vunpack.c.l.bf16 %v2091_v24 }
 0x75c   : > { %v3140_v49 = vadd.f32 %v1411_v47, %v1025_v48 }
 0x75d   : > { %v2347_v62 = vpop.f32.mrf.mxu1 }
 0x75e   : > { %v3144_v17 = vadd.f32 %v2347_v62, %v1036_v30  ;;  %v2096_v30 = vunpack.c.l.bf16 %v2126_v38 }
 0x75f   : > { %v1414_v20 = vpop.f32.mrf.mxu1 }
 0x760   : > { %v3146_v18 = vadd.f32 %v1414_v20, %v1028_v2  ;;  %v2097_v2 = vunpack.c.h.bf16 %v2126_v38 }
 0x767   : > { %v2350_v43 = vpop.f32.mrf.mxu1 }
 0x768   : > { %v3152_v45 = vadd.f32 %v2350_v43, %v1049_v40  ;;  %v2093_v40 = vunpack.c.h.bf16 %v2091_v24 }
 0x769   : > { %v1427_v23 = vpop.f32.mrf.mxu1 }
 0x76a   : > { %v3156_v3 = vadd.f32 %v1427_v23, %v1041_v19  ;;  %v2128_v23 = vld [vmem:[%s3170_s19 + $0x18] sm:$0xff]  }
 0x76b   : > { %v2351_v10 = vpop.f32.mrf.mxu1 }
 0x76c   : > { %v3158_v32 = vadd.f32 %v2351_v10, %v1052_v37  ;;  %v1044_v37 = vadd.f32 %v3104_v36, %v2934_v42  ;;  %v2105_v36 = vunpack.c.h.bf16 %v2128_v23 }
 0x76d   : > { %v3160_v29 = vpop.f32.mrf.mxu1 }
 0x76f   : > { %v2378_v27 = vpop.f32.mrf.mxu1 }
 0x770   : > { %v1738_v22 = vmul.f32 %v2567_v7, %v2378_v27  ;;  %v2127_v27 = vld [vmem:[%s3170_s19 + $0x10] sm:$0xff]  }
 0x771   : > { %v1697_v41 = vpop.f32.mrf.mxu1 }
 0x772   : > { %v1736_v56 = vmul.f32 %v2561_v1, %v1697_v41  ;;  %v1447_v41 = vadd.f32 %v3160_v29, %v1044_v37  ;;  %v2104_v1 = vunpack.c.l.bf16 %v2128_v23 }
 0x773   : > { %v2379_v35 = vpop.f32.mrf.mxu1 }
 0x774   : > { %v1739_v28 = vmul.f32 %v2563_v58, %v2379_v35 }
 0x775   : > { %v1700_v44 = vpop.f32.mrf.mxu1 }
 0x776   : > { %v1737_v4 = vmul.f32 %v2565_v0, %v1700_v44  ;;  %v1745_v54 = vpack.c.bf16 %v1739_v28, %v1738_v22  ;;  %v2100_v0 = vunpack.c.l.bf16 %v2127_v27 }
 0x777   : > { %v2382_v9 = vpop.f32.mrf.mxu1 }
 0x778   : > { %v1744_v46 = vpack.c.bf16 %v1737_v4, %v1736_v56  ;;  %v1742_v63 = vmul.f32 %v2575_v59, %v2382_v9  ;;  %v2101_v4 = vunpack.c.h.bf16 %v2127_v27 }
 0x779   : > { %v1713_v25 = vpop.f32.mrf.mxu1 }
 0x77a   : > { %2388 = vmatprep.mubr.msk.bf16.mxu1 %vm283_vm0, %v1744_v46  ;;  %v1740_v61 = vmul.f32 %v2569_v53, %v1713_v25 }
 0x77b   : > { %v2383_v60 = vpop.f32.mrf.mxu1  ;;  %2389 = vmatmul.mubr.msk.bf16.vlgmr.msra.gmra.mxu1 %vm283_vm0, %v1745_v54 }
 0x77c   : > { %v1743_v33 = vmul.f32 %v2571_v57, %v2383_v60 }
 0x77d   : > { %v1716_v50 = vpop.f32.mrf.mxu1 }
 0x77e   : > { %v1741_v5 = vmul.f32 %v2573_v8, %v1716_v50  ;;  %v1747_v13 = vpack.c.bf16 %v1743_v33, %v1742_v63 }
 0x780   : > { %v1746_v12 = vpack.c.bf16 %v1741_v5, %v1740_v61 }
 0x782   : > { %2392 = vmatprep.mubr.msk.bf16.mxu1 %vm283_vm0, %v1746_v12 }
 0x783   : > { %2393 = vmatmul.mubr.msk.bf16.gmra.mxu1 %vm283_vm0, %v1747_v13 }
 0x83b   : > { %v2390_v14 = vpop.f32.mrf.mxu1 }
 0x83c   : > { %v1839_v15 = vadd.f32 %v2390_v14, %v3136_v31 }
 0x83d   : > { %v1806_v11 = vpop.f32.mrf.mxu1 }
 0x83e   : > { %v1837_v6 = vadd.f32 %v1806_v11, %v3140_v49  ;;  %v1854_v47 = vadd.f32 %v2069_v52, %v1839_v15 }
 0x83f   : > { %v2391_v48 = vpop.f32.mrf.mxu1 }
 0x840   : > { %v1840_v62 = vadd.f32 %v2391_v48, %v3144_v17  ;;  %v1852_v51 = vadd.f32 %v2069_v52, %v1837_v6  ;;  %v1878_v43 = vadd.f32 %v2096_v30, %v1854_v47 }
 0x841   : > { %v1809_v20 = vpop.f32.mrf.mxu1 }
 0x842   : > { %v1855_v31 = vadd.f32 %v2069_v52, %v1840_v62  ;;  %v1838_v21 = vadd.f32 %v1809_v20, %v3146_v18  ;;  %v1876_v10 = vadd.f32 %v2092_v16, %v1852_v51 }
 0x843   : > { %v2394_v39 = vpop.f32.mrf.mxu1 }
 0x844   : > { %v1879_v19 = vadd.f32 %v2097_v2, %v1855_v31  ;;  %v1853_v49 = vadd.f32 %v2069_v52, %v1838_v21  ;;  %v1843_v34 = vadd.f32 %v2394_v39, %v3152_v45 }
 0x845   : > { %v1822_v17 = vpop.f32.mrf.mxu1 }
 0x846   : > { %v2114_v26 = vpack.c.bf16 %v1879_v19, %v1878_v43  ;;  %v1877_v55 = vadd.f32 %v2093_v40, %v1853_v49  ;;  %v1841_v18 = vadd.f32 %v1822_v17, %v3156_v3  ;;  %v1858_v58 = vadd.f32 %v2069_v52, %v1843_v34 }
 0x847   : > { %v2395_v35 = vpop.f32.mrf.mxu1 }
 0x848   : > { %2129 = vst [vmem:[%s217_s23 + $0x8] sm:$0xff] %v2114_v26   ;;  %v2109_v45 = vpack.c.bf16 %v1877_v55, %v1876_v10  ;;  %v1844_v42 = vadd.f32 %v2395_v35, %v3158_v32  ;;  %v1856_v44 = vadd.f32 %v2069_v52, %v1841_v18  ;;  %v1882_v22 = vadd.f32 %v2104_v1, %v1858_v58 }
 0x849   : > { %v1825_v28 = vpop.f32.mrf.mxu1 }
 0x84a   : > { %2110 = vst [vmem:[%s217_s23] sm:$0xff] %v2109_v45   ;;  %v1859_v7 = vadd.f32 %v2069_v52, %v1844_v42  ;;  %v1842_v56 = vadd.f32 %v1825_v28, %v1447_v41  ;;  %v1880_v46 = vadd.f32 %v2100_v0, %v1856_v44 }
 0x84c   : > { %v1883_v3 = vadd.f32 %v2105_v36, %v1859_v7  ;;  %v1857_v9 = vadd.f32 %v2069_v52, %v1842_v56 }
 0x84e   : > { %v2124_v29 = vpack.c.bf16 %v1883_v3, %v1882_v22  ;;  %v1881_v54 = vadd.f32 %v2101_v4, %v1857_v9 }
 0x850   : > { %2131 = vst [vmem:[%s217_s23 + $0x18] sm:$0xff] %v2124_v29   ;;  %v2119_v25 = vpack.c.bf16 %v1881_v54, %v1880_v46 }
 0x852   : > { %2130 = vst [vmem:[%s217_s23 + $0x10] sm:$0xff] %v2119_v25  }
 0x853 PF: > { %s14_s15 = sadd.s32 1, %s2586_s15  }
 0x854   : > { %p11_p4 = scmp.ge.s32.totalorder %s14_s15, 4  }
 0x856   :  { %13 = sbr.rel (!%p11_p4) target bundleno = 1 (0x1), region = 69 }

// kernel: _lambda_.19
= control target key start
LH: loop header
LB: loop body
LE: loop exit
PB: predicated region body
PF: predicated region fallthrough
CT: control target
= control target key end

     0   :  { %s612_s0 = inlined_call_operand.vmem [shape: bf16[128,128], index: 0, kind: input, shape index: {}]   ;;  %s613_s1 = inlined_call_operand.vmem [shape: f32[1,128], index: 1, kind: input, shape index: {}]   ;;  %s614_s2 = inlined_call_operand.vmem [shape: f32[1,128], index: 2, kind: input, shape index: {}]   ;;  %s615_s3 = inlined_call_operand.hbm [shape: f32[128,128], index: 3, kind: output, shape index: {}]  }
   0x1   :  { %v305_v0 = vld [vmem:[%s612_s0] sm:$0xff]   ;;  %v336_v1 = vld [vmem:[%s612_s0 + $0x8] sm:$0xff]  }
   0x2   :  { %v306_v2 = vunpack.c.l.bf16 %v305_v0  ;;  %v310_v3 = vunpack.c.l.bf16 %v336_v1 }
   0x3   :  { %8 = vsyncpa [#allocation3], 0  ;;  %v307_v4 = vunpack.c.h.bf16 %v305_v0  ;;  %v311_v5 = vunpack.c.h.bf16 %v336_v1  ;;  %v337_v6 = vld [vmem:[%s612_s0 + $0x10] sm:$0xff]   ;;  %v338_v9 = vld [vmem:[%s612_s0 + $0x18] sm:$0xff]  }
   0x4   :  { %47 = vadd.xlane.f32.xlu0 %v306_v2  ;;  %51 = vadd.xlane.f32.xlu1 %v310_v3  ;;  %v314_v7 = vunpack.c.l.bf16 %v337_v6  ;;  %v315_v8 = vunpack.c.h.bf16 %v337_v6  ;;  %v318_v10 = vunpack.c.l.bf16 %v338_v9  ;;  %v319_v11 = vunpack.c.h.bf16 %v338_v9  ;;  %v438_v12 = vld [vmem:[%s612_s0 + $0x20] sm:$0xff]   ;;  %v445_v15 = vld [vmem:[%s612_s0 + $0x28] sm:$0xff]   ;;  %v452_v18 = vld [vmem:[%s612_s0 + $0x30] sm:$0xff]  }
   0x5   :  { %v322_v13 = vunpack.c.l.bf16 %v438_v12  ;;  %v323_v14 = vunpack.c.h.bf16 %v438_v12  ;;  %v326_v16 = vunpack.c.l.bf16 %v445_v15  ;;  %v327_v17 = vunpack.c.h.bf16 %v445_v15  ;;  %v463_v21 = vld [vmem:[%s612_s0 + $0x38] sm:$0xff]  }
   0x6   :  { %v330_v19 = vunpack.c.l.bf16 %v452_v18  ;;  %v331_v20 = vunpack.c.h.bf16 %v452_v18  ;;  %v334_v22 = vunpack.c.l.bf16 %v463_v21  ;;  %v335_v23 = vunpack.c.h.bf16 %v463_v21 }
   0x8   :  { %49 = vadd.xlane.f32.xlu0 %v307_v4  ;;  %53 = vadd.xlane.f32.xlu1 %v311_v5 }
   0xc   :  { %55 = vadd.xlane.f32.xlu0 %v314_v7  ;;  %57 = vadd.xlane.f32.xlu1 %v315_v8 }
  0x10   :  { %59 = vadd.xlane.f32.xlu0 %v318_v10  ;;  %61 = vadd.xlane.f32.xlu1 %v319_v11 }
  0x14   :  { %63 = vadd.xlane.f32.xlu0 %v322_v13  ;;  %65 = vadd.xlane.f32.xlu1 %v323_v14 }
  0x18   :  { %67 = vadd.xlane.f32.xlu0 %v326_v16  ;;  %69 = vadd.xlane.f32.xlu1 %v327_v17 }
  0x1c   :  { %71 = vadd.xlane.f32.xlu0 %v330_v19  ;;  %73 = vadd.xlane.f32.xlu1 %v331_v20 }
  0x20   :  { %75 = vadd.xlane.f32.xlu0 %v334_v22  ;;  %77 = vadd.xlane.f32.xlu1 %v335_v23 }
  0x8d   :  { %v48_v24 = vpop.xlane.xlu0 %47  ;;  %v52_v25 = vpop.xlane.xlu1 %51 }
  0x8e   :  { %v80_v26 = vmul.f32 0.0078125, %v48_v24  ;;  %v82_v27 = vmul.f32 0.0078125, %v52_v25 }
  0x90   :  { %v475_v28 = vsub.f32 %v306_v2, %v80_v26  ;;  %v477_v29 = vsub.f32 %v310_v3, %v82_v27 }
  0x91   :  { %v50_v30 = vpop.xlane.xlu0 %49  ;;  %v54_v31 = vpop.xlane.xlu1 %53 }
  0x92   :  { %v81_v32 = vmul.f32 0.0078125, %v50_v30  ;;  %v112_v33 = vmul.f32 %v475_v28, %v475_v28  ;;  %v83_v34 = vmul.f32 0.0078125, %v54_v31  ;;  %v114_v37 = vmul.f32 %v477_v29, %v477_v29 }
  0x94   :  { %v481_v35 = vsub.f32 %v307_v4, %v81_v32  ;;  %128 = vadd.xlane.f32.xlu0 %v112_v33  ;;  %v483_v36 = vsub.f32 %v311_v5, %v83_v34 }
  0x95   :  { %v56_v38 = vpop.xlane.xlu0 %55  ;;  %v58_v39 = vpop.xlane.xlu1 %57 }
  0x96   :  { %v84_v40 = vmul.f32 0.0078125, %v56_v38  ;;  %v113_v41 = vmul.f32 %v481_v35, %v481_v35  ;;  %v85_v42 = vmul.f32 0.0078125, %v58_v39  ;;  %v115_v45 = vmul.f32 %v483_v36, %v483_v36 }
  0x98   :  { %v489_v43 = vsub.f32 %v314_v7, %v84_v40  ;;  %132 = vadd.xlane.f32.xlu0 %v114_v37  ;;  %130 = vadd.xlane.f32.xlu1 %v113_v41  ;;  %v491_v44 = vsub.f32 %v315_v8, %v85_v42 }
  0x99   :  { %v60_v46 = vpop.xlane.xlu0 %59  ;;  %v62_v47 = vpop.xlane.xlu1 %61 }
  0x9a   :  { %v86_v48 = vmul.f32 0.0078125, %v60_v46  ;;  %v116_v49 = vmul.f32 %v489_v43, %v489_v43  ;;  %v87_v50 = vmul.f32 0.0078125, %v62_v47  ;;  %v117_v53 = vmul.f32 %v491_v44, %v491_v44 }
  0x9c   :  { %v497_v51 = vsub.f32 %v318_v10, %v86_v48  ;;  %134 = vadd.xlane.f32.xlu1 %v115_v45  ;;  %136 = vadd.xlane.f32.xlu0 %v116_v49  ;;  %v499_v52 = vsub.f32 %v319_v11, %v87_v50 }
  0x9d   :  { %v64_v54 = vpop.xlane.xlu0 %63  ;;  %v66_v55 = vpop.xlane.xlu1 %65 }
  0x9e   :  { %v88_v56 = vmul.f32 0.0078125, %v64_v54  ;;  %v118_v57 = vmul.f32 %v497_v51, %v497_v51  ;;  %v89_v58 = vmul.f32 0.0078125, %v66_v55  ;;  %v119_v61 = vmul.f32 %v499_v52, %v499_v52 }
  0xa0   :  { %v505_v59 = vsub.f32 %v322_v13, %v88_v56  ;;  %138 = vadd.xlane.f32.xlu1 %v117_v53  ;;  %140 = vadd.xlane.f32.xlu0 %v118_v57  ;;  %v507_v60 = vsub.f32 %v323_v14, %v89_v58  ;;  %v554_v58 = vld [vmem:[%s613_s1] ss:$0 sm:$0xff]  ;;  %s400_s1 = smov [#allocation2]  }
  0xa1   :  { %v68_v62 = vpop.xlane.xlu0 %67  ;;  %v70_v63 = vpop.xlane.xlu1 %69 }
  0xa2   :  { %v90_v0 = vmul.f32 0.0078125, %v68_v62  ;;  %v120_v1 = vmul.f32 %v505_v59, %v505_v59  ;;  %v91_v2 = vmul.f32 0.0078125, %v70_v63  ;;  %v121_v5 = vmul.f32 %v507_v60, %v507_v60 }
  0xa4   :  { %v515_v3 = vsub.f32 %v326_v16, %v90_v0  ;;  %142 = vadd.xlane.f32.xlu1 %v119_v61  ;;  %144 = vadd.xlane.f32.xlu0 %v120_v1  ;;  %v519_v4 = vsub.f32 %v327_v17, %v91_v2  ;;  %v560_v0 = vld [vmem:[%s614_s2] ss:$0 sm:$0xff]  ;;  %s291_s2 = sshll.u32 %s400_s1, 4  ;;  %s292_s2 = int_to_ptr.vmem [resolvable:$true] %s291_s2 }
  0xa5   :  { %v72_v6 = vpop.xlane.xlu0 %71  ;;  %v74_v7 = vpop.xlane.xlu1 %73  ;;  %s378_s4 = scalar_lea.vmem %s292_s2, 2048  ;;  %p383_p1 = scmp.lt.s32.totalorder %s292_s2, %s292_s2 }
  0xa6   :  { %v92_v8 = vmul.f32 0.0078125, %v72_v6  ;;  %v122_v9 = vmul.f32 %v515_v3, %v515_v3  ;;  %v93_v10 = vmul.f32 0.0078125, %v74_v7  ;;  %v123_v13 = vmul.f32 %v519_v4, %v519_v4  ;;  %p379_p0 = scmp.ne.s32.totalorder %s292_s2, %s378_s4  ;;  %p384_p2 = scmp.lt.s32.totalorder %s378_s4, %s378_s4 }
  0xa8   :  { %v527_v11 = vsub.f32 %v330_v19, %v92_v8  ;;  %146 = vadd.xlane.f32.xlu1 %v121_v5  ;;  %148 = vadd.xlane.f32.xlu0 %v122_v9  ;;  %v531_v12 = vsub.f32 %v331_v20, %v93_v10  ;;  %p385_p3 = por %p384_p2, %p383_p1 }
  0xa9   :  { %v76_v14 = vpop.xlane.xlu0 %75  ;;  %v78_v15 = vpop.xlane.xlu1 %77 }
  0xaa   :  { %v94_v16 = vmul.f32 0.0078125, %v76_v14  ;;  %v124_v17 = vmul.f32 %v527_v11, %v527_v11  ;;  %v95_v24 = vmul.f32 0.0078125, %v78_v15  ;;  %v125_v20 = vmul.f32 %v531_v12, %v531_v12  ;;  %p386_p4 = pnand %p385_p3, %p379_p0 }
  0xac   :  { %v539_v19 = vsub.f32 %v334_v22, %v94_v16  ;;  %150 = vadd.xlane.f32.xlu1 %v123_v13  ;;  %152 = vadd.xlane.f32.xlu0 %v124_v17  ;;  %v543_v18 = vsub.f32 %v335_v23, %v95_v24 }
  0xae   :  { %v126_v25 = vmul.f32 %v539_v19, %v539_v19  ;;  %v127_v26 = vmul.f32 %v543_v18, %v543_v18 }
  0xb0   :  { %154 = vadd.xlane.f32.xlu1 %v125_v20  ;;  %156 = vadd.xlane.f32.xlu0 %v126_v25 }
  0xb4   :  { %158 = vadd.xlane.f32.xlu1 %v127_v26 }
 0x11d   :  { %v129_v22 = vpop.xlane.xlu0 %128 }
 0x11e   :  { %v160_v27 = vmul.f32 0.0078125, %v129_v22 }
 0x120   :  { %v176_v30 = vadd.f32 1e-06, %v160_v27 }
 0x121   :  { %v131_v31 = vpop.xlane.xlu1 %130  ;;  %v133_v32 = vpop.xlane.xlu0 %132 }
 0x122   :  { %346 = vrsqrt.f32 %v176_v30  ;;  %v161_v21 = vmul.f32 0.0078125, %v131_v31  ;;  %v162_v23 = vmul.f32 0.0078125, %v133_v32 }
 0x124   :  { %v177_v33 = vadd.f32 1e-06, %v161_v21  ;;  %v178_v34 = vadd.f32 1e-06, %v162_v23 }
 0x125   :  { %v135_v37 = vpop.xlane.xlu1 %134  ;;  %v137_v38 = vpop.xlane.xlu0 %136 }
 0x126   :  { %348 = vrsqrt.f32 %v177_v33  ;;  %v163_v39 = vmul.f32 0.0078125, %v135_v37  ;;  %v164_v40 = vmul.f32 0.0078125, %v137_v38 }
 0x127   :  { %350 = vrsqrt.f32 %v178_v34 }
 0x128   :  { %v179_v41 = vadd.f32 1e-06, %v163_v39  ;;  %v180_v42 = vadd.f32 1e-06, %v164_v40 }
 0x129   :  { %v139_v45 = vpop.xlane.xlu1 %138  ;;  %v141_v46 = vpop.xlane.xlu0 %140 }
 0x12a   :  { %352 = vrsqrt.f32 %v179_v41  ;;  %v165_v47 = vmul.f32 0.0078125, %v139_v45  ;;  %v166_v48 = vmul.f32 0.0078125, %v141_v46 }
 0x12b   :  { %354 = vrsqrt.f32 %v180_v42 }
 0x12c   :  { %v181_v49 = vadd.f32 1e-06, %v165_v47  ;;  %v182_v50 = vadd.f32 1e-06, %v166_v48 }
 0x12d   :  { %v143_v53 = vpop.xlane.xlu1 %142  ;;  %v145_v54 = vpop.xlane.xlu0 %144 }
 0x12e   :  { %356 = vrsqrt.f32 %v181_v49  ;;  %v167_v55 = vmul.f32 0.0078125, %v143_v53  ;;  %v168_v56 = vmul.f32 0.0078125, %v145_v54 }
 0x12f   :  { %v347_v57 = vpop.eup %346  ;;  %358 = vrsqrt.f32 %v182_v50 }
 0x130   :  { %v208_v61 = vmul.f32 %v347_v57, %v475_v28  ;;  %v183_v62 = vadd.f32 1e-06, %v167_v55  ;;  %v184_v63 = vadd.f32 1e-06, %v168_v56 }
 0x131   :  { %v147_v1 = vpop.xlane.xlu1 %146  ;;  %v149_v2 = vpop.xlane.xlu0 %148 }
 0x132   :  { %v231_v5 = vmul.f32 %v554_v58, %v208_v61  ;;  %360 = vrsqrt.f32 %v183_v62  ;;  %v169_v6 = vmul.f32 0.0078125, %v147_v1  ;;  %v170_v7 = vmul.f32 0.0078125, %v149_v2 }
 0x133   :  { %v349_v8 = vpop.eup %348  ;;  %362 = vrsqrt.f32 %v184_v63 }
 0x134   :  { %v351_v9 = vpop.eup %350  ;;  %v254_v10 = vadd.f32 %v560_v0, %v231_v5  ;;  %v209_v28 = vmul.f32 %v349_v8, %v481_v35  ;;  %v185_v13 = vadd.f32 1e-06, %v169_v6  ;;  %v186_v14 = vadd.f32 1e-06, %v170_v7 }
 0x135   :  { %v210_v15 = vmul.f32 %v351_v9, %v477_v29  ;;  %v151_v16 = vpop.xlane.xlu1 %150  ;;  %v153_v17 = vpop.xlane.xlu0 %152 }
 0x136   :  { %270 = vst [vmem:[#allocation2] sm:$0xff] %v254_v10  ;;  %v232_v24 = vmul.f32 %v554_v58, %v209_v28  ;;  %364 = vrsqrt.f32 %v185_v13  ;;  %v171_v20 = vmul.f32 0.0078125, %v151_v16  ;;  %v172_v25 = vmul.f32 0.0078125, %v153_v17 }
 0x137   :  { %v353_v26 = vpop.eup %352  ;;  %v233_v22 = vmul.f32 %v554_v58, %v210_v15  ;;  %366 = vrsqrt.f32 %v186_v14 }
 0x138   :  { %v355_v27 = vpop.eup %354  ;;  %v255_v30 = vadd.f32 %v560_v0, %v232_v24  ;;  %v211_v35 = vmul.f32 %v353_v26, %v483_v36  ;;  %v187_v31 = vadd.f32 1e-06, %v171_v20  ;;  %v188_v32 = vadd.f32 1e-06, %v172_v25 }
 0x139   :  { %v256_v29 = vadd.f32 %v560_v0, %v233_v22  ;;  %v212_v21 = vmul.f32 %v355_v27, %v489_v43  ;;  %v155_v23 = vpop.xlane.xlu1 %154  ;;  %v157_v33 = vpop.xlane.xlu0 %156 }
 0x13a   :  { %271 = vst [vmem:[#allocation2 + $0x8] sm:$0xff] %v255_v30  ;;  %v234_v34 = vmul.f32 %v554_v58, %v211_v35  ;;  %368 = vrsqrt.f32 %v187_v31  ;;  %v173_v37 = vmul.f32 0.0078125, %v155_v23  ;;  %v174_v38 = vmul.f32 0.0078125, %v157_v33 }
 0x13b   :  { %v357_v39 = vpop.eup %356  ;;  %272 = vst [vmem:[#allocation2 + $0x10] sm:$0xff] %v256_v29  ;;  %v235_v40 = vmul.f32 %v554_v58, %v212_v21  ;;  %370 = vrsqrt.f32 %v188_v32 }
 0x13c   :  { %v359_v36 = vpop.eup %358  ;;  %v257_v41 = vadd.f32 %v560_v0, %v234_v34  ;;  %v213_v42 = vmul.f32 %v357_v39, %v491_v44  ;;  %v189_v45 = vadd.f32 1e-06, %v173_v37  ;;  %v190_v43 = vadd.f32 1e-06, %v174_v38 }
 0x13d   :  { %v258_v46 = vadd.f32 %v560_v0, %v235_v40  ;;  %v214_v47 = vmul.f32 %v359_v36, %v497_v51  ;;  %v159_v48 = vpop.xlane.xlu1 %158 }
 0x13e   :  { %273 = vst [vmem:[#allocation2 + $0x18] sm:$0xff] %v257_v41  ;;  %v236_v49 = vmul.f32 %v554_v58, %v213_v42  ;;  %372 = vrsqrt.f32 %v189_v45  ;;  %v175_v50 = vmul.f32 0.0078125, %v159_v48 }
 0x13f   :  { %v361_v53 = vpop.eup %360  ;;  %274 = vst [vmem:[#allocation2 + $0x20] sm:$0xff] %v258_v46  ;;  %v237_v54 = vmul.f32 %v554_v58, %v214_v47  ;;  %374 = vrsqrt.f32 %v190_v43 }
 0x140   :  { %v363_v55 = vpop.eup %362  ;;  %v259_v44 = vadd.f32 %v560_v0, %v236_v49  ;;  %v215_v56 = vmul.f32 %v361_v53, %v499_v52  ;;  %v191_v57 = vadd.f32 1e-06, %v175_v50 }
 0x141   :  { %v260_v61 = vadd.f32 %v560_v0, %v237_v54  ;;  %v216_v51 = vmul.f32 %v363_v55, %v505_v59 }
 0x142   :  { %275 = vst [vmem:[#allocation2 + $0x28] sm:$0xff] %v259_v44  ;;  %v238_v62 = vmul.f32 %v554_v58, %v215_v56  ;;  %376 = vrsqrt.f32 %v191_v57 }
 0x143   :  { %v365_v63 = vpop.eup %364  ;;  %276 = vst [vmem:[#allocation2 + $0x30] sm:$0xff] %v260_v61  ;;  %v239_v1 = vmul.f32 %v554_v58, %v216_v51 }
 0x144   :  { %v367_v2 = vpop.eup %366  ;;  %v261_v5 = vadd.f32 %v560_v0, %v238_v62  ;;  %v217_v6 = vmul.f32 %v365_v63, %v507_v60 }
 0x145   :  { %v262_v52 = vadd.f32 %v560_v0, %v239_v1  ;;  %v218_v7 = vmul.f32 %v367_v2, %v515_v3 }
 0x146   :  { %277 = vst [vmem:[#allocation2 + $0x38] sm:$0xff] %v261_v5  ;;  %v240_v59 = vmul.f32 %v554_v58, %v217_v6 }
 0x147   :  { %v369_v8 = vpop.eup %368  ;;  %278 = vst [vmem:[#allocation2 + $0x40] sm:$0xff] %v262_v52  ;;  %v241_v9 = vmul.f32 %v554_v58, %v218_v7 }
 0x148   :  { %v371_v10 = vpop.eup %370  ;;  %v263_v28 = vadd.f32 %v560_v0, %v240_v59  ;;  %v219_v13 = vmul.f32 %v369_v8, %v519_v4 }
 0x149   :  { %v264_v14 = vadd.f32 %v560_v0, %v241_v9  ;;  %v220_v60 = vmul.f32 %v371_v10, %v527_v11 }
 0x14a   :  { %279 = vst [vmem:[#allocation2 + $0x48] sm:$0xff] %v263_v28  ;;  %v242_v15 = vmul.f32 %v554_v58, %v219_v13 }
 0x14b   :  { %v373_v3 = vpop.eup %372  ;;  %280 = vst [vmem:[#allocation2 + $0x50] sm:$0xff] %v264_v14  ;;  %v243_v16 = vmul.f32 %v554_v58, %v220_v60 }
 0x14c   :  { %v375_v17 = vpop.eup %374  ;;  %v265_v24 = vadd.f32 %v560_v0, %v242_v15  ;;  %v221_v20 = vmul.f32 %v373_v3, %v531_v12 }
 0x14d   :  { %v266_v25 = vadd.f32 %v560_v0, %v243_v16  ;;  %v222_v4 = vmul.f32 %v375_v17, %v539_v19 }
 0x14e   :  { %281 = vst [vmem:[#allocation2 + $0x58] sm:$0xff] %v265_v24  ;;  %v244_v26 = vmul.f32 %v554_v58, %v221_v20 }
 0x14f   :  { %v377_v11 = vpop.eup %376  ;;  %282 = vst [vmem:[#allocation2 + $0x60] sm:$0xff] %v266_v25  ;;  %v245_v22 = vmul.f32 %v554_v58, %v222_v4 }
 0x150   :  { %v267_v27 = vadd.f32 %v560_v0, %v244_v26  ;;  %v223_v30 = vmul.f32 %v377_v11, %v543_v18 }
 0x151   :  { %v268_v35 = vadd.f32 %v560_v0, %v245_v22 }
 0x152   :  { %283 = vst [vmem:[#allocation2 + $0x68] sm:$0xff] %v267_v27  ;;  %v246_v12 = vmul.f32 %v554_v58, %v223_v30 }
 0x153   :  { %284 = vst [vmem:[#allocation2 + $0x70] sm:$0xff] %v268_v35 }
 0x154   :  { %v269_v19 = vadd.f32 %v560_v0, %v246_v12 }
 0x156   :  { %285 = vst [vmem:[#allocation2 + $0x78] sm:$0xff] %v269_v19 }
 0x157   :  { %389 = shalt.err (!%p386_p4)
}
 0x158   :  { %s401_s5 = smov 128   ;;  %s402_s6 = smov 8  }
 0x159   :  { %297 = dma.vmem_to_hbm [thread:$0]  %s292_s2, 2048, %s615_s3, [#allocation3], %s401_s5, %s401_s5, %s402_s6  }
 0x15a   :  { %398 = dma.done.wait [#allocation3], 2048  }
 0x15b   :  { %399 = vsyncadd [#allocation3], 4294965248 }
 0x15c   :  { %301 = vsyncpa [#allocation3], 1 }

</bundles_post_ra>
